<compile_context>
chip_gen: v7x
topology: tpu7x:2x2x1
jax: 0.10.0
libtpu: 0.0.40
codegen_flags: <defaults>
</compile_context>

<pallas_src>
import functools

import jax
import jax.numpy as jnp
from jax import lax
from jax.experimental import pallas as pl
from jax.experimental.pallas import tpu as pltpu


# "NT" matmul: contract dim 1 of both operands ((tm, D) x (tn, D) -> (tm, tn)).
# MXU handles the transposed RHS natively; avoids an XLU transpose of the W tile.
_NT_DIMS = (((1,), (1,)), ((), ()))


def _pick_tile(dim, target, align):
    """Largest divisor of `dim` that is a multiple of `align` and <= target.

    Falls back to the full extent (always a legal Pallas block size)."""
    target = max(1, min(int(target), int(dim)))
    for t in range(target, 0, -1):
        if dim % t == 0 and t % align == 0:
            return t
    return dim


def _mf_weighted_delta_kernel(v_ref, w_ref, a_ref, b_ref, y_ref, ip_ref,
                              out_ref, acc_ref, *, tn, acc_w, w_resident,
                              delta_type):
    j = pl.program_id(1)

    # New row tile: zero the lane-wide accumulator (it is VMEM scratch that
    # persists across the item axis).
    @pl.when(j == 0)
    def _():
        acc_ref[...] = jnp.zeros_like(acc_ref)

    if w_resident:
        # Full W lives in VMEM (fetched from HBM once); slice this tile's rows.
        if tn % 128 == 0:
            align = 128
        elif tn % 8 == 0:
            align = 8
        else:
            align = 1
        start = pl.multiple_of(j * tn, align)
        w = w_ref[pl.ds(start, tn), :]
    else:
        w = w_ref[...]

    # (tm, D) x (tn, D) -> (tm, tn) on the MXU with f32 accumulation.
    # (bf16 operands -> single-pass bf16 MXU; f32 operands -> default precision.)
    scores = lax.dot_general(v_ref[...], w, _NT_DIMS,
                             preferred_element_type=jnp.float32)
    scores = scores + a_ref[...] + b_ref[...]          # a already has c folded in

    resid = y_ref[...].astype(jnp.float32) - scores
    if delta_type == "MSE":
        diff = resid * resid
    else:  # MAE
        diff = jnp.abs(resid)
    wd = ip_ref[...].astype(jnp.float32) * diff

    # Lane-aligned VPU accumulation into the (tm, acc_w) scratch: no per-step
    # cross-lane (XLU) reduce, no masked (tm, 1) read-modify-write per step.
    acc = acc_ref[...]
    for g in range(tn // acc_w):
        acc = acc + wd[:, g * acc_w:(g + 1) * acc_w]
    acc_ref[...] = acc

    # Finalize this row tile: one XLU lane-reduce + one narrow store.
    @pl.when(j == pl.num_programs(1) - 1)
    def _():
        out_ref[...] = jnp.sum(acc_ref[...], axis=1, keepdims=True)


def mf_objective(V, W, a, b, c, Y, inv_prop, *, delta_type="MSE", lam=0.1,
                 tm=None, tn=None, w_resident_bytes=None, stream_dtype=None):
    assert delta_type in ("MSE", "MAE")
    M, D = V.shape
    N, Dw = W.shape
    assert Dw == D
    assert Y.shape == (M, N) and inv_prop.shape == (M, N)

    # ---- chip-aware budgets (v5e/v6e: 128 MiB VMEM; v7x: 64 MiB per core) ----
    try:
        info = pltpu.get_tpu_info()
        vmem_phys = int(getattr(info, "vmem_capacity_bytes", 0)) or (128 << 20)
    except Exception:  # pragma: no cover - conservative fallback off-TPU
        vmem_phys = 128 << 20
    vmem_limit = min((vmem_phys * 3) // 4, 100 << 20)
    if w_resident_bytes is None:
        w_resident_bytes = vmem_limit // 4

    # ---- tile selection (divisors aligned to (8, 128); no hard asserts) ----
    big_vmem = vmem_limit >= (80 << 20)
    if tm is None:
        tm = 1024 if big_vmem else 512
    if tn is None:
        tn = 1024 if big_vmem else 512
    tm = _pick_tile(M, tm, 8)
    tn = _pick_tile(N, tn, 128)
    # v7x megacore: the "parallel" row axis shards across 2 TensorCores; make
    # sure it has at least 2 blocks when M permits (free on 1-TC chips).
    if M // tm < 2:
        tm2 = _pick_tile(M, M // 2, 8)
        if tm2 < M and tm2 >= 64:
            tm = tm2
    acc_w = 128 if tn % 128 == 0 else tn

    # ---- optional bf16 streaming of the heavy operands (halves HBM bytes) ----
    if stream_dtype is not None:
        V_s = V.astype(stream_dtype)
        W_s = W.astype(stream_dtype)
        Y_s = Y.astype(stream_dtype)
        ip_s = inv_prop.astype(stream_dtype)
    else:
        V_s, W_s, Y_s, ip_s = V, W, Y, inv_prop

    # Keep W fully VMEM-resident when small enough (DMA'd from HBM once).
    w_resident = (N * D * jnp.dtype(W_s.dtype).itemsize) <= w_resident_bytes

    # Fold the global bias c into the per-user bias a.
    a2 = (a.astype(jnp.float32) + c.astype(jnp.float32)[0]).reshape(M, 1)
    b2 = b.reshape(1, N).astype(jnp.float32)

    grid = (M // tm, N // tn)
    kernel = functools.partial(_mf_weighted_delta_kernel, tn=tn, acc_w=acc_w,
                               w_resident=w_resident, delta_type=delta_type)

    def _build_and_run(single_buffer_w):
        if w_resident:
            if single_buffer_w:
                # Constant index map -> fetched once; single buffer reclaims the
                # second copy's VMEM (matters most on v7x's 64 MiB).
                w_spec = pl.BlockSpec((N, D), lambda i, j: (0, 0),
                                      pipeline_mode=pl.Buffered(1))
            else:
                w_spec = pl.BlockSpec((N, D), lambda i, j: (0, 0))
        else:
            w_spec = pl.BlockSpec((tn, D), lambda i, j: (j, 0))

        return pl.pallas_call(
            kernel,
            out_shape=jax.ShapeDtypeStruct((M, 1), jnp.float32),
            grid_spec=pltpu.PrefetchScalarGridSpec(
                num_scalar_prefetch=0,
                grid=grid,
                in_specs=[
                    pl.BlockSpec((tm, D), lambda i, j: (i, 0)),    # V row tile
                    w_spec,                                        # W (resident/tiled)
                    pl.BlockSpec((tm, 1), lambda i, j: (i, 0)),    # a + c (column)
                    pl.BlockSpec((1, tn), lambda i, j: (0, j)),    # b (row)
                    pl.BlockSpec((tm, tn), lambda i, j: (i, j)),   # Y tile
                    pl.BlockSpec((tm, tn), lambda i, j: (i, j)),   # inv_prop tile
                ],
                out_specs=pl.BlockSpec((tm, 1), lambda i, j: (i, 0)),
                scratch_shapes=[pltpu.VMEM((tm, acc_w), jnp.float32)],
            ),
            compiler_params=pltpu.CompilerParams(
                dimension_semantics=("parallel", "arbitrary"),
                vmem_limit_bytes=int(vmem_limit)),
        )(V_s, W_s, a2, b2, Y_s, ip_s)

    try:
        row_sums = _build_and_run(single_buffer_w=w_resident)
    except Exception:
        # Conservative fallback if single-buffering the resident W is rejected.
        row_sums = _build_and_run(single_buffer_w=False)

    weighted_sum = jnp.sum(row_sums)

    # Plain-JAX glue: scalar penalty + (tiny) regularization term.
    # TODO(synk): the V/W squared-norm sums could be folded into the kernel's
    # accumulator (they are already in VMEM); kept as XLA reductions for clarity.
    scaled_penalty = (1.0 * lam * (M * N) / (M + N)) / (D + 1)
    regularization = (jnp.sum(V.astype(jnp.float32) ** 2)
                      + jnp.sum(W.astype(jnp.float32) ** 2)
                      + jnp.sum(a.astype(jnp.float32) ** 2)
                      + jnp.sum(b.astype(jnp.float32) ** 2)
                      + jnp.sum(c.astype(jnp.float32) ** 2))
    return weighted_sum + scaled_penalty * regularization


def mf_objective_ref(V, W, a, b, c, Y, inv_prop, delta_type, lam):
    """Pure-JAX reference mirroring the PyTorch forward() (f32 math)."""
    V = V.astype(jnp.float32); W = W.astype(jnp.float32)
    a = a.astype(jnp.float32); b = b.astype(jnp.float32)
    c = c.astype(jnp.float32)
    Y = Y.astype(jnp.float32); inv_prop = inv_prop.astype(jnp.float32)
    M, D = V.shape
    N = W.shape[0]
    scores = V @ W.T + a[:, None] + b[None, :] + c
    if delta_type == "MSE":
        diff = (Y - scores) ** 2
    else:
        diff = jnp.abs(Y - scores)
    reg = (jnp.sum(V ** 2) + jnp.sum(W ** 2) + jnp.sum(a ** 2)
           + jnp.sum(b ** 2) + jnp.sum(c ** 2))
    scaled_penalty = (1.0 * lam * (M * N) / (M + N)) / (D + 1)
    return jnp.sum(inv_prop * diff) + scaled_penalty * reg


# TODO(synk): calc_train_test_err / calc_train_val_err_ips (boolean-masked error
# helpers, not part of forward()) are not implemented as Pallas kernels.

if __name__ == "__main__":
    num_users, num_items, inner_dim = 512, 384, 128
    lam = 0.1

    key = jax.random.PRNGKey(0)
    k_v, k_w, k_a, k_b, k_c, k_y, k_ip = jax.random.split(key, 7)

    # Parameters (V/W ~ U[0,1) like the PyTorch init; small non-zero biases so the
    # bias path is actually exercised).
    V = jax.random.uniform(k_v, (num_users, inner_dim), dtype=jnp.float32)
    W = jax.random.uniform(k_w, (num_items, inner_dim), dtype=jnp.float32)
    a = 0.1 * jax.random.normal(k_a, (num_users,), dtype=jnp.float32)
    b = 0.1 * jax.random.normal(k_b, (num_items,), dtype=jnp.float32)
    c = 0.1 * jax.random.normal(k_c, (1,), dtype=jnp.float32)

    # Synthetic ratings + inverse propensities.
    Y = jax.random.uniform(k_y, (num_users, num_items), dtype=jnp.float32,
                           minval=1.0, maxval=5.0)
    inv_prop = jax.random.uniform(k_ip, (num_users, num_items),
                                  dtype=jnp.float32, minval=1.0, maxval=2.0)

    # bf16 copies for the streaming case (reference uses the SAME cast values, so
    # only accumulation/matmul-order differences remain).
    Vb, Wb = V.astype(jnp.bfloat16), W.astype(jnp.bfloat16)
    Yb, ipb = Y.astype(jnp.bfloat16), inv_prop.astype(jnp.bfloat16)

    cases = [
        # (args, kwargs, tolerance)
        # auto tiles, resident-W path (single-buffered), f32 streaming, MSE
        ((V, W, a, b, c, Y, inv_prop), dict(delta_type="MSE"), 1e-4),
        # streamed-W path, explicit small tiles, MAE
        ((V, W, a, b, c, Y, inv_prop),
         dict(delta_type="MAE", tm=128, tn=128, w_resident_bytes=0), 1e-4),
        # bf16-streamed heavy operands (halved HBM bytes), MSE
        ((Vb, Wb, a, b, c, Yb, ipb), dict(delta_type="MSE"), 2e-3),
    ]
    for args, cfg, tol in cases:
        obj = mf_objective(*args, lam=lam, **cfg)
        obj = jax.block_until_ready(obj)

        obj_ref = mf_objective_ref(*args, cfg["delta_type"], lam)
        obj_ref = jax.block_until_ready(obj_ref)

        rel_err = abs(float(obj) - float(obj_ref)) / max(abs(float(obj_ref)), 1e-6)
        assert rel_err < tol, (
            f"mismatch for {cfg}: pallas={float(obj)} ref={float(obj_ref)} "
            f"rel_err={rel_err}")

    print("KERNEL_OK")
</pallas_src>

<mosaic_0001>
module attributes {stable_mosaic.version = 11 : i64} {
  func.func @_mf_weighted_delta_kernel(%arg0: i32, %arg1: i32, %arg2: memref<256x128xf32, #tpu.memory_space<vmem>>, %arg3: memref<384x128xf32, #tpu.memory_space<vmem>>, %arg4: memref<256x1xf32, #tpu.memory_space<vmem>>, %arg5: memref<1x384xf32, #tpu.memory_space<vmem>>, %arg6: memref<256x384xf32, #tpu.memory_space<vmem>>, %arg7: memref<256x384xf32, #tpu.memory_space<vmem>>, %arg8: memref<256x1xf32, #tpu.memory_space<vmem>>, %arg9: memref<256x128xf32, #tpu.memory_space<vmem>>) attributes {dimension_semantics = [#tpu.dimension_semantics<parallel>, #tpu.dimension_semantics<arbitrary>], iteration_bounds = array<i64: 2, 1>, scalar_prefetch = 0 : i64, scratch_operands = 1 : i64, tpu.core_type = #tpu.core_type<tc>, window_params = [{transform_indices = @transform_0, window_bounds = array<i64: 256, 128>}, {pipeline_mode = #tpu.pipeline_mode<synchronous>, transform_indices = @transform_1, window_bounds = array<i64: 384, 128>}, {transform_indices = @transform_2, window_bounds = array<i64: 256, 1>}, {transform_indices = @transform_3, window_bounds = array<i64: 1, 384>}, {transform_indices = @transform_4, window_bounds = array<i64: 256, 384>}, {transform_indices = @transform_5, window_bounds = array<i64: 256, 384>}, {transform_indices = @transform_6, window_bounds = array<i64: 256, 1>}]} {
    %c0_i32 = arith.constant 0 : i32
    %0 = arith.cmpi eq, %arg1, %c0_i32 : i32
    %1 = arith.extui %0 : i1 to i32
    %c0_i32_0 = arith.constant 0 : i32
    %2 = arith.cmpi ne, %1, %c0_i32_0 : i32
    scf.if %2 {
      %cst_17 = arith.constant 0.000000e+00 : f32
      %31 = vector.broadcast %cst_17 : f32 to vector<256x128xf32>
      %c0_18 = arith.constant 0 : index
      %c0_19 = arith.constant 0 : index
      %32 = vector.load %arg9[%c0_18, %c0_19] : memref<256x128xf32, #tpu.memory_space<vmem>>, vector<256x128xf32>
      tpu.vector_store %arg9[%c0_18, %c0_19], %31 {strides = array<i32>} : memref<256x128xf32, #tpu.memory_space<vmem>>, vector<256x128xf32>,
    } else {
    }
    %c384_i32 = arith.constant 384 : i32
    %3 = arith.muli %arg1, %c384_i32 : i32
    %4 = tpu.assume_multiple %3, 128 : i32
    %5 = arith.index_cast %4 : i32 to index
    %c0 = arith.constant 0 : index
    %6 = vector.load %arg3[%5, %c0] : memref<384x128xf32, #tpu.memory_space<vmem>>, vector<384x128xf32>
    %c0_1 = arith.constant 0 : index
    %c0_2 = arith.constant 0 : index
    %7 = vector.load %arg2[%c0_1, %c0_2] : memref<256x128xf32, #tpu.memory_space<vmem>>, vector<256x128xf32>
    %cst = arith.constant dense<0.000000e+00> : vector<256x384xf32>
    %8 = tpu.matmul %7, %6, %cst {dimension_numbers = #tpu.dot_dimension_numbers<[1], [1], [0], [0], [0, 0, 1, 0], [], []>} : vector<256x128xf32>, vector<384x128xf32>, vector<256x384xf32> -> vector<256x384xf32>
    %c0_3 = arith.constant 0 : index
    %c0_4 = arith.constant 0 : index
    %9 = vector.load %arg4[%c0_3, %c0_4] : memref<256x1xf32, #tpu.memory_space<vmem>>, vector<256x1xf32>
    %10 = vector.broadcast %9 : vector<256x1xf32> to vector<256x384xf32>
    %11 = arith.addf %8, %10 : vector<256x384xf32>
    %c0_5 = arith.constant 0 : index
    %c0_6 = arith.constant 0 : index
    %12 = vector.load %arg5[%c0_5, %c0_6] : memref<1x384xf32, #tpu.memory_space<vmem>>, vector<1x384xf32>
    %13 = vector.broadcast %12 : vector<1x384xf32> to vector<256x384xf32>
    %14 = arith.addf %11, %13 : vector<256x384xf32>
    %c0_7 = arith.constant 0 : index
    %c0_8 = arith.constant 0 : index
    %15 = vector.load %arg6[%c0_7, %c0_8] : memref<256x384xf32, #tpu.memory_space<vmem>>, vector<256x384xf32>
    %16 = arith.subf %15, %14 : vector<256x384xf32>
    %17 = arith.mulf %16, %16 : vector<256x384xf32>
    %c0_9 = arith.constant 0 : index
    %c0_10 = arith.constant 0 : index
    %18 = vector.load %arg7[%c0_9, %c0_10] : memref<256x384xf32, #tpu.memory_space<vmem>>, vector<256x384xf32>
    %19 = arith.mulf %18, %17 : vector<256x384xf32>
    %c0_11 = arith.constant 0 : index
    %c0_12 = arith.constant 0 : index
    %20 = vector.load %arg9[%c0_11, %c0_12] : memref<256x128xf32, #tpu.memory_space<vmem>>, vector<256x128xf32>
    %21 = vector.extract_strided_slice %19 {offsets = [0, 0], sizes = [256, 128], strides = [1, 1]} : vector<256x384xf32> to vector<256x128xf32>
    %22 = arith.addf %20, %21 : vector<256x128xf32>
    %23 = vector.extract_strided_slice %19 {offsets = [0, 128], sizes = [256, 128], strides = [1, 1]} : vector<256x384xf32> to vector<256x128xf32>
    %24 = arith.addf %22, %23 : vector<256x128xf32>
    %25 = vector.extract_strided_slice %19 {offsets = [0, 256], sizes = [256, 128], strides = [1, 1]} : vector<256x384xf32> to vector<256x128xf32>
    %26 = arith.addf %24, %25 : vector<256x128xf32>
    %c0_13 = arith.constant 0 : index
    %c0_14 = arith.constant 0 : index
    %27 = vector.load %arg9[%c0_13, %c0_14] : memref<256x128xf32, #tpu.memory_space<vmem>>, vector<256x128xf32>
    tpu.vector_store %arg9[%c0_13, %c0_14], %26 {strides = array<i32>} : memref<256x128xf32, #tpu.memory_space<vmem>>, vector<256x128xf32>,
    %c0_i32_15 = arith.constant 0 : i32
    %28 = arith.cmpi eq, %arg1, %c0_i32_15 : i32
    %29 = arith.extui %28 : i1 to i32
    %c0_i32_16 = arith.constant 0 : i32
    %30 = arith.cmpi ne, %29, %c0_i32_16 : i32
    scf.if %30 {
      %c0_17 = arith.constant 0 : index
      %c0_18 = arith.constant 0 : index
      %31 = vector.load %arg9[%c0_17, %c0_18] : memref<256x128xf32, #tpu.memory_space<vmem>>, vector<256x128xf32>
      %cst_19 = arith.constant dense<0.000000e+00> : vector<256xf32>
      %32 = vector.multi_reduction <add>, %31, %cst_19 [1] : vector<256x128xf32> to vector<256xf32>
      %33 = vector.shape_cast %32 : vector<256xf32> to vector<256x1xf32>
      %c0_20 = arith.constant 0 : index
      %c0_21 = arith.constant 0 : index
      %34 = vector.load %arg8[%c0_20, %c0_21] : memref<256x1xf32, #tpu.memory_space<vmem>>, vector<256x1xf32>
      tpu.vector_store %arg8[%c0_20, %c0_21], %33 {strides = array<i32>} : memref<256x1xf32, #tpu.memory_space<vmem>>, vector<256x1xf32>,
    } else {
    }
    return
  }
  func.func @transform_0(%arg0: i32, %arg1: i32) -> (i32, i32) {
    %c0_i32 = arith.constant 0 : i32
    %c0_i32_0 = arith.constant 0 : i32
    return %arg0, %c0_i32 : i32, i32
  }
  func.func @transform_1(%arg0: i32, %arg1: i32) -> (i32, i32) {
    %c0_i32 = arith.constant 0 : i32
    %c0_i32_0 = arith.constant 0 : i32
    %c0_i32_1 = arith.constant 0 : i32
    return %c0_i32, %c0_i32_0 : i32, i32
  }
  func.func @transform_2(%arg0: i32, %arg1: i32) -> (i32, i32) {
    %c0_i32 = arith.constant 0 : i32
    %c0_i32_0 = arith.constant 0 : i32
    return %arg0, %c0_i32 : i32, i32
  }
  func.func @transform_3(%arg0: i32, %arg1: i32) -> (i32, i32) {
    %c0_i32 = arith.constant 0 : i32
    %c0_i32_0 = arith.constant 0 : i32
    return %c0_i32, %arg1 : i32, i32
  }
  func.func @transform_4(%arg0: i32, %arg1: i32) -> (i32, i32) {
    %c0_i32 = arith.constant 0 : i32
    return %arg0, %arg1 : i32, i32
  }
  func.func @transform_5(%arg0: i32, %arg1: i32) -> (i32, i32) {
    %c0_i32 = arith.constant 0 : i32
    return %arg0, %arg1 : i32, i32
  }
  func.func @transform_6(%arg0: i32, %arg1: i32) -> (i32, i32) {
    %c0_i32 = arith.constant 0 : i32
    %c0_i32_0 = arith.constant 0 : i32
    return %arg0, %c0_i32 : i32, i32
  }
}

module attributes {stable_mosaic.version = 11 : i64} {
  func.func @_mf_weighted_delta_kernel(%arg0: i32, %arg1: i32, %arg2: memref<256x128xf32, #tpu.memory_space<vmem>>, %arg3: memref<384x128xf32, #tpu.memory_space<vmem>>, %arg4: memref<256x1xf32, #tpu.memory_space<vmem>>, %arg5: memref<1x384xf32, #tpu.memory_space<vmem>>, %arg6: memref<256x384xf32, #tpu.memory_space<vmem>>, %arg7: memref<256x384xf32, #tpu.memory_space<vmem>>, %arg8: memref<256x1xf32, #tpu.memory_space<vmem>>, %arg9: memref<256x128xf32, #tpu.memory_space<vmem>>) attributes {dimension_semantics = [#tpu.dimension_semantics<parallel>, #tpu.dimension_semantics<arbitrary>], iteration_bounds = array<i64: 2, 1>, scalar_prefetch = 0 : i64, scratch_operands = 1 : i64, tpu.core_type = #tpu.core_type<tc>, window_params = [{transform_indices = @transform_0, window_bounds = array<i64: 256, 128>}, {pipeline_mode = #tpu.pipeline_mode<synchronous>, transform_indices = @transform_1, window_bounds = array<i64: 384, 128>}, {transform_indices = @transform_2, window_bounds = array<i64: 256, 1>}, {transform_indices = @transform_3, window_bounds = array<i64: 1, 384>}, {transform_indices = @transform_4, window_bounds = array<i64: 256, 384>}, {transform_indices = @transform_5, window_bounds = array<i64: 256, 384>}, {transform_indices = @transform_6, window_bounds = array<i64: 256, 1>}]} {
    %c0_i32 = arith.constant 0 : i32
    %0 = arith.cmpi eq, %arg1, %c0_i32 : i32
    %1 = arith.extui %0 : i1 to i32
    %c0_i32_0 = arith.constant 0 : i32
    %2 = arith.cmpi ne, %1, %c0_i32_0 : i32
    scf.if %2 {
      %cst_17 = arith.constant 0.000000e+00 : f32
      %31 = vector.broadcast %cst_17 : f32 to vector<256x128xf32>
      %c0_18 = arith.constant 0 : index
      %c0_19 = arith.constant 0 : index
      %32 = vector.load %arg9[%c0_18, %c0_19] : memref<256x128xf32, #tpu.memory_space<vmem>>, vector<256x128xf32>
      tpu.vector_store %arg9[%c0_18, %c0_19], %31 {strides = array<i32>} : memref<256x128xf32, #tpu.memory_space<vmem>>, vector<256x128xf32>,
    } else {
    }
    %c384_i32 = arith.constant 384 : i32
    %3 = arith.muli %arg1, %c384_i32 : i32
    %4 = tpu.assume_multiple %3, 128 : i32
    %5 = arith.index_cast %4 : i32 to index
    %c0 = arith.constant 0 : index
    %6 = vector.load %arg3[%5, %c0] : memref<384x128xf32, #tpu.memory_space<vmem>>, vector<384x128xf32>
    %c0_1 = arith.constant 0 : index
    %c0_2 = arith.constant 0 : index
    %7 = vector.load %arg2[%c0_1, %c0_2] : memref<256x128xf32, #tpu.memory_space<vmem>>, vector<256x128xf32>
    %cst = arith.constant dense<0.000000e+00> : vector<256x384xf32>
    %8 = tpu.matmul %7, %6, %cst {dimension_numbers = #tpu.dot_dimension_numbers<[1], [1], [0], [0], [0, 0, 1, 0], [], []>} : vector<256x128xf32>, vector<384x128xf32>, vector<256x384xf32> -> vector<256x384xf32>
    %c0_3 = arith.constant 0 : index
    %c0_4 = arith.constant 0 : index
    %9 = vector.load %arg4[%c0_3, %c0_4] : memref<256x1xf32, #tpu.memory_space<vmem>>, vector<256x1xf32>
    %10 = vector.broadcast %9 : vector<256x1xf32> to vector<256x384xf32>
    %11 = arith.addf %8, %10 : vector<256x384xf32>
    %c0_5 = arith.constant 0 : index
    %c0_6 = arith.constant 0 : index
    %12 = vector.load %arg5[%c0_5, %c0_6] : memref<1x384xf32, #tpu.memory_space<vmem>>, vector<1x384xf32>
    %13 = vector.broadcast %12 : vector<1x384xf32> to vector<256x384xf32>
    %14 = arith.addf %11, %13 : vector<256x384xf32>
    %c0_7 = arith.constant 0 : index
    %c0_8 = arith.constant 0 : index
    %15 = vector.load %arg6[%c0_7, %c0_8] : memref<256x384xf32, #tpu.memory_space<vmem>>, vector<256x384xf32>
    %16 = arith.subf %15, %14 : vector<256x384xf32>
    %17 = arith.mulf %16, %16 : vector<256x384xf32>
    %c0_9 = arith.constant 0 : index
    %c0_10 = arith.constant 0 : index
    %18 = vector.load %arg7[%c0_9, %c0_10] : memref<256x384xf32, #tpu.memory_space<vmem>>, vector<256x384xf32>
    %19 = arith.mulf %18, %17 : vector<256x384xf32>
    %c0_11 = arith.constant 0 : index
    %c0_12 = arith.constant 0 : index
    %20 = vector.load %arg9[%c0_11, %c0_12] : memref<256x128xf32, #tpu.memory_space<vmem>>, vector<256x128xf32>
    %21 = vector.extract_strided_slice %19 {offsets = [0, 0], sizes = [256, 128], strides = [1, 1]} : vector<256x384xf32> to vector<256x128xf32>
    %22 = arith.addf %20, %21 : vector<256x128xf32>
    %23 = vector.extract_strided_slice %19 {offsets = [0, 128], sizes = [256, 128], strides = [1, 1]} : vector<256x384xf32> to vector<256x128xf32>
    %24 = arith.addf %22, %23 : vector<256x128xf32>
    %25 = vector.extract_strided_slice %19 {offsets = [0, 256], sizes = [256, 128], strides = [1, 1]} : vector<256x384xf32> to vector<256x128xf32>
    %26 = arith.addf %24, %25 : vector<256x128xf32>
    %c0_13 = arith.constant 0 : index
    %c0_14 = arith.constant 0 : index
    %27 = vector.load %arg9[%c0_13, %c0_14] : memref<256x128xf32, #tpu.memory_space<vmem>>, vector<256x128xf32>
    tpu.vector_store %arg9[%c0_13, %c0_14], %26 {strides = array<i32>} : memref<256x128xf32, #tpu.memory_space<vmem>>, vector<256x128xf32>,
    %c0_i32_15 = arith.constant 0 : i32
    %28 = arith.cmpi eq, %arg1, %c0_i32_15 : i32
    %29 = arith.extui %28 : i1 to i32
    %c0_i32_16 = arith.constant 0 : i32
    %30 = arith.cmpi ne, %29, %c0_i32_16 : i32
    scf.if %30 {
      %c0_17 = arith.constant 0 : index
      %c0_18 = arith.constant 0 : index
      %31 = vector.load %arg9[%c0_17, %c0_18] : memref<256x128xf32, #tpu.memory_space<vmem>>, vector<256x128xf32>
      %cst_19 = arith.constant dense<0.000000e+00> : vector<256xf32>
      %32 = vector.multi_reduction <add>, %31, %cst_19 [1] : vector<256x128xf32> to vector<256xf32>
      %33 = vector.shape_cast %32 : vector<256xf32> to vector<256x1xf32>
      %c0_20 = arith.constant 0 : index
      %c0_21 = arith.constant 0 : index
      %34 = vector.load %arg8[%c0_20, %c0_21] : memref<256x1xf32, #tpu.memory_space<vmem>>, vector<256x1xf32>
      tpu.vector_store %arg8[%c0_20, %c0_21], %33 {strides = array<i32>} : memref<256x1xf32, #tpu.memory_space<vmem>>, vector<256x1xf32>,
    } else {
    }
    return
  }
  func.func @transform_0(%arg0: i32, %arg1: i32) -> (i32, i32) {
    %c0_i32 = arith.constant 0 : i32
    %c0_i32_0 = arith.constant 0 : i32
    return %arg0, %c0_i32 : i32, i32
  }
  func.func @transform_1(%arg0: i32, %arg1: i32) -> (i32, i32) {
    %c0_i32 = arith.constant 0 : i32
    %c0_i32_0 = arith.constant 0 : i32
    %c0_i32_1 = arith.constant 0 : i32
    return %c0_i32, %c0_i32_0 : i32, i32
  }
  func.func @transform_2(%arg0: i32, %arg1: i32) -> (i32, i32) {
    %c0_i32 = arith.constant 0 : i32
    %c0_i32_0 = arith.constant 0 : i32
    return %arg0, %c0_i32 : i32, i32
  }
  func.func @transform_3(%arg0: i32, %arg1: i32) -> (i32, i32) {
    %c0_i32 = arith.constant 0 : i32
    %c0_i32_0 = arith.constant 0 : i32
    return %c0_i32, %arg1 : i32, i32
  }
  func.func @transform_4(%arg0: i32, %arg1: i32) -> (i32, i32) {
    %c0_i32 = arith.constant 0 : i32
    return %arg0, %arg1 : i32, i32
  }
  func.func @transform_5(%arg0: i32, %arg1: i32) -> (i32, i32) {
    %c0_i32 = arith.constant 0 : i32
    return %arg0, %arg1 : i32, i32
  }
  func.func @transform_6(%arg0: i32, %arg1: i32) -> (i32, i32) {
    %c0_i32 = arith.constant 0 : i32
    %c0_i32_0 = arith.constant 0 : i32
    return %arg0, %c0_i32 : i32, i32
  }
}

</mosaic_0001>

<bundles_post_ra>
// kernel: tpu_custom_call.1
= control target key start
LH: loop header
LB: loop body
LE: loop exit
PB: predicated region body
PF: predicated region fallthrough
CT: control target
= control target key end

     0   :  { %s4322_s0 = inlined_call_operand.hbm [shape: f32[512,128], index: 0, kind: input, shape index: {}]   ;;  %s4323_s1 = inlined_call_operand.hbm [shape: f32[384,128], index: 1, kind: input, shape index: {}]   ;;  %s4324_s2 = inlined_call_operand.hbm [shape: f32[512,1], index: 2, kind: input, shape index: {}]   ;;  %s4325_s3 = inlined_call_operand.hbm [shape: f32[1,384], index: 3, kind: input, shape index: {}]   ;;  %s4326_s4 = inlined_call_operand.hbm [shape: f32[512,384], index: 4, kind: input, shape index: {}]   ;;  %s4327_s5 = inlined_call_operand.hbm [shape: f32[512,384], index: 5, kind: input, shape index: {}]   ;;  %s4328_s6 = inlined_call_operand.hbm [shape: f32[512,1], index: 6, kind: output, shape index: {}]  }
   0x1   :  { %4364 = sst [smem:[#allocation39_spill]] %s4322_s0 }
   0x2   :  { %4365 = sst [smem:[#allocation40_spill]] %s4323_s1 }
   0x3   :  { %4366 = sst [smem:[#allocation41_spill]] %s4326_s4 }
   0x4   :  { %4367 = sst [smem:[#allocation42_spill]] %s4328_s6 }
   0x5   :  { %11 = vsyncpa [#allocation4], 0 }
   0x6   :  { %13 = vsyncpa [#allocation4 + $0x1], 0 }
   0x7   :  { %14 = vsyncpa [#allocation7], 0 }
   0x8   :  { %15 = vsyncpa [#allocation11], 0 }
   0x9   :  { %17 = vsyncpa [#allocation11 + $0x1], 0 }
   0xa   :  { %18 = vsyncpa [#allocation5], 0 }
   0xb   :  { %20 = vsyncpa [#allocation5 + $0x1], 0  ;;  %s3070_s21 = smov 0   ;;  %s3072_s22 = smov 0  }
   0xc   :  { %s3074_s23 = smov 0   ;;  %s3076_s24 = smov 0  }
   0xd   :  { %s3078_s25 = smov 0   ;;  %s3080_s26 = smov 0  }
   0xe LB: > { %4368 = sst [smem:[#allocation20_spill]] %s2999_s21  ;;  %s3101_s27 = sadd.s32 4294967295, %s3019_s26   ;;  %s3019_s26 = sphi %s3080_s26, %s26_s26   ;;  %s3015_s25 = sphi %s3078_s25, %s4441_s25   ;;  %s3011_s24 = sphi %s3076_s24, %s4440_s24   ;;  %s3007_s23 = sphi %s3074_s23, %s4438_s23   ;;  %s3003_s22 = sphi %s3072_s22, %s4437_s22   ;;  %s2999_s21 = sphi %s3070_s21, %s4436_s21  }
   0xf   : > { %4369 = sst [smem:[#allocation21_spill]] %s3003_s22  ;;  %s2314_s28 = sadd.s32 4294967294, %s3019_s26  }
  0x10   : > { %4370 = sst [smem:[#allocation22_spill]] %s3007_s23  ;;  %p58_p0 = scmp.ne.s32.totalorder %s3003_s22, %s2999_s21 }
  0x11   : > { %4371 = sst [smem:[#allocation23_spill]] %s3011_s24  ;;  %p4329_p1 = scmp.eq.s32.totalorder %s3101_s27, 0 }
  0x12   : > { %4372 = sst [smem:[#allocation24_spill]] %s3019_s26  ;;  %p217_p3 = scmp.eq.s32.totalorder %s2314_s28, 1 }
  0x13   : > { %p3110_p4 = por %p4329_p1, %p58_p0  ;;  %p2315_p5 = scmp.ge.s32.totalorder %s3019_s26, 1 }
  0x14   : > { %p3115_p6 = por %p217_p3, %p58_p0  ;;  %p224_p7 = scmp.lt.s32.totalorder %s3019_s26, 3 }
  0x15   : > { %s4373_s29 = scalar_select %p3110_p4, 1, 0 }
  0x16   : > { %s4375_s30 = scalar_select %p3115_p6, 1, 0 }
  0x17   : > { %4374 = sst [smem:[#allocation25_spill]] %s4373_s29  ;;  %p3120_p8 = pnand %p2315_p5, %p224_p7 }
  0x18   : > { %4376 = sst [smem:[#allocation26_spill]] %s4375_s30  ;;  %s3021_s8 = smov [#allocation6]  }
  0x19   : > { %s4377_s7 = scalar_select %p3120_p8, 1, 0 }
  0x1a   : > { %s236_s9 = sshll.u32 %s3021_s8, 4  ;;  %p2656_p9 = pneg %p3120_p8  ;;  %s237_s9 = int_to_ptr.vmem [resolvable:$true] %s236_s9 }
  0x1b   : > { %s38_s11 = sadd.s32 1, %s3015_s25  ;;  %s4379_s1 = sld [smem:[#allocation40_spill]] }
  0x1c   : > { %p3129_p11 = pnand %p2656_p9, %p4329_p1 }
  0x1e   : > { %s4378_s10 = scalar_select %p3129_p11, 1, 0 }
  0x1f   : > { %p4339_p13 = pneg %p3129_p11 }
  0x21   : > { %s2745_s14 = scalar_lea.hbm %s4379_s1, 6144 }
  0x22   : > { %p2746_p12 = scmp.ne.s32.totalorder %s4379_s1, %s2745_s14  ;;  %p2752_p5 = scmp.lt.u32.totalorder %s2745_s14, %s4379_s1 }
  0x24   : > { %p2748_p0 = pnand %p4339_p13, %p2746_p12 }
  0x26   : > { %p2749_p3 = pneg %p2748_p0 }
  0x28   : > { %p2754_p7 = pnand %p2752_p5, %p2749_p3 }
  0x2a   : > { %2757 = shalt.err (!%p2754_p7)
}
  0x2b   : > { %s2758_s19 = scalar_lea.vmem %s237_s9, 6144  ;;  %p2766_p2 = scmp.lt.s32.totalorder %s237_s9, %s237_s9 }
  0x2c   : > { %p2759_p9 = scmp.ne.s32.totalorder %s237_s9, %s2758_s19  ;;  %p2767_p6 = scmp.lt.s32.totalorder %s2758_s19, %s2758_s19 }
  0x2e   : > { %p2761_p10 = pnand %p2759_p9, %p4339_p13  ;;  %p2768_p4 = por %p2767_p6, %p2766_p2 }
  0x30   : > { %p2762_p1 = pneg %p2761_p10 }
  0x32   : > { %p2769_p8 = pnand %p2768_p4, %p2762_p1 }
  0x34   : > { %2772 = shalt.err (!%p2769_p8)
}
  0x35   : > { %s4332_s20 = smov 128   ;;  %s4334_s28 = smov 8  }
  0x36   : > { %2659 = dma.hbm_to_vmem [thread:$0]  (!%p3129_p11), %s4379_s1, 6144, %s237_s9, [#allocation7], %s4332_s20, %s4332_s20, %s4334_s28  }
  0x37   : > { %p40_p1 = scmp.ge.s32.totalorder %s38_s11, 2  ;;  %s45_s13 = sadd.s32 1, %s3007_s23 }
  0x38   : > { %p52_p2 = scmp.ne.s32.totalorder %s3007_s23, %s3003_s22  ;;  %p53_p4 = scmp.eq.s32.totalorder %s3019_s26, 0 }
  0x39   : > { %s4443_s11 = smov (%p40_p1, %s38_s11), 0  ;;  %p4382_p8 = scmp.eq.s32.totalorder %s3101_s27, 1 }
  0x3a   : > { %4380 = sst [smem:[#allocation27_spill]] %s4443_s11  ;;  %p3165_p6 = por %p53_p4, %p52_p2 }
  0x3b   : > { %p3171_p10 = por %p4382_p8, %p52_p2  ;;  %s42_s16 = ssub.s32 %s3015_s25, %s4443_s11 }
  0x3c   : > { %p2682_p12 = scmp.lt.s32.totalorder %s3019_s26, 2  ;;  %p43_p0 = scmp.eq.s32.totalorder %s42_s16, 0 }
  0x3d   : > { %s4383_s15 = scalar_select %p3171_p10, 1, 0 }
  0x3e   : > { %s4336_s17 = sand.u32 1, %s3007_s23   ;;  %s2342_s8 = sshll.u32 %s3015_s25, 12 }
  0x3f   : > { %4384 = sst [smem:[#allocation28_spill]] %s4383_s15  ;;  %s3185_s19 = sshll.u32 %s4336_s17, 8 }
  0x40   : > { %s3181_s18 = scalar_select %p43_p0, %s3007_s23, %s45_s13  }
  0x41   : > { %s4386_s0 = sld [smem:[#allocation39_spill]]  ;;  %s268_s1 = scalar_lea.vmem [#allocation3], %s3185_s19 }
  0x42   : > { %4385 = sst [smem:[#allocation29_spill]] %s3181_s18  ;;  %s275_s16 = sshll.u32 %s268_s1, 4  ;;  %s3200_s16 = int_to_ptr.vmem [resolvable:$true] %s275_s16 }
  0x43   : > { %p3196_p3 = pnand %p2682_p12, %p3165_p6  ;;  %s3205_s20 = scalar_lea.hbm %s4324_s2, %s2342_s8 }
  0x44   : > { %s4388_s12 = sand.u32 1, %s3019_s26  }
  0x45   : > { %s4387_s13 = scalar_select %p3196_p3, 1, 0 }
  0x46   : > { %s3209_s11 = scalar_lea.sflag [#allocation4], %s4388_s12  ;;  %p3215_p7 = pneg %p3196_p3 }
  0x47   : > { %s3191_s28 = scalar_lea.hbm %s4386_s0, %s2342_s8  ;;  %s2778_s9 = scalar_lea.hbm %s4386_s0, 8192 }
  0x48   : > { %s2773_s18 = scalar_lea.hbm %s3191_s28, 4096  ;;  %p2779_p2 = scmp.lt.u32.totalorder %s3191_s28, %s4386_s0 }
  0x49   : > { %p2774_p5 = scmp.ne.s32.totalorder %s3191_s28, %s2773_s18  ;;  %p2780_p4 = scmp.lt.u32.totalorder %s2778_s9, %s2773_s18 }
  0x4a   : > { %s4389_s1 = scalar_select %p3215_p7, 1, 0 }
  0x4b   : > { %p2776_p9 = pnand %p3215_p7, %p2774_p5  ;;  %p2781_p6 = por %p2780_p4, %p2779_p2 }
  0x4c   : > { %p2782_p8 = scmp.lt.u32.totalorder %s2773_s18, %s3191_s28 }
  0x4d   : > { %p2777_p1 = pneg %p2776_p9 }
  0x4e   : > { %p2783_p12 = por %p2782_p8, %p2781_p6 }
  0x50   : > { %p2784_p0 = pnand %p2783_p12, %p2777_p1 }
  0x52   : > { %2787 = shalt.err (!%p2784_p0)
}
  0x53   : > { %s2788_s12 = scalar_lea.vmem %s3200_s16, 4096  ;;  %s3024_s30 = smov [#allocation3]  }
  0x54   : > { %p2789_p5 = scmp.ne.s32.totalorder %s3200_s16, %s2788_s12  ;;  %s2793_s14 = sshll.u32 %s3024_s30, 4  ;;  %s2794_s14 = int_to_ptr.vmem [resolvable:$false] %s2793_s14 }
  0x55   : > { %s2795_s17 = scalar_lea.vmem %s2794_s14, 8192  ;;  %p2796_p10 = scmp.lt.s32.totalorder %s3200_s16, %s2794_s14 }
  0x56   : > { %p2791_p9 = pnand %p2789_p5, %p3215_p7  ;;  %p2797_p11 = scmp.lt.s32.totalorder %s2795_s17, %s2788_s12 }
  0x58   : > { %p2792_p13 = pneg %p2791_p9  ;;  %p2798_p2 = por %p2797_p11, %p2796_p10 }
  0x5a   : > { %p2799_p4 = pnand %p2798_p2, %p2792_p13 }
  0x5c   : > { %2802 = shalt.err (!%p2799_p4)
}
  0x5d   : > { %s4390_s18 = smov 8   ;;  %s4391_s9 = smov 128  }
  0x5e   : > { %2666 = dma.hbm_to_vmem [thread:$0]  (!%p3196_p3), %s3191_s28, 4096, %s3200_s16, %s3209_s11, %s4391_s9, %s4391_s9, %s4390_s18  }
  0x5f   : > { %s289_s8 = scalar_lea.vmem [#allocation8], %s3185_s19  ;;  %s4392_s30 = sand.u32 1, %s3007_s23  }
  0x60   : > { %s296_s12 = sshll.u32 %s289_s8, 4  ;;  %s3247_s14 = smul.u32 768, %s4392_s30  ;;  %s3243_s12 = int_to_ptr.vmem [resolvable:$true] %s296_s12 }
  0x61   : > { %s4346_s17 = smul.u32 12288, %s3015_s25  ;;  %s4393_s4 = sld [smem:[#allocation41_spill]] }
  0x62   : > { %s310_s28 = scalar_lea.vmem [#allocation10], %s3247_s14  ;;  %s4394_s16 = sand.u32 1, %s3019_s26  }
  0x63   : > { %s320_s19 = sshll.u32 %s310_s28, 4  ;;  %s3262_s8 = scalar_lea.sflag [#allocation11], %s4394_s16  ;;  %s3258_s19 = int_to_ptr.vmem [resolvable:$true] %s320_s19 }
  0x67   : > { %s3255_s6 = scalar_lea.hbm %s4393_s4, %s4346_s17  ;;  %s2808_s21 = scalar_lea.hbm %s4393_s4, 24576 }
  0x68   : > { %s2803_s30 = scalar_lea.hbm %s3255_s6, 12288  ;;  %p2809_p1 = scmp.lt.u32.totalorder %s3255_s6, %s4393_s4 }
  0x69   : > { %p2804_p11 = scmp.ne.s32.totalorder %s3255_s6, %s2803_s30  ;;  %p2810_p6 = scmp.lt.u32.totalorder %s2808_s21, %s2803_s30 }
  0x6a   : > { %p2812_p12 = scmp.lt.u32.totalorder %s2803_s30, %s3255_s6 }
  0x6b   : > { %p2806_p13 = pnand %p2804_p11, %p3215_p7  ;;  %p2811_p8 = por %p2810_p6, %p2809_p1 }
  0x6d   : > { %p2807_p10 = pneg %p2806_p13  ;;  %p2813_p0 = por %p2812_p12, %p2811_p8 }
  0x6f   : > { %p2814_p5 = pnand %p2813_p0, %p2807_p10 }
  0x71   : > { %2817 = shalt.err (!%p2814_p5)
}
  0x72   : > { %s2818_s28 = scalar_lea.vmem %s3258_s19, 12288  ;;  %s3025_s23 = smov [#allocation10]  }
  0x73   : > { %p2819_p9 = scmp.ne.s32.totalorder %s3258_s19, %s2818_s28  ;;  %s2823_s16 = sshll.u32 %s3025_s23, 4  ;;  %s2824_s16 = int_to_ptr.vmem [resolvable:$false] %s2823_s16 }
  0x74   : > { %s2825_s15 = scalar_lea.vmem %s2824_s16, 24576  ;;  %p2826_p11 = scmp.lt.s32.totalorder %s3258_s19, %s2824_s16 }
  0x75   : > { %p2821_p2 = pnand %p2819_p9, %p3215_p7  ;;  %p2827_p13 = scmp.lt.s32.totalorder %s2825_s15, %s2818_s28 }
  0x77   : > { %p2822_p4 = pneg %p2821_p2  ;;  %p2828_p1 = por %p2827_p13, %p2826_p11 }
  0x79   : > { %p2829_p6 = pnand %p2828_p1, %p2822_p4 }
  0x7b   : > { %2832 = shalt.err (!%p2829_p6)
}
  0x7c   : > { %s3026_s17 = smov 384   ;;  %s3027_s30 = smov 24  }
  0x7d   : > { %2672 = dma.hbm_to_vmem [thread:$0]  (!%p3196_p3), %s3255_s6, 12288, %s3258_s19, %s3262_s8, %s3026_s17, %s3026_s17, %s3027_s30  }
  0x7e   : > { %s3028_s0 = smov [#allocation9]   ;;  %s4395_s28 = smul.u32 12288, %s3015_s25 }
  0x7f   : > { %s253_s21 = sshll.u32 %s3028_s0, 4  ;;  %s2833_s24 = scalar_lea.hbm %s4325_s3, 48  ;;  %s254_s21 = int_to_ptr.vmem [resolvable:$true] %s253_s21 }
  0x80   : > { %s3294_s15 = scalar_lea.hbm %s4327_s5, %s4395_s28  ;;  %p2834_p10 = scmp.ne.s32.totalorder %s4325_s3, %s2833_s24 }
  0x81   : > { %p4396_p8 = scmp.ne.s32.totalorder %s4378_s10, 0  ;;  %p2840_p9 = scmp.lt.u32.totalorder %s2833_s24, %s4325_s3 }
  0x83   : > { %p4397_p12 = pneg %p4396_p8 }
  0x85   : > { %p2836_p0 = pnand %p2834_p10, %p4397_p12 }
  0x87   : > { %p2837_p5 = pneg %p2836_p0 }
  0x89   : > { %p2842_p2 = pnand %p2840_p9, %p2837_p5 }
  0x8b   : > { %2845 = shalt.err (!%p2842_p2)
}
  0x8c   : > { %s2846_s0 = scalar_lea.vmem %s254_s21, 48  ;;  %p4398_p11 = pmov %p4397_p12 }
  0x8d   : > { %p2847_p4 = scmp.ne.s32.totalorder %s254_s21, %s2846_s0  ;;  %s2853_s4 = scalar_lea.vmem %s254_s21, 64 }
  0x8e   : > { %p2854_p6 = scmp.lt.s32.totalorder %s254_s21, %s254_s21  ;;  %p2855_p3 = scmp.lt.s32.totalorder %s2853_s4, %s2846_s0 }
  0x8f   : > { %p2849_p13 = pnand %p2847_p4, %p4398_p11 }
  0x90   : > { %p2856_p7 = por %p2855_p3, %p2854_p6 }
  0x91   : > { %p2850_p1 = pneg %p2849_p13 }
  0x93   : > { %p2857_p10 = pnand %p2856_p7, %p2850_p1 }
  0x95   : > { %2860 = shalt.err (!%p2857_p10)
}
  0x96   : > { %2662 = dma.hbm_to_vmem [thread:$0]  (!%p4396_p8), %s4325_s3, 48, %s254_s21, [#allocation7]  }
  0x97   : > { %s2861_s24 = scalar_lea.hbm %s3205_s20, 4096  ;;  %p4399_p0 = scmp.ne.s32.totalorder %s4389_s1, 0 }
  0x98   : > { %p2862_p12 = scmp.ne.s32.totalorder %s3205_s20, %s2861_s24  ;;  %s2866_s23 = scalar_lea.hbm %s4324_s2, 8192 }
  0x99   : > { %p2867_p3 = scmp.lt.u32.totalorder %s3205_s20, %s4324_s2  ;;  %p2868_p7 = scmp.lt.u32.totalorder %s2866_s23, %s2861_s24 }
  0x9a   : > { %p2864_p5 = pnand %p2862_p12, %p4399_p0  ;;  %p2870_p4 = scmp.lt.u32.totalorder %s2861_s24, %s3205_s20 }
  0x9b   : > { %p2869_p2 = por %p2868_p7, %p2867_p3 }
  0x9c   : > { %p2865_p9 = pneg %p2864_p5 }
  0x9d   : > { %p2871_p11 = por %p2870_p4, %p2869_p2 }
  0x9f   : > { %p2872_p13 = pnand %p2871_p11, %p2865_p9 }
  0xa1   : > { %2875 = shalt.err (!%p2872_p13)
}
  0xa2   : > { %s2876_s21 = scalar_lea.vmem %s3243_s12, 4096  ;;  %s3029_s6 = smov [#allocation8]  }
  0xa3   : > { %p2877_p8 = scmp.ne.s32.totalorder %s3243_s12, %s2876_s21  ;;  %s2881_s19 = sshll.u32 %s3029_s6, 4  ;;  %s2882_s19 = int_to_ptr.vmem [resolvable:$false] %s2881_s19 }
  0xa4   : > { %s2883_s0 = scalar_lea.vmem %s2882_s19, 8192  ;;  %p2884_p10 = scmp.lt.s32.totalorder %s3243_s12, %s2882_s19 }
  0xa5   : > { %p2879_p1 = pnand %p2877_p8, %p4399_p0  ;;  %p2885_p12 = scmp.lt.s32.totalorder %s2883_s0, %s2876_s21 }
  0xa7   : > { %p2880_p6 = pneg %p2879_p1  ;;  %p2886_p5 = por %p2885_p12, %p2884_p10 }
  0xa9   : > { %p2887_p3 = pnand %p2886_p5, %p2880_p6 }
  0xab   : > { %2890 = shalt.err (!%p2887_p3)
}
  0xac   : > { %p4400_p9 = scmp.ne.s32.totalorder %s4387_s13, 0  ;;  %s334_s4 = scalar_lea.vmem [#allocation12], %s3247_s14 }
  0xad   : > { %s344_s22 = sshll.u32 %s334_s4, 4  ;;  %s2891_s26 = scalar_lea.hbm %s3294_s15, 12288  ;;  %s3342_s22 = int_to_ptr.vmem [resolvable:$true] %s344_s22 }
  0xae   : > { %2669 = dma.hbm_to_vmem [thread:$0]  (!%p4400_p9), %s3205_s20, 4096, %s3243_s12, %s3209_s11, %s4391_s9, %s4391_s9, %s4390_s18  }
  0xaf   : > { %p2892_p7 = scmp.ne.s32.totalorder %s3294_s15, %s2891_s26  ;;  %s2896_s28 = scalar_lea.hbm %s4327_s5, 24576 }
  0xb0   : > { %p2897_p11 = scmp.lt.u32.totalorder %s3294_s15, %s4327_s5  ;;  %p2898_p13 = scmp.lt.u32.totalorder %s2896_s28, %s2891_s26 }
  0xb1   : > { %p2894_p2 = pnand %p2892_p7, %p4399_p0  ;;  %p2900_p1 = scmp.lt.u32.totalorder %s2891_s26, %s3294_s15 }
  0xb2   : > { %p2899_p8 = por %p2898_p13, %p2897_p11 }
  0xb3   : > { %p2895_p4 = pneg %p2894_p2 }
  0xb4   : > { %p2901_p6 = por %p2900_p1, %p2899_p8 }
  0xb6   : > { %p2902_p10 = pnand %p2901_p6, %p2895_p4 }
  0xb8   : > { %2905 = shalt.err (!%p2902_p10)
}
  0xb9   : > { %s2906_s11 = scalar_lea.vmem %s3342_s22, 12288  ;;  %s3030_s20 = smov [#allocation12]  }
  0xba   : > { %p2907_p12 = scmp.ne.s32.totalorder %s3342_s22, %s2906_s11  ;;  %s2911_s18 = sshll.u32 %s3030_s20, 4  ;;  %s2912_s18 = int_to_ptr.vmem [resolvable:$false] %s2911_s18 }
  0xbb   : > { %s2913_s9 = scalar_lea.vmem %s2912_s18, 24576  ;;  %p2914_p7 = scmp.lt.s32.totalorder %s3342_s22, %s2912_s18 }
  0xbc   : > { %p2909_p5 = pnand %p2907_p12, %p4399_p0  ;;  %p2915_p2 = scmp.lt.s32.totalorder %s2913_s9, %s2906_s11 }
  0xbe   : > { %p2910_p3 = pneg %p2909_p5  ;;  %p2916_p11 = por %p2915_p2, %p2914_p7 }
  0xc0   : > { %p2917_p13 = pnand %p2916_p11, %p2910_p3 }
  0xc2   : > { %2920 = shalt.err (!%p2917_p13)
}
  0xc3   : > { %2675 = dma.hbm_to_vmem [thread:$0]  (!%p4400_p9), %s3294_s15, 12288, %s3342_s22, %s3262_s8, %s3026_s17, %s3026_s17, %s3027_s30  }
  0xc4   : > { %p4401_p0 = scmp.ne.s32.totalorder %s4377_s7, 0 }
  0xc6   : > { %356 = sbr.rel (%p4401_p0) target bundleno = 809 (0x329), region = 44 }
  0xcd   : > { %s4402_s1 = sld [smem:[#allocation21_spill]]  ;;  %s4403_s12 = sld [smem:[#allocation25_spill]] }
  0xce   : > { %s358_s14 = sand.u32 1, %s3101_s27  }
  0xcf   : > { %s359_s13 = scalar_lea.sflag [#allocation4], %s358_s14 }
  0xd3   : > { %s3373_s10 = sand.u32 1, %s4402_s1   ;;  %p4404_p4 = scmp.ne.s32.totalorder %s4403_s12, 0 }
  0xd4   : > { %s3376_s21 = sshll.u32 %s3373_s10, 8 }
  0xd5   : > { %s3379_s6 = scalar_lea.vmem [#allocation3], %s3376_s21 }
  0xd6   : > { %2974 = dma.done.wait (%p4404_p4), %s359_s13, 4096  }
  0xd7   : > { %2976 = vsyncadd (%p4404_p4), %s359_s13, 4294963200  ;;  %p4405_p9 = scmp.eq.s32.totalorder %s3101_s27, 0 }
  0xd9   : > { %2978 = dma.done.wait (%p4405_p9), [#allocation7], 6144   ;;  %p4406_p8 = pmov %p4405_p9 }
  0xda   : > { %s3390_s7 = scalar_lea.vmem [#allocation8], %s3376_s21 }
  0xdb   : > { %2980 = vsyncadd (%p4406_p8), [#allocation7], 4294961152 }
  0xdc   : > { %2982 = dma.done.wait (%p4404_p4), %s359_s13, 4096  }
  0xdd   : > { %2984 = vsyncadd (%p4404_p4), %s359_s13, 4294963200  ;;  %p4407_p1 = pmov %p4406_p8 }
  0xdf   : > { %2986 = dma.done.wait (%p4407_p1), [#allocation7], 48   ;;  %p4408_p6 = pmov %p4407_p1 }
  0xe0   : > { %s2637_s8 = smul.u32 768, %s3373_s10  ;;  %s385_s17 = scalar_lea.sflag [#allocation11], %s358_s14 }
  0xe1   : > { %2988 = vsyncadd (%p4408_p6), [#allocation7], 4294967248 }
  0xe2   : > { %s3403_s30 = scalar_lea.vmem [#allocation10], %s2637_s8 }
  0xe3   : > { %2990 = dma.done.wait (%p4404_p4), %s385_s17, 24576  }
  0xe4   : > { %2992 = vsyncadd (%p4404_p4), %s385_s17, 4294942720  ;;  %v503_v0 = vld [vmem:[#allocation6 + $0x80] sm:$0xff]  ;;  %v504_v1 = vld [vmem:[#allocation6 + $0x88] sm:$0xff]  ;;  %v3031_v34 = vmov 0   ;;  %s3514_s27 = scalar_lea.vmem [#allocation12], %s2637_s8  ;;  %vm2093_vm0 = vcmask 7168  }
  0xe5   : > { %v519_v2 = vld [vmem:[#allocation6 + $0x100] sm:$0xff]  ;;  %v2569_v3 = vpack.c.bf16 %v504_v1, %v503_v0  ;;  %v520_v4 = vld [vmem:[#allocation6 + $0x108] sm:$0xff]  ;;  %v505_v9 = vld [vmem:[#allocation6 + $0x90] sm:$0xff]  ;;  %2743 = vset.pattern.permute.xlu0 %v3031_v34  ;;  %2744 = vset.pattern.permute.xlu1 %v3031_v34  ;;  %s4200_s15 = scalar_lea.vmem [#allocation13], %s3376_s21  ;;  %s4427_s19 = sld [smem:[#allocation23_spill]] }
  0xe6   : > { %v487_v5 = vld [vmem:[#allocation6] sm:$0xff]  ;;  %v488_v6 = vld [vmem:[#allocation6 + $0x8] sm:$0xff]  ;;  %v2601_v7 = vpack.c.bf16 %v520_v4, %v519_v2  ;;  %v506_v10 = vld [vmem:[#allocation6 + $0x98] sm:$0xff]  ;;  %s4428_s0 = sld [smem:[#allocation28_spill]]  ;;  %s2140_s22 = sshll.u32 %s4200_s15, 4  ;;  %s4271_s22 = int_to_ptr.vmem [resolvable:$true] %s2140_s22 }
  0xe7   : > { %v2571_v8 = vpack.c.bf16 %v488_v6, %v487_v5  ;;  %v521_v11 = vld [vmem:[#allocation6 + $0x110] sm:$0xff]  ;;  %2570 = vmatprep.subr.bf16.mxu0 %v2569_v3  ;;  %v2573_v12 = vpack.c.bf16 %v506_v10, %v505_v9  ;;  %v522_v13 = vld [vmem:[#allocation6 + $0x118] sm:$0xff]  ;;  %v507_v17 = vld [vmem:[#allocation6 + $0xa0] sm:$0xff]  ;;  %s4429_s29 = sld [smem:[#allocation42_spill]]  ;;  %s2127_s23 = scalar_lea.sflag [#allocation5], %s3373_s10 }
  0xe8   : > { %2602 = vmatprep.subr.bf16.mxu1 %v2601_v7  ;;  %v2605_v14 = vpack.c.bf16 %v522_v13, %v521_v11  ;;  %v489_v15 = vld [vmem:[#allocation6 + $0x10] sm:$0xff]  ;;  %v490_v16 = vld [vmem:[#allocation6 + $0x18] sm:$0xff]  ;;  %v508_v18 = vld [vmem:[#allocation6 + $0xa8] sm:$0xff]  ;;  %s2921_s16 = scalar_lea.vmem %s4271_s22, 4096  ;;  %s3032_s11 = smov [#allocation13]  }
  0xe9   : > { %2572 = vmatpush3.bf16.xpose.msra.mxu0 %v2571_v8  ;;  %2604 = vmatpush3.bf16.xpose.msra.mxu1 %v2601_v7  ;;  %v523_v19 = vld [vmem:[#allocation6 + $0x120] sm:$0xff]  ;;  %v524_v20 = vld [vmem:[#allocation6 + $0x128] sm:$0xff]  ;;  %v2575_v21 = vpack.c.bf16 %v490_v16, %v489_v15  ;;  %v2577_v22 = vpack.c.bf16 %v508_v18, %v507_v17  ;;  %v509_v26 = vld [vmem:[#allocation6 + $0xb0] sm:$0xff]  ;;  %p2922_p10 = scmp.ne.s32.totalorder %s4271_s22, %s2921_s16  ;;  %s2925_s20 = sshll.u32 %s3032_s11, 4  ;;  %s2926_s20 = int_to_ptr.vmem [resolvable:$false] %s2925_s20 }
  0xea   : > { %2574 = vmatprep.subr.bf16.mxu0 %v2573_v12  ;;  %2606 = vmatprep.subr.bf16.mxu1 %v2605_v14  ;;  %v2609_v23 = vpack.c.bf16 %v524_v20, %v523_v19  ;;  %v491_v24 = vld [vmem:[#allocation6 + $0x20] sm:$0xff]  ;;  %v492_v25 = vld [vmem:[#allocation6 + $0x28] sm:$0xff]  ;;  %v510_v27 = vld [vmem:[#allocation6 + $0xb8] sm:$0xff]  ;;  %s2927_s18 = scalar_lea.vmem %s2926_s20, 8192  ;;  %p2928_p7 = scmp.lt.s32.totalorder %s4271_s22, %s2926_s20 }
  0xeb   : > { %v525_v28 = vld [vmem:[#allocation6 + $0x130] sm:$0xff]  ;;  %v526_v29 = vld [vmem:[#allocation6 + $0x138] sm:$0xff]  ;;  %v2579_v30 = vpack.c.bf16 %v492_v25, %v491_v24  ;;  %v3410_v31 = vld [vmem:[%s3379_s6] sm:$0xff]  ;;  %v2581_v32 = vpack.c.bf16 %v510_v27, %v509_v26  ;;  %s2344_s4 = sshll.u32 %s4427_s19, 12  ;;  %p2929_p2 = scmp.lt.s32.totalorder %s2927_s18, %s2921_s16 }
  0xec   : > { %2377 = vmatprep.mubr.f32.mxu0 %v3410_v31  ;;  %2521 = vmatprep.mubr.f32.mxu1 %v3410_v31  ;;  %v2613_v33 = vpack.c.bf16 %v526_v29, %v525_v28  ;;  %v493_v35 = vld [vmem:[#allocation6 + $0x30] sm:$0xff]  ;;  %v494_v36 = vld [vmem:[#allocation6 + $0x38] sm:$0xff]  ;;  %v511_v37 = vld [vmem:[#allocation6 + $0xc0] sm:$0xff]  ;;  %p4430_p12 = scmp.ne.s32.totalorder %s4428_s0, 0 }
  0xed   : > { %v512_v38 = vld [vmem:[#allocation6 + $0xc8] sm:$0xff]  ;;  %v527_v39 = vld [vmem:[#allocation6 + $0x140] sm:$0xff]  ;;  %v2583_v41 = vpack.c.bf16 %v494_v36, %v493_v35  ;;  %v569_v45 = vld [vmem:[%s3390_s7 + $0x10] sm:$0xff]  ;;  %s4269_s28 = scalar_lea.hbm %s4429_s29, %s2344_s4  ;;  %p2930_p11 = por %p2929_p2, %p2928_p7 }
  0xee   : > { %v528_v40 = vld [vmem:[#allocation6 + $0x148] sm:$0xff]  ;;  %v2585_v42 = vpack.c.bf16 %v512_v38, %v511_v37  ;;  %v567_v44 = vld [vmem:[%s3390_s7] sm:$0xff]  ;;  %611 = vperm.xlu1 %2744, %v569_v45   ;;  %v513_v49 = vld [vmem:[#allocation6 + $0xd0] sm:$0xff]  ;;  %p2923_p5 = pnand %p2922_p10, %p4430_p12 }
  0xef   : > { %v2617_v43 = vpack.c.bf16 %v528_v40, %v527_v39  ;;  %601 = vperm.xlu0 %2743, %v567_v44   ;;  %v568_v46 = vld [vmem:[%s3390_s7 + $0x8] sm:$0xff]  ;;  %v495_v47 = vld [vmem:[#allocation6 + $0x40] sm:$0xff]  ;;  %v514_v50 = vld [vmem:[#allocation6 + $0xd8] sm:$0xff] }
  0xf0   : > { %v496_v48 = vld [vmem:[#allocation6 + $0x48] sm:$0xff]  ;;  %v529_v51 = vld [vmem:[#allocation6 + $0x150] sm:$0xff]  ;;  %v530_v52 = vld [vmem:[#allocation6 + $0x158] sm:$0xff]  ;;  %v2589_v56 = vpack.c.bf16 %v514_v50, %v513_v49  ;;  %p2924_p3 = pneg %p2923_p5 }
  0xf1   : > { %2576 = vmatpush3.bf16.xpose.msra.mxu0 %v2575_v21  ;;  %2608 = vmatpush3.bf16.xpose.msra.mxu1 %v2605_v14  ;;  %v570_v53 = vld [vmem:[%s3390_s7 + $0x18] sm:$0xff]  ;;  %v2587_v54 = vpack.c.bf16 %v496_v48, %v495_v47  ;;  %v571_v55 = vld [vmem:[%s3390_s7 + $0x20] sm:$0xff]  ;;  %v2621_v57 = vpack.c.bf16 %v530_v52, %v529_v51  ;;  %v572_v58 = vld [vmem:[%s3390_s7 + $0x28] sm:$0xff] }
  0xf2   : > { %2578 = vmatprep.subr.bf16.mxu0 %v2577_v22  ;;  %2610 = vmatprep.subr.bf16.mxu1 %v2609_v23  ;;  %v573_v59 = vld [vmem:[%s3390_s7 + $0x30] sm:$0xff]  ;;  %v498_v61 = vld [vmem:[#allocation6 + $0x58] sm:$0xff]  ;;  %v515_v62 = vld [vmem:[#allocation6 + $0xe0] sm:$0xff]  ;;  %p2931_p13 = pnand %p2930_p11, %p2924_p3 }
  0xf3   : > { %606 = vperm.xlu0 %2743, %v568_v46   ;;  %616 = vperm.xlu1 %2744, %v570_v53   ;;  %v497_v60 = vld [vmem:[#allocation6 + $0x50] sm:$0xff]  ;;  %v516_v63 = vld [vmem:[#allocation6 + $0xe8] sm:$0xff]  ;;  %v531_v0 = vld [vmem:[#allocation6 + $0x160] sm:$0xff] }
  0xf4   : > { %v532_v1 = vld [vmem:[#allocation6 + $0x168] sm:$0xff]  ;;  %v574_v2 = vld [vmem:[%s3390_s7 + $0x38] sm:$0xff]  ;;  %v2591_v3 = vpack.c.bf16 %v498_v61, %v497_v60  ;;  %v575_v4 = vld [vmem:[%s3390_s7 + $0x40] sm:$0xff]  ;;  %v2593_v5 = vpack.c.bf16 %v516_v63, %v515_v62 }
  0xf5   : > { %v2625_v6 = vpack.c.bf16 %v532_v1, %v531_v0  ;;  %v576_v7 = vld [vmem:[%s3390_s7 + $0x48] sm:$0xff]  ;;  %v577_v8 = vld [vmem:[%s3390_s7 + $0x50] sm:$0xff]  ;;  %v499_v9 = vld [vmem:[#allocation6 + $0x60] sm:$0xff] }
  0xf6   : > { %v500_v10 = vld [vmem:[#allocation6 + $0x68] sm:$0xff]  ;;  %v517_v11 = vld [vmem:[#allocation6 + $0xf0] sm:$0xff]  ;;  %v518_v12 = vld [vmem:[#allocation6 + $0xf8] sm:$0xff] }
  0xf7   : > { %621 = vperm.xlu0 %2743, %v571_v55   ;;  %626 = vperm.xlu1 %2744, %v572_v58   ;;  %v533_v13 = vld [vmem:[#allocation6 + $0x170] sm:$0xff]  ;;  %v534_v14 = vld [vmem:[#allocation6 + $0x178] sm:$0xff]  ;;  %v2595_v16 = vpack.c.bf16 %v500_v10, %v499_v9  ;;  %v579_v17 = vld [vmem:[%s3390_s7 + $0x60] sm:$0xff]  ;;  %v2597_v18 = vpack.c.bf16 %v518_v12, %v517_v11  ;;  %v1243_v11 = vlaneseq }
  0xf8   : > { %v578_v15 = vld [vmem:[%s3390_s7 + $0x58] sm:$0xff]  ;;  %v2629_v19 = vpack.c.bf16 %v534_v14, %v533_v13  ;;  %v580_v20 = vld [vmem:[%s3390_s7 + $0x68] sm:$0xff]  ;;  %v581_v21 = vld [vmem:[%s3390_s7 + $0x70] sm:$0xff] }
  0xf9   : > { %2580 = vmatpush3.bf16.xpose.msra.mxu0 %v2579_v30  ;;  %2612 = vmatpush3.bf16.xpose.msra.mxu1 %v2609_v23  ;;  %v501_v22 = vld [vmem:[#allocation6 + $0x70] sm:$0xff]  ;;  %v502_v23 = vld [vmem:[#allocation6 + $0x78] sm:$0xff]  ;;  %v583_v26 = vld [vmem:[%s3390_s7 + $0x80] sm:$0xff]  ;;  %v1244_v13 = vshrl.u32 %v1243_v11, 7 }
  0xfa   : > { %2582 = vmatprep.subr.bf16.mxu0 %v2581_v32  ;;  %2614 = vmatprep.subr.bf16.mxu1 %v2613_v33  ;;  %v582_v24 = vld [vmem:[%s3390_s7 + $0x78] sm:$0xff]  ;;  %v2599_v25 = vpack.c.bf16 %v502_v23, %v501_v22  ;;  %v584_v27 = vld [vmem:[%s3390_s7 + $0x88] sm:$0xff]  ;;  %v585_v28 = vld [vmem:[%s3390_s7 + $0x90] sm:$0xff] }
  0xfb   : > { %631 = vperm.xlu0 %2743, %v573_v59   ;;  %636 = vperm.xlu1 %2744, %v574_v2   ;;  %v586_v29 = vld [vmem:[%s3390_s7 + $0x98] sm:$0xff]  ;;  %v587_v30 = vld [vmem:[%s3390_s7 + $0xa0] sm:$0xff]  ;;  %v536_v32 = vld [vmem:[%s3379_s6 + $0x8] sm:$0xff] }
  0xfc   : > { %v588_v34 = vld [vmem:[%s3390_s7 + $0xa8] sm:$0xff]  ;;  %v589_v35 = vld [vmem:[%s3390_s7 + $0xb0] sm:$0xff]  ;;  %v538_v36 = vld [vmem:[%s3379_s6 + $0x18] sm:$0xff] }
  0xfd   : > { %v539_v37 = vld [vmem:[%s3379_s6 + $0x20] sm:$0xff]  ;;  %v590_v38 = vld [vmem:[%s3390_s7 + $0xb8] sm:$0xff]  ;;  %v540_v39 = vld [vmem:[%s3379_s6 + $0x28] sm:$0xff] }
  0xfe   : > { %v541_v40 = vld [vmem:[%s3379_s6 + $0x30] sm:$0xff]  ;;  %v543_v44 = vld [vmem:[%s3379_s6 + $0x40] sm:$0xff]  ;;  %v594_v45 = vld [vmem:[%s3390_s7 + $0xd8] sm:$0xff] }
  0xff   : > { %641 = vperm.xlu0 %2743, %v575_v4   ;;  %646 = vperm.xlu1 %2744, %v576_v7   ;;  %v595_v46 = vld [vmem:[%s3390_s7 + $0xe0] sm:$0xff]  ;;  %v544_v47 = vld [vmem:[%s3379_s6 + $0x48] sm:$0xff]  ;;  %v545_v48 = vld [vmem:[%s3379_s6 + $0x50] sm:$0xff] }
 0x100   : > { %v596_v49 = vld [vmem:[%s3390_s7 + $0xe8] sm:$0xff]  ;;  %v597_v50 = vld [vmem:[%s3390_s7 + $0xf0] sm:$0xff]  ;;  %v546_v51 = vld [vmem:[%s3379_s6 + $0x58] sm:$0xff] }
 0x101   : > { %2584 = vmatpush3.bf16.xpose.msra.mxu0 %v2583_v41  ;;  %2616 = vmatpush3.bf16.xpose.msra.mxu1 %v2613_v33  ;;  %v537_v33 = vld [vmem:[%s3379_s6 + $0x10] sm:$0xff]  ;;  %v592_v41 = vld [vmem:[%s3390_s7 + $0xc8] sm:$0xff]  ;;  %v547_v52 = vld [vmem:[%s3379_s6 + $0x60] sm:$0xff] }
 0x102   : > { %2586 = vmatprep.subr.bf16.mxu0 %v2585_v42  ;;  %2618 = vmatprep.subr.bf16.mxu1 %v2617_v43  ;;  %v593_v42 = vld [vmem:[%s3390_s7 + $0xd0] sm:$0xff]  ;;  %v598_v53 = vld [vmem:[%s3390_s7 + $0xf8] sm:$0xff]  ;;  %v552_v58 = vld [vmem:[%s3379_s6 + $0x88] sm:$0xff] }
 0x103   : > { %651 = vperm.xlu0 %2743, %v577_v8   ;;  %656 = vperm.xlu1 %2744, %v578_v15   ;;  %v549_v55 = vld [vmem:[%s3379_s6 + $0x70] sm:$0xff]  ;;  %v554_v60 = vld [vmem:[%s3379_s6 + $0x98] sm:$0xff]  ;;  %v555_v61 = vld [vmem:[%s3379_s6 + $0xa0] sm:$0xff] }
 0x104   : > { %v553_v59 = vld [vmem:[%s3379_s6 + $0x90] sm:$0xff]  ;;  %v556_v62 = vld [vmem:[%s3379_s6 + $0xa8] sm:$0xff]  ;;  %v558_v0 = vld [vmem:[%s3379_s6 + $0xb8] sm:$0xff] }
 0x105   : > { %v557_v63 = vld [vmem:[%s3379_s6 + $0xb0] sm:$0xff]  ;;  %v559_v1 = vld [vmem:[%s3379_s6 + $0xc0] sm:$0xff]  ;;  %v560_v2 = vld [vmem:[%s3379_s6 + $0xc8] sm:$0xff] }
 0x106   : > { %v562_v4 = vld [vmem:[%s3379_s6 + $0xd8] sm:$0xff]  ;;  %v565_v7 = vld [vmem:[%s3379_s6 + $0xf0] sm:$0xff] }
 0x107   : > { %661 = vperm.xlu0 %2743, %v579_v17   ;;  %666 = vperm.xlu1 %2744, %v580_v20   ;;  %v566_v8 = vld [vmem:[%s3379_s6 + $0xf8] sm:$0xff]  ;;  %v1241_v17 = vld [vmem:[#allocation9] sm:$0x7] }
 0x109   : > { %2588 = vmatpush3.bf16.xpose.msra.mxu0 %v2587_v54  ;;  %2620 = vmatpush3.bf16.xpose.msra.mxu1 %v2617_v43  ;;  %v542_v43 = vld [vmem:[%s3379_s6 + $0x38] sm:$0xff]  ;;  %v548_v54 = vld [vmem:[%s3379_s6 + $0x68] sm:$0xff] }
 0x10a   : > { %2590 = vmatprep.subr.bf16.mxu0 %v2589_v56  ;;  %2622 = vmatprep.subr.bf16.mxu1 %v2621_v57  ;;  %v550_v56 = vld [vmem:[%s3379_s6 + $0x78] sm:$0xff] }
 0x10b   : > { %671 = vperm.xlu0 %2743, %v581_v21   ;;  %676 = vperm.xlu1 %2744, %v582_v24  }
 0x10f   : > { %681 = vperm.xlu0 %2743, %v583_v26   ;;  %686 = vperm.xlu1 %2744, %v584_v27  }
 0x111   : > { %2592 = vmatpush3.bf16.xpose.msra.mxu0 %v2591_v3  ;;  %2624 = vmatpush3.bf16.xpose.msra.mxu1 %v2621_v57  ;;  %v551_v57 = vld [vmem:[%s3379_s6 + $0x80] sm:$0xff]  ;;  %v561_v3 = vld [vmem:[%s3379_s6 + $0xd0] sm:$0xff] }
 0x112   : > { %2594 = vmatprep.subr.bf16.mxu0 %v2593_v5  ;;  %2626 = vmatprep.subr.bf16.mxu1 %v2625_v6  ;;  %v563_v5 = vld [vmem:[%s3379_s6 + $0xe0] sm:$0xff] }
 0x113   : > { %691 = vperm.xlu0 %2743, %v585_v28   ;;  %696 = vperm.xlu1 %2744, %v586_v29   ;;  %v1354_v29 = vld [vmem:[%s3403_s30] sm:$0xff] }
 0x117   : > { %701 = vperm.xlu0 %2743, %v587_v30   ;;  %706 = vperm.xlu1 %2744, %v588_v34  }
 0x119   : > { %2596 = vmatpush3.bf16.xpose.msra.mxu0 %v2595_v16  ;;  %2628 = vmatpush3.bf16.xpose.msra.mxu1 %v2625_v6  ;;  %v564_v6 = vld [vmem:[%s3379_s6 + $0xe8] sm:$0xff]  ;;  %v1245_v16 = vsub.s32 0, %v1244_v13 }
 0x11a   : > { %2598 = vmatprep.subr.bf16.mxu0 %v2597_v18  ;;  %2630 = vmatprep.subr.bf16.mxu1 %v2629_v19  ;;  %v1249_v18 = vsub.s32 1, %v1244_v13 }
 0x11b   : > { %711 = vperm.xlu0 %2743, %v589_v35   ;;  %716 = vperm.xlu1 %2744, %v590_v38   ;;  %v3486_v21 = vrot.slane %v1241_v17, %v1245_v16  ;;  %v1355_v35 = vld [vmem:[%s3403_s30 + $0x8] sm:$0xff] }
 0x11c   : > { %v3488_v23 = vrot.slane %v1241_v17, %v1249_v18 }
 0x11f   : > { %726 = vperm.xlu1 %2744, %v592_v41  }
 0x121   : > { %2600 = vmatpush3.bf16.xpose.msra.mxu0 %v2599_v25  ;;  %2632 = vmatpush3.bf16.xpose.msra.mxu1 %v2629_v19  ;;  %v1253_v19 = vsub.s32 2, %v1244_v13  ;;  %v1360_v13 = vld [vmem:[%s3403_s30 + $0x30] sm:$0xff] }
 0x123   : > { %736 = vperm.xlu1 %2744, %v594_v45   ;;  %v3492_v28 = vrot.slane %v1241_v17, %v1253_v19 }
 0x127   : > { %746 = vperm.xlu1 %2744, %v596_v49  }
 0x128   : > { %2378 = vmatmul.mubr.f32.vlgmr.msra.gmra.mrb[0].mxu0 %v3410_v31  ;;  %2522 = vmatmul.mubr.f32.vlgmr.msra.gmra.mrb[0].mxu1 %v536_v32  ;;  %v591_v31 = vld [vmem:[%s3390_s7 + $0xc0] sm:$0xff] }
 0x129   : > { %2379 = vmatprep.mubr.f32.mxu0 %v536_v32  ;;  %2524 = vmatprep.mubr.f32.mxu1 %v537_v33 }
 0x12a   : > { %721 = vperm.xlu0 %2743, %v591_v31   ;;  %v1356_v31 = vld [vmem:[%s3403_s30 + $0x10] sm:$0xff] }
 0x12b   : > { %756 = vperm.xlu1 %2744, %v598_v53  }
 0x12c   : > { %2380 = vmatmul.mubr.f32.gmra.mrb[2].mxu0 %v536_v32  ;;  %2525 = vmatmul.mubr.f32.gmra.mrb[2].mxu1 %v538_v36 }
 0x12d   : > { %2381 = vmatprep.mubr.f32.mxu0 %v537_v33  ;;  %2527 = vmatprep.mubr.f32.mxu1 %v539_v37 }
 0x12e   : > { %731 = vperm.xlu0 %2743, %v593_v42  }
 0x130   : > { %2382 = vmatmul.mubr.f32.gmra.mrb[4].mxu0 %v537_v33  ;;  %2528 = vmatmul.mubr.f32.gmra.mrb[4].mxu1 %v540_v39 }
 0x131   : > { %2383 = vmatprep.mubr.f32.mxu0 %v538_v36  ;;  %2530 = vmatprep.mubr.f32.mxu1 %v541_v40 }
 0x132   : > { %741 = vperm.xlu0 %2743, %v595_v46  }
 0x134   : > { %2384 = vmatmul.mubr.f32.gmra.mrb[6].mxu0 %v538_v36  ;;  %2531 = vmatmul.mubr.f32.gmra.mrb[6].mxu1 %v542_v43 }
 0x135   : > { %2385 = vmatprep.mubr.f32.mxu0 %v539_v37  ;;  %2533 = vmatprep.mubr.f32.mxu1 %v543_v44 }
 0x136   : > { %751 = vperm.xlu0 %2743, %v597_v50  }
 0x138   : > { %2386 = vmatmul.mubr.f32.gmra.mrb[8].mxu0 %v539_v37  ;;  %2534 = vmatmul.mubr.f32.gmra.mrb[8].mxu1 %v544_v47  ;;  %v1359_v37 = vld [vmem:[%s3403_s30 + $0x28] sm:$0xff] }
 0x139   : > { %2387 = vmatprep.mubr.f32.mxu0 %v540_v39  ;;  %2536 = vmatprep.mubr.f32.mxu1 %v545_v48 }
 0x13c   : > { %2388 = vmatmul.mubr.f32.gmra.mrb[10].mxu0 %v540_v39  ;;  %2537 = vmatmul.mubr.f32.gmra.mrb[10].mxu1 %v546_v51 }
 0x13d   : > { %2389 = vmatprep.mubr.f32.mxu0 %v541_v40  ;;  %2539 = vmatprep.mubr.f32.mxu1 %v547_v52 }
 0x140   : > { %2390 = vmatmul.mubr.f32.gmra.mrb[12].mxu0 %v541_v40  ;;  %2540 = vmatmul.mubr.f32.gmra.mrb[12].mxu1 %v548_v54 }
 0x141   : > { %2391 = vmatprep.mubr.f32.mxu0 %v542_v43  ;;  %2542 = vmatprep.mubr.f32.mxu1 %v549_v55 }
 0x144   : > { %2392 = vmatmul.mubr.f32.gmra.mrb[14].mxu0 %v542_v43  ;;  %2543 = vmatmul.mubr.f32.gmra.mrb[14].mxu1 %v550_v56 }
 0x145   : > { %2393 = vmatprep.mubr.f32.mxu0 %v543_v44  ;;  %2545 = vmatprep.mubr.f32.mxu1 %v551_v57 }
 0x148   : > { %2394 = vmatmul.mubr.f32.gmra.mrb[16].mxu0 %v543_v44  ;;  %2546 = vmatmul.mubr.f32.gmra.mrb[16].mxu1 %v552_v58 }
 0x149   : > { %2395 = vmatprep.mubr.f32.mxu0 %v544_v47  ;;  %2548 = vmatprep.mubr.f32.mxu1 %v553_v59 }
 0x14c   : > { %2396 = vmatmul.mubr.f32.gmra.mrb[18].mxu0 %v544_v47  ;;  %2549 = vmatmul.mubr.f32.gmra.mrb[18].mxu1 %v554_v60 }
 0x14d   : > { %2397 = vmatprep.mubr.f32.mxu0 %v545_v48  ;;  %2551 = vmatprep.mubr.f32.mxu1 %v555_v61 }
 0x150   : > { %2398 = vmatmul.mubr.f32.gmra.mrb[20].mxu0 %v545_v48  ;;  %2552 = vmatmul.mubr.f32.gmra.mrb[20].mxu1 %v556_v62  ;;  %v1357_v48 = vld [vmem:[%s3403_s30 + $0x18] sm:$0xff] }
 0x151   : > { %2399 = vmatprep.mubr.f32.mxu0 %v546_v51  ;;  %2554 = vmatprep.mubr.f32.mxu1 %v557_v63 }
 0x154   : > { %2400 = vmatmul.mubr.f32.gmra.mrb[22].mxu0 %v546_v51  ;;  %2555 = vmatmul.mubr.f32.gmra.mrb[22].mxu1 %v558_v0 }
 0x155   : > { %2401 = vmatprep.mubr.f32.mxu0 %v547_v52  ;;  %2557 = vmatprep.mubr.f32.mxu1 %v559_v1 }
 0x158   : > { %2402 = vmatmul.mubr.f32.gmra.mrb[24].mxu0 %v547_v52  ;;  %2558 = vmatmul.mubr.f32.gmra.mrb[24].mxu1 %v560_v2 }
 0x159   : > { %2403 = vmatprep.mubr.f32.mxu0 %v548_v54  ;;  %2560 = vmatprep.mubr.f32.mxu1 %v561_v3 }
 0x15c   : > { %2404 = vmatmul.mubr.f32.gmra.mrb[26].mxu0 %v548_v54  ;;  %2561 = vmatmul.mubr.f32.gmra.mrb[26].mxu1 %v562_v4 }
 0x15d   : > { %2405 = vmatprep.mubr.f32.mxu0 %v549_v55  ;;  %2563 = vmatprep.mubr.f32.mxu1 %v563_v5 }
 0x160   : > { %2406 = vmatmul.mubr.f32.gmra.mrb[28].mxu0 %v549_v55  ;;  %2564 = vmatmul.mubr.f32.gmra.mrb[28].mxu1 %v564_v6 }
 0x161   : > { %2407 = vmatprep.mubr.f32.mxu0 %v550_v56  ;;  %2566 = vmatprep.mubr.f32.mxu1 %v565_v7 }
 0x164   : > { %2408 = vmatmul.mubr.f32.gmra.mrb[30].mxu0 %v550_v56  ;;  %2567 = vmatmul.mubr.f32.gmra.mrb[30].mxu1 %v566_v8 }
 0x165   : > { %2409 = vmatprep.mubr.f32.mxu0 %v551_v57 }
 0x168   : > { %2410 = vmatmul.mubr.f32.gmra.mrb[32].mxu0 %v551_v57  ;;  %v1358_v57 = vld [vmem:[%s3403_s30 + $0x20] sm:$0xff] }
 0x169   : > { %2411 = vmatprep.mubr.f32.mxu0 %v552_v58 }
 0x16c   : > { %2412 = vmatmul.mubr.f32.gmra.mrb[34].mxu0 %v552_v58  ;;  %v1365_v58 = vld [vmem:[%s3403_s30 + $0x58] sm:$0xff] }
 0x16d   : > { %2413 = vmatprep.mubr.f32.mxu0 %v553_v59  ;;  %v3478_v10 = vpop.permute.xlu1 %611 }
 0x16e   : > { %v602_v9 = vpop.permute.xlu0 %601 }
 0x170   : > { %2414 = vmatmul.mubr.f32.gmra.mrb[36].mxu0 %v553_v59 }
 0x171   : > { %2415 = vmatprep.mubr.f32.mxu0 %v554_v60 }
 0x172   : > { %v607_v12 = vpop.permute.xlu0 %606  ;;  %v3480_v14 = vpop.permute.xlu1 %616 }
 0x174   : > { %2416 = vmatmul.mubr.f32.gmra.mrb[38].mxu0 %v554_v60  ;;  %v1642_v60 = vld [vmem:[%s3514_s27] sm:$0xff] }
 0x175   : > { %2417 = vmatprep.mubr.f32.mxu0 %v555_v61 }
 0x176   : > { %v3482_v15 = vpop.permute.xlu0 %621  ;;  %v3484_v20 = vpop.permute.xlu1 %626 }
 0x178   : > { %2418 = vmatmul.mubr.f32.gmra.mrb[40].mxu0 %v555_v61 }
 0x179   : > { %2419 = vmatprep.mubr.f32.mxu0 %v556_v62 }
 0x17a   : > { %v3490_v24 = vpop.permute.xlu0 %631  ;;  %v3501_v41 = vpop.permute.xlu1 %636 }
 0x17c   : > { %2420 = vmatmul.mubr.f32.gmra.mrb[42].mxu0 %v556_v62 }
 0x17d   : > { %2421 = vmatprep.mubr.f32.mxu0 %v557_v63 }
 0x17e   : > { %v3506_v52 = vpop.permute.xlu0 %641 }
 0x180   : > { %2422 = vmatmul.mubr.f32.gmra.mrb[44].mxu0 %v557_v63 }
 0x181   : > { %2423 = vmatprep.mubr.f32.mxu0 %v558_v0 }
 0x184   : > { %2424 = vmatmul.mubr.f32.gmra.mrb[46].mxu0 %v558_v0 }
 0x185   : > { %2425 = vmatprep.mubr.f32.mxu0 %v559_v1 }
 0x188   : > { %2426 = vmatmul.mubr.f32.gmra.mrb[48].mxu0 %v559_v1  ;;  %v1362_v1 = vld [vmem:[%s3403_s30 + $0x40] sm:$0xff] }
 0x189   : > { %2427 = vmatprep.mubr.f32.mxu0 %v560_v2 }
 0x18c   : > { %2428 = vmatmul.mubr.f32.gmra.mrb[50].mxu0 %v560_v2  ;;  %v1643_v2 = vld [vmem:[%s3514_s27 + $0x8] sm:$0xff] }
 0x18d   : > { %2429 = vmatprep.mubr.f32.mxu0 %v561_v3 }
 0x190   : > { %2430 = vmatmul.mubr.f32.gmra.mrb[52].mxu0 %v561_v3 }
 0x191   : > { %2431 = vmatprep.mubr.f32.mxu0 %v562_v4 }
 0x194   : > { %2432 = vmatmul.mubr.f32.gmra.mrb[54].mxu0 %v562_v4 }
 0x195   : > { %2433 = vmatprep.mubr.f32.mxu0 %v563_v5 }
 0x198   : > { %2434 = vmatmul.mubr.f32.gmra.mrb[56].mxu0 %v563_v5 }
 0x199   : > { %2435 = vmatprep.mubr.f32.mxu0 %v564_v6 }
 0x19c   : > { %2436 = vmatmul.mubr.f32.gmra.mrb[58].mxu0 %v564_v6 }
 0x19d   : > { %2437 = vmatprep.mubr.f32.mxu0 %v565_v7 }
 0x1a0   : > { %2438 = vmatmul.mubr.f32.gmra.mrb[60].mxu0 %v565_v7 }
 0x1a1   : > { %2439 = vmatprep.mubr.f32.mxu0 %v566_v8 }
 0x1a4   : > { %2440 = vmatmul.mubr.f32.gmra.mrb[62].mxu0 %v566_v8 }
 0x1fb   : > { %v825_v22 = vpop.f32.mrb[0].mxu0  ;;  %v2523_v27 = vpop.f32.mrb[0].mxu1 }
 0x1fc   : > { %v826_v25 = vadd.f32 %v825_v22, %v602_v9  ;;  %v827_v26 = vpop.f32.mrb[1].mxu0  ;;  %v1082_v32 = vpop.f32.mrb[1].mxu1  ;;  %v1088_v33 = vadd.f32 %v2523_v27, %v607_v12  ;;  %v1361_v27 = vld [vmem:[%s3403_s30 + $0x38] sm:$0xff] }
 0x1fd   : > { %v828_v30 = vadd.f32 %v827_v26, %v602_v9  ;;  %v1083_v36 = vadd.f32 %v1082_v32, %v602_v9  ;;  %v1644_v9 = vld [vmem:[%s3514_s27 + $0x10] sm:$0xff]  ;;  %v3526_v22 = vpop.permute.xlu1 %646 }
 0x1fe   : > { %v1258_v34 = vadd.f32 %v3486_v21, %v826_v25  ;;  %v1263_v39 = vadd.f32 %v3492_v28, %v1088_v33 }
 0x1ff   : > { %v1259_v38 = vadd.f32 %v3488_v23, %v828_v30  ;;  %v831_v40 = vpop.f32.mrb[2].mxu0  ;;  %v1260_v43 = vadd.f32 %v3492_v28, %v1083_v36  ;;  %v2526_v46 = vpop.f32.mrb[2].mxu1  ;;  %v1645_v36 = vld [vmem:[%s3514_s27 + $0x18] sm:$0xff] }
 0x200   : > { %v1450_v42 = vsub.f32 %v1354_v29, %v1258_v34  ;;  %v832_v44 = vadd.f32 %v831_v40, %v607_v12  ;;  %v833_v45 = vpop.f32.mrb[3].mxu0  ;;  %v1098_v50 = vadd.f32 %v2526_v46, %v3480_v14  ;;  %v1092_v51 = vpop.f32.mrb[3].mxu1  ;;  %v1455_v53 = vsub.f32 %v1359_v37, %v1263_v39 }
 0x201   : > { %v1451_v47 = vsub.f32 %v1355_v35, %v1259_v38  ;;  %v834_v49 = vadd.f32 %v833_v45, %v607_v12  ;;  %v1452_v55 = vsub.f32 %v1356_v31, %v1260_v43  ;;  %v1093_v59 = vadd.f32 %v1092_v51, %v3478_v10  ;;  %v3534_v37 = vpop.permute.xlu0 %651  ;;  %v1363_v45 = vld [vmem:[%s3403_s30 + $0x48] sm:$0xff] }
 0x202   : > { %v1546_v54 = vmul.f32 %v1450_v42, %v1450_v42  ;;  %v1261_v56 = vadd.f32 %v3486_v21, %v832_v44  ;;  %v1269_v0 = vadd.f32 %v3492_v28, %v1098_v50  ;;  %v1551_v3 = vmul.f32 %v1455_v53, %v1455_v53  ;;  %v1647_v50 = vld [vmem:[%s3514_s27 + $0x28] sm:$0xff] }
 0x203   : > { %v1547_v61 = vmul.f32 %v1451_v47, %v1451_v47  ;;  %v1262_v62 = vadd.f32 %v3488_v23, %v834_v49  ;;  %v837_v63 = vpop.f32.mrb[4].mxu0  ;;  %v1548_v4 = vmul.f32 %v1452_v55, %v1452_v55  ;;  %v1266_v8 = vadd.f32 %v3492_v28, %v1093_v59  ;;  %v2529_v11 = vpop.f32.mrb[4].mxu1  ;;  %v1646_v49 = vld [vmem:[%s3514_s27 + $0x20] sm:$0xff]  ;;  %v1364_v55 = vld [vmem:[%s3403_s30 + $0x50] sm:$0xff] }
 0x204   : > { %v1453_v5 = vsub.f32 %v1357_v48, %v1261_v56  ;;  %v838_v6 = vadd.f32 %v837_v63, %v3478_v10  ;;  %v839_v7 = vpop.f32.mrb[5].mxu0  ;;  %v1461_v17 = vsub.f32 %v1365_v58, %v1269_v0  ;;  %v1738_v18 = vmul.f32 %v1642_v60, %v1546_v54  ;;  %v1102_v19 = vpop.f32.mrb[5].mxu1  ;;  %v1368_v58 = vld [vmem:[%s3403_s30 + $0x70] sm:$0xff] }
 0x205   : > { %v1454_v12 = vsub.f32 %v1358_v57, %v1262_v62  ;;  %v840_v16 = vadd.f32 %v839_v7, %v3478_v10  ;;  %v1458_v29 = vsub.f32 %v1362_v1, %v1266_v8  ;;  %v1739_v30 = vmul.f32 %v1643_v2, %v1547_v61  ;;  %v1371_v57 = vld [vmem:[%s3403_s30 + $0x88] sm:$0xff]  ;;  %v1648_v0 = vld [vmem:[%s3514_s27 + $0x30] sm:$0xff]  ;;  %v3553_v1 = vpop.permute.xlu1 %656 }
 0x206   : > { %v1549_v25 = vmul.f32 %v1453_v5, %v1453_v5  ;;  %v1264_v26 = vadd.f32 %v3486_v21, %v838_v6  ;;  %v3531_v34 = vmul.f32 %v1461_v17, %v1461_v17  ;;  %v1740_v10 = vmul.f32 %v1644_v9, %v1548_v4  ;;  %v1649_v17 = vld [vmem:[%s3514_s27 + $0x38] sm:$0xff] }
 0x207   : > { %v1550_v32 = vmul.f32 %v1454_v12, %v1454_v12  ;;  %v1265_v33 = vadd.f32 %v3488_v23, %v840_v16  ;;  %v843_v35 = vpop.f32.mrb[6].mxu0  ;;  %v3536_v31 = vmul.f32 %v1458_v29, %v1458_v29  ;;  %v1898_v42 = vadd.f32 %v1739_v30, %v1738_v18  ;;  %v2532_v43 = vpop.f32.mrb[6].mxu1 }
 0x208   : > { %v1456_v38 = vsub.f32 %v1360_v13, %v1264_v26  ;;  %v844_v39 = vadd.f32 %v843_v35, %v3480_v14  ;;  %v845_v40 = vpop.f32.mrb[7].mxu0  ;;  %v1108_v47 = vadd.f32 %v2529_v11, %v3484_v20  ;;  %v1103_v48 = vadd.f32 %v1102_v19, %v3482_v15  ;;  %v1112_v51 = vpop.f32.mrb[7].mxu1  ;;  %v1366_v11 = vld [vmem:[%s3403_s30 + $0x60] sm:$0xff] }
 0x209   : > { %v1457_v44 = vsub.f32 %v1361_v27, %v1265_v33  ;;  %v846_v46 = vadd.f32 %v845_v40, %v3480_v14  ;;  %v1930_v56 = vadd.f32 %v1898_v42, %v1740_v10  ;;  %v1741_v59 = vmul.f32 %v1645_v36, %v1549_v25  ;;  %v3561_v18 = vpop.permute.xlu0 %661  ;;  %v1367_v27 = vld [vmem:[%s3403_s30 + $0x68] sm:$0xff] }
 0x20a   : > { %v1552_v53 = vmul.f32 %v1456_v38, %v1456_v38  ;;  %v1267_v54 = vadd.f32 %v3486_v21, %v844_v39  ;;  %v1275_v62 = vadd.f32 %v3492_v28, %v1108_v47  ;;  %v1272_v63 = vadd.f32 %v3492_v28, %v1103_v48  ;;  %v1369_v47 = vld [vmem:[%s3403_s30 + $0x78] sm:$0xff] }
 0x20b   : > { %v1553_v60 = vmul.f32 %v1457_v44, %v1457_v44  ;;  %v1268_v14 = vadd.f32 %v3488_v23, %v846_v46  ;;  %v849_v61 = vpop.f32.mrb[8].mxu0  ;;  %2029 = vadd.xlane.f32.xlu0 %v1930_v56  ;;  %v1742_v6 = vmul.f32 %v1646_v49, %v1550_v32  ;;  %v1743_v7 = vmul.f32 %v1647_v50, %v1551_v3  ;;  %v3556_v8 = vpop.f32.mrb[8].mxu1  ;;  %v1650_v3 = vld [vmem:[%s3514_s27 + $0x40] sm:$0xff]  ;;  %v1651_v44 = vld [vmem:[%s3514_s27 + $0x48] sm:$0xff] }
 0x20c   : > { %v1459_v2 = vsub.f32 %v1363_v45, %v1267_v54  ;;  %v850_v4 = vadd.f32 %v849_v61, %v3482_v15  ;;  %v851_v5 = vpop.f32.mrb[9].mxu0  ;;  %v1467_v13 = vsub.f32 %v1371_v57, %v1275_v62  ;;  %v1464_v16 = vsub.f32 %v1368_v58, %v1272_v63  ;;  %v3563_v19 = vpop.f32.mrb[9].mxu1  ;;  %v1370_v57 = vld [vmem:[%s3403_s30 + $0x80] sm:$0xff]  ;;  %v1653_v63 = vld [vmem:[%s3514_s27 + $0x58] sm:$0xff] }
 0x20d   : > { %v1460_v9 = vsub.f32 %v1364_v55, %v1268_v14  ;;  %v852_v12 = vadd.f32 %v851_v5, %v3482_v15  ;;  %v1899_v29 = vadd.f32 %v1742_v6, %v1741_v59  ;;  %v1744_v30 = vmul.f32 %v1648_v0, %v1552_v53  ;;  %v3581_v53 = vpop.permute.xlu1 %666  ;;  %v1377_v59 = vld [vmem:[%s3403_s30 + $0xb8] sm:$0xff]  ;;  %v1374_v62 = vld [vmem:[%s3403_s30 + $0xa0] sm:$0xff] }
 0x20e   : > { %v1555_v25 = vmul.f32 %v1459_v2, %v1459_v2  ;;  %v1270_v26 = vadd.f32 %v3486_v21, %v850_v4  ;;  %v3569_v15 = vmul.f32 %v1467_v13, %v1467_v13  ;;  %v3571_v35 = vmul.f32 %v1464_v16, %v1464_v16  ;;  %v3594_v2 = vpop.permute.xlu0 %671 }
 0x20f   : > { %v1556_v32 = vmul.f32 %v1460_v9, %v1460_v9  ;;  %v1271_v33 = vadd.f32 %v3488_v23, %v852_v12  ;;  %v855_v10 = vpop.f32.mrb[10].mxu0  ;;  %v1931_v39 = vadd.f32 %v1899_v29, %v1743_v7  ;;  %v1745_v42 = vmul.f32 %v1649_v17, %v1553_v60  ;;  %v3575_v45 = vpop.f32.mrb[10].mxu1  ;;  %v1372_v12 = vld [vmem:[%s3403_s30 + $0x90] sm:$0xff] }
 0x210   : > { %v1462_v36 = vsub.f32 %v1366_v11, %v1270_v26  ;;  %v856_v38 = vadd.f32 %v855_v10, %v3484_v20  ;;  %v857_v40 = vpop.f32.mrb[11].mxu0  ;;  %v1746_v49 = vmul.f32 %v1650_v3, %v3536_v31  ;;  %v1118_v50 = vadd.f32 %v2532_v43, %v3501_v41  ;;  %v3583_v54 = vpop.f32.mrb[11].mxu1  ;;  %v1373_v3 = vld [vmem:[%s3403_s30 + $0x98] sm:$0xff]  ;;  %v1655_v10 = vld [vmem:[%s3514_s27 + $0x68] sm:$0xff] }
 0x211   : > { %v1463_v46 = vsub.f32 %v1367_v27, %v1271_v33  ;;  %v858_v48 = vadd.f32 %v857_v40, %v3484_v20  ;;  %2031 = vadd.xlane.f32.xlu1 %v1931_v39  ;;  %v1900_v58 = vadd.f32 %v1745_v42, %v1744_v30  ;;  %v1113_v60 = vadd.f32 %v1112_v51, %v3490_v24  ;;  %v1652_v20 = vld [vmem:[%s3514_s27 + $0x50] sm:$0xff]  ;;  %v3613_v42 = vpop.permute.xlu1 %676 }
 0x212   : > { %v1558_v55 = vmul.f32 %v1462_v36, %v1462_v36  ;;  %v1273_v56 = vadd.f32 %v3486_v21, %v856_v38  ;;  %v1281_v61 = vadd.f32 %v3492_v28, %v1118_v50  ;;  %v1747_v0 = vmul.f32 %v1651_v44, %v1555_v25  ;;  %v1654_v25 = vld [vmem:[%s3514_s27 + $0x60] sm:$0xff]  ;;  %v1656_v40 = vld [vmem:[%s3514_s27 + $0x70] sm:$0xff] }
 0x213   : > { %v1559_v31 = vmul.f32 %v1463_v46, %v1463_v46  ;;  %v1274_v14 = vadd.f32 %v3488_v23, %v858_v48  ;;  %v861_v43 = vpop.f32.mrb[12].mxu0  ;;  %v1932_v6 = vadd.f32 %v1900_v58, %v1746_v49  ;;  %v1278_v7 = vadd.f32 %v3492_v28, %v1113_v60  ;;  %v3598_v9 = vpop.f32.mrb[12].mxu1 }
 0x214   : > { %v1465_v4 = vsub.f32 %v1369_v47, %v1273_v56  ;;  %v862_v5 = vadd.f32 %v861_v43, %v3490_v24  ;;  %v863_v51 = vpop.f32.mrb[13].mxu0  ;;  %v1473_v16 = vsub.f32 %v1377_v59, %v1281_v61  ;;  %v1748_v17 = vmul.f32 %v1652_v20, %v1556_v32  ;;  %v3603_v26 = vpop.f32.mrb[13].mxu1  ;;  %v1375_v56 = vld [vmem:[%s3403_s30 + $0xa8] sm:$0xff]  ;;  %v1657_v20 = vld [vmem:[%s3514_s27 + $0x78] sm:$0xff] }
 0x215   : > { %v1466_v11 = vsub.f32 %v1370_v57, %v1274_v14  ;;  %v864_v13 = vadd.f32 %v863_v51, %v3490_v24  ;;  %2033 = vadd.xlane.f32.xlu0 %v1932_v6  ;;  %v1470_v30 = vsub.f32 %v1374_v62, %v1278_v7  ;;  %v1749_v33 = vmul.f32 %v1653_v63, %v3531_v34  ;;  %v3622_v60 = vpop.permute.xlu0 %681  ;;  %v1658_v51 = vld [vmem:[%s3514_s27 + $0x80] sm:$0xff] }
 0x216   : > { %v1561_v27 = vmul.f32 %v1465_v4, %v1465_v4  ;;  %v1276_v29 = vadd.f32 %v3486_v21, %v862_v5  ;;  %v3610_v24 = vmul.f32 %v1473_v16, %v1473_v16  ;;  %v1901_v32 = vadd.f32 %v1748_v17, %v1747_v0  ;;  %v1383_v5 = vld [vmem:[%s3403_s30 + $0xe8] sm:$0xff] }
 0x217   : > { %v1562_v36 = vmul.f32 %v1466_v11, %v1466_v11  ;;  %v1277_v38 = vadd.f32 %v3488_v23, %v864_v13  ;;  %v867_v39 = vpop.f32.mrb[14].mxu0  ;;  %v3615_v46 = vmul.f32 %v1470_v30, %v1470_v30  ;;  %v1750_v48 = vmul.f32 %v1654_v25, %v1558_v55  ;;  %v3618_v49 = vpop.f32.mrb[14].mxu1  ;;  %v1376_v55 = vld [vmem:[%s3403_s30 + $0xb0] sm:$0xff]  ;;  %v1659_v13 = vld [vmem:[%s3514_s27 + $0x88] sm:$0xff] }
 0x218   : > { %v1468_v44 = vsub.f32 %v1372_v12, %v1276_v29  ;;  %v868_v47 = vadd.f32 %v867_v39, %v3501_v41  ;;  %v869_v34 = vpop.f32.mrb[15].mxu0  ;;  %v1933_v57 = vadd.f32 %v1901_v32, %v1749_v33  ;;  %v1751_v59 = vmul.f32 %v1655_v10, %v1559_v31  ;;  %v3625_v14 = vpop.f32.mrb[15].mxu1  ;;  %v1378_v29 = vld [vmem:[%s3403_s30 + $0xc0] sm:$0xff]  ;;  %v1379_v32 = vld [vmem:[%s3403_s30 + $0xc8] sm:$0xff] }
 0x219   : > { %v1469_v50 = vsub.f32 %v1373_v3, %v1277_v38  ;;  %v870_v58 = vadd.f32 %v869_v34, %v3501_v41  ;;  %v1752_v62 = vmul.f32 %v1656_v40, %v3571_v35  ;;  %v1128_v63 = vadd.f32 %v3556_v8, %v3526_v22  ;;  %v1380_v8 = vld [vmem:[%s3403_s30 + $0xd0] sm:$0xff]  ;;  %v3646_v33 = vpop.permute.xlu1 %686 }
 0x21a   : > { %v1564_v43 = vmul.f32 %v1468_v44, %v1468_v44  ;;  %v1279_v61 = vadd.f32 %v3486_v21, %v868_v47  ;;  %2035 = vadd.xlane.f32.xlu0 %v1933_v57  ;;  %v1902_v4 = vadd.f32 %v1751_v59, %v1750_v48  ;;  %v1123_v6 = vadd.f32 %v3563_v19, %v3506_v52 }
 0x21b   : > { %v1565_v0 = vmul.f32 %v1469_v50, %v1469_v50  ;;  %v1280_v41 = vadd.f32 %v3488_v23, %v870_v58  ;;  %v873_v31 = vpop.f32.mrb[16].mxu0  ;;  %v1287_v12 = vadd.f32 %v3492_v28, %v1128_v63  ;;  %v1753_v16 = vmul.f32 %v1657_v20, %v1561_v27  ;;  %v3641_v17 = vpop.f32.mrb[16].mxu1 }
 0x21c   : > { %v1471_v7 = vsub.f32 %v1375_v56, %v1279_v61  ;;  %v874_v11 = vadd.f32 %v873_v31, %v3506_v52  ;;  %v875_v35 = vpop.f32.mrb[17].mxu0  ;;  %v1934_v3 = vadd.f32 %v1902_v4, %v1752_v62  ;;  %v1284_v19 = vadd.f32 %v3492_v28, %v1123_v6  ;;  %v3648_v10 = vpop.f32.mrb[17].mxu1  ;;  %v1660_v56 = vld [vmem:[%s3514_s27 + $0x90] sm:$0xff]  ;;  %v1661_v61 = vld [vmem:[%s3514_s27 + $0x98] sm:$0xff]  ;;  %v1662_v4 = vld [vmem:[%s3514_s27 + $0xa0] sm:$0xff] }
 0x21d   : > { %v1472_v25 = vsub.f32 %v1376_v55, %v1280_v41  ;;  %v876_v30 = vadd.f32 %v875_v35, %v3506_v52  ;;  %v1479_v27 = vsub.f32 %v1383_v5, %v1287_v12  ;;  %v1754_v40 = vmul.f32 %v1658_v51, %v1562_v36  ;;  %v3658_v50 = vpop.permute.xlu0 %691  ;;  %v1381_v41 = vld [vmem:[%s3403_s30 + $0xd8] sm:$0xff] }
 0x21e   : > { %v3650_v38 = vmul.f32 %v1471_v7, %v1471_v7  ;;  %v1282_v39 = vadd.f32 %v3486_v21, %v874_v11  ;;  %2037 = vadd.xlane.f32.xlu1 %v1934_v3  ;;  %v1476_v47 = vsub.f32 %v1380_v8, %v1284_v19  ;;  %v1755_v48 = vmul.f32 %v1659_v13, %v3569_v15  ;;  %v1382_v11 = vld [vmem:[%s3403_s30 + $0xe0] sm:$0xff]  ;;  %v1389_v35 = vld [vmem:[%s3403_s30 + $0x118] sm:$0xff] }
 0x21f   : > { %v3654_v44 = vmul.f32 %v1472_v25, %v1472_v25  ;;  %v1283_v52 = vadd.f32 %v3488_v23, %v876_v30  ;;  %v879_v34 = vpop.f32.mrb[18].mxu0  ;;  %v3661_v58 = vmul.f32 %v1479_v27, %v1479_v27  ;;  %v1903_v59 = vadd.f32 %v1754_v40, %v1753_v16  ;;  %v3665_v55 = vpop.f32.mrb[18].mxu1  ;;  %v1384_v27 = vld [vmem:[%s3403_s30 + $0xf0] sm:$0xff] }
 0x220   : > { %v1474_v57 = vsub.f32 %v1378_v29, %v1282_v39  ;;  %v880_v36 = vadd.f32 %v879_v34, %v3526_v22  ;;  %v881_v20 = vpop.f32.mrb[19].mxu0  ;;  %v3667_v63 = vmul.f32 %v1476_v47, %v1476_v47  ;;  %v1138_v31 = vadd.f32 %v3575_v45, %v3553_v1  ;;  %v3674_v5 = vpop.f32.mrb[19].mxu1  ;;  %v1386_v34 = vld [vmem:[%s3403_s30 + $0x100] sm:$0xff] }
 0x221   : > { %v1475_v62 = vsub.f32 %v1379_v32, %v1283_v52  ;;  %v882_v15 = vadd.f32 %v881_v20, %v3526_v22  ;;  %v1935_v7 = vadd.f32 %v1903_v59, %v1755_v48  ;;  %v1756_v12 = vmul.f32 %v1660_v56, %v1564_v43  ;;  %v3685_v25 = vpop.permute.xlu1 %696  ;;  %v3694_v52 = vpop.permute.xlu0 %701  ;;  %v1663_v59 = vld [vmem:[%s3514_s27 + $0xa8] sm:$0xff] }
 0x222   : > { %v3676_v6 = vmul.f32 %v1474_v57, %v1474_v57  ;;  %v1285_v51 = vadd.f32 %v3486_v21, %v880_v36  ;;  %v1293_v16 = vadd.f32 %v3492_v28, %v1138_v31  ;;  %v1757_v45 = vmul.f32 %v1661_v61, %v1565_v0  ;;  %4409 = vst [vmem:[#allocation30_spill] sm:$0xff] %v3694_v52 }
 0x223   : > { %v3681_v8 = vmul.f32 %v1475_v62, %v1475_v62  ;;  %v1286_v13 = vadd.f32 %v3488_v23, %v882_v15  ;;  %v885_v22 = vpop.f32.mrb[20].mxu0  ;;  %2039 = vadd.xlane.f32.xlu0 %v1935_v7  ;;  %v1758_v30 = vmul.f32 %v1662_v4, %v3615_v46  ;;  %v1133_v43 = vadd.f32 %v3583_v54, %v3534_v37  ;;  %v3691_v39 = vpop.f32.mrb[20].mxu1  ;;  %v1385_v54 = vld [vmem:[%s3403_s30 + $0xf8] sm:$0xff] }
 0x224   : > { %v1477_v29 = vsub.f32 %v1381_v41, %v1285_v51  ;;  %v886_v3 = vadd.f32 %v885_v22, %v3534_v37  ;;  %v887_v19 = vpop.f32.mrb[21].mxu0  ;;  %v1485_v40 = vsub.f32 %v1389_v35, %v1293_v16  ;;  %v1904_v0 = vadd.f32 %v1757_v45, %v1756_v12  ;;  %v3698_v48 = vpop.f32.mrb[21].mxu1  ;;  %v1395_v41 = vld [vmem:[%s3403_s30 + $0x148] sm:$0xff]  ;;  %v1665_v45 = vld [vmem:[%s3514_s27 + $0xb8] sm:$0xff] }
 0x225   : > { %v1478_v32 = vsub.f32 %v1382_v11, %v1286_v13  ;;  %v888_v47 = vadd.f32 %v887_v19, %v3534_v37  ;;  %v1290_v57 = vadd.f32 %v3492_v28, %v1133_v43  ;;  %v1148_v36 = vadd.f32 %v3598_v9, %v3581_v53  ;;  %v1664_v9 = vld [vmem:[%s3514_s27 + $0xb0] sm:$0xff] }
 0x226   : > { %v3700_v46 = vmul.f32 %v1477_v29, %v1477_v29  ;;  %v1288_v56 = vadd.f32 %v3486_v21, %v886_v3  ;;  %v3710_v61 = vmul.f32 %v1485_v40, %v1485_v40  ;;  %v1936_v37 = vadd.f32 %v1904_v0, %v1758_v30  ;;  %v1392_v13 = vld [vmem:[%s3403_s30 + $0x130] sm:$0xff]  ;;  %v3726_v3 = vpop.permute.xlu1 %706  ;;  %v1401_v40 = vld [vmem:[%s3403_s30 + $0x178] sm:$0xff] }
 0x227   : > { %v3708_v20 = vmul.f32 %v1478_v32, %v1478_v32  ;;  %v1289_v62 = vadd.f32 %v3488_v23, %v888_v47  ;;  %v891_v15 = vpop.f32.mrb[22].mxu0  ;;  %v1482_v4 = vsub.f32 %v1386_v34, %v1290_v57  ;;  %v1299_v51 = vadd.f32 %v3492_v28, %v1148_v36  ;;  %v3718_v35 = vpop.f32.mrb[22].mxu1  ;;  %4410 = vst [vmem:[#allocation31_spill] sm:$0xff] %v3726_v3 }
 0x228   : > { %v1480_v31 = vsub.f32 %v1384_v27, %v1288_v56  ;;  %v1143_v7 = vadd.f32 %v3603_v26, %v3561_v18  ;;  %v893_v11 = vpop.f32.mrb[23].mxu0  ;;  %2041 = vadd.xlane.f32.xlu1 %v1936_v37  ;;  %v892_v22 = vadd.f32 %v891_v15, %v3553_v1  ;;  %v1158_v16 = vadd.f32 %v3618_v49, %v3613_v42  ;;  %v3728_v26 = vpop.f32.mrb[23].mxu1  ;;  %v1387_v27 = vld [vmem:[%s3403_s30 + $0x108] sm:$0xff] }
 0x229   : > { %v1481_v12 = vsub.f32 %v1385_v54, %v1289_v62  ;;  %v1759_v29 = vmul.f32 %v1663_v59, %v3650_v38  ;;  %v3732_v19 = vmul.f32 %v1482_v4, %v1482_v4  ;;  %v1491_v43 = vsub.f32 %v1395_v41, %v1299_v51  ;;  %v3742_v34 = vpop.permute.xlu0 %711 }
 0x22a   : > { %v3730_v30 = vmul.f32 %v1480_v31, %v1480_v31  ;;  %v1296_v32 = vadd.f32 %v3492_v28, %v1143_v7  ;;  %v1291_v49 = vadd.f32 %v3486_v21, %v892_v22  ;;  %v1305_v38 = vadd.f32 %v3492_v28, %v1158_v16  ;;  %v1388_v31 = vld [vmem:[%s3403_s30 + $0x110] sm:$0xff] }
 0x22b   : > { %v3737_v0 = vmul.f32 %v1481_v12, %v1481_v12  ;;  %v1760_v47 = vmul.f32 %v1664_v9, %v3654_v44  ;;  %v897_v56 = vpop.f32.mrb[24].mxu0  ;;  %v3744_v54 = vmul.f32 %v1491_v43, %v1491_v43  ;;  %v1761_v36 = vmul.f32 %v1665_v45, %v3610_v24  ;;  %v3748_v62 = vpop.f32.mrb[24].mxu1  ;;  %v1398_v9 = vld [vmem:[%s3403_s30 + $0x160] sm:$0xff]  ;;  %v1404_v43 = vld [vmem:[%s3403_s30 + $0x190] sm:$0xff] }
 0x22c   : > { %v1488_v57 = vsub.f32 %v1392_v13, %v1296_v32  ;;  %v894_v59 = vadd.f32 %v893_v11, %v3553_v1  ;;  %v899_v37 = vpop.f32.mrb[25].mxu0  ;;  %v1483_v41 = vsub.f32 %v1387_v27, %v1291_v49  ;;  %v1497_v15 = vsub.f32 %v1401_v40, %v1305_v38  ;;  %v3753_v51 = vpop.f32.mrb[25].mxu1  ;;  %v1666_v12 = vld [vmem:[%s3514_s27 + $0xc0] sm:$0xff]  ;;  %v1667_v13 = vld [vmem:[%s3514_s27 + $0xc8] sm:$0xff]  ;;  %v1668_v38 = vld [vmem:[%s3514_s27 + $0xd0] sm:$0xff] }
 0x22d   : > { %v1905_v44 = vadd.f32 %v1760_v47, %v1759_v29  ;;  %v1153_v4 = vadd.f32 %v3625_v14, %v3594_v2  ;;  %v1168_v1 = vadd.f32 %v3641_v17, %v3646_v33  ;;  %v1163_v11 = vadd.f32 %v3648_v10, %v3622_v60  ;;  %v1407_v29 = vld [vmem:[%s3403_s30 + $0x1a8] sm:$0xff]  ;;  %v3772_v32 = vpop.permute.xlu1 %716 }
 0x22e   : > { %v3755_v7 = vmul.f32 %v1488_v57, %v1488_v57  ;;  %v1292_v24 = vadd.f32 %v3488_v23, %v894_v59  ;;  %v3765_v22 = vmul.f32 %v1483_v41, %v1483_v41  ;;  %v3767_v16 = vmul.f32 %v1497_v15, %v1497_v15  ;;  %4411 = vst [vmem:[#allocation32_spill] sm:$0xff] %v3772_v32  ;;  %v1390_v59 = vld [vmem:[%s3403_s30 + $0x120] sm:$0xff] }
 0x22f   : > { %v1937_v14 = vadd.f32 %v1905_v44, %v1761_v36  ;;  %v1302_v45 = vadd.f32 %v3492_v28, %v1153_v4  ;;  %v903_v27 = vpop.f32.mrb[26].mxu0  ;;  %v1311_v40 = vadd.f32 %v3492_v28, %v1168_v1  ;;  %v1308_v10 = vadd.f32 %v3492_v28, %v1163_v11  ;;  %v3780_v57 = vpop.f32.mrb[26].mxu1 }
 0x230   : > { %v1484_v17 = vsub.f32 %v1388_v31, %v1292_v24  ;;  %v898_v49 = vadd.f32 %v897_v56, %v3561_v18  ;;  %v3778_v47 = vpop.f32.mrb[27].mxu0  ;;  %v1178_v41 = vadd.f32 %v3665_v55, %v3685_v25  ;;  %v1762_v15 = vmul.f32 %v1666_v12, %v3676_v6  ;;  %v3787_v31 = vpop.permute.xlu0 %721 }
 0x231   : > { %2043 = vadd.xlane.f32.xlu0 %v1937_v14  ;;  %v1494_v36 = vsub.f32 %v1398_v9, %v1302_v45  ;;  %v1763_v44 = vmul.f32 %v1667_v13, %v3681_v8  ;;  %v3789_v4 = vpop.f32.mrb[27].mxu1  ;;  %v1503_v24 = vsub.f32 %v1407_v29, %v1311_v40  ;;  %v1500_v1 = vsub.f32 %v1404_v43, %v1308_v10  ;;  %v1413_v9 = vld [vmem:[%s3403_s30 + $0x1d8] sm:$0xff] }
 0x232   : > { %v3791_v56 = vmul.f32 %v1484_v17, %v1484_v17  ;;  %v1294_v11 = vadd.f32 %v3486_v21, %v898_v49  ;;  %v1317_v55 = vadd.f32 %v3492_v28, %v1178_v41  ;;  %v1764_v6 = vmul.f32 %v1668_v38, %v3667_v63  ;;  %v1391_v63 = vld [vmem:[%s3403_s30 + $0x128] sm:$0xff]  ;;  %v1669_v41 = vld [vmem:[%s3514_s27 + $0xd8] sm:$0xff] }
 0x233   : > { %v3795_v14 = vmul.f32 %v1494_v36, %v1494_v36  ;;  %v1906_v8 = vadd.f32 %v1763_v44, %v1762_v15  ;;  %v3799_v12 = vpop.f32.mrb[28].mxu0  ;;  %v3801_v13 = vmul.f32 %v1503_v24, %v1503_v24  ;;  %v3803_v45 = vmul.f32 %v1500_v1, %v1500_v1  ;;  %v3808_v40 = vpop.f32.mrb[28].mxu1  ;;  %v1410_v15 = vld [vmem:[%s3403_s30 + $0x1c0] sm:$0xff]  ;;  %v1419_v44 = vld [vmem:[%s3403_s30 + $0x208] sm:$0xff] }
 0x234   : > { %v1486_v29 = vsub.f32 %v1390_v59, %v1294_v11  ;;  %v900_v43 = vadd.f32 %v899_v37, %v3561_v18  ;;  %v3806_v17 = vpop.f32.mrb[29].mxu0  ;;  %v1509_v10 = vsub.f32 %v1413_v9, %v1317_v55  ;;  %v1173_v38 = vadd.f32 %v3674_v5, %v3658_v50  ;;  %v3816_v59 = vpop.f32.mrb[29].mxu1  ;;  %v1670_v1 = vld [vmem:[%s3514_s27 + $0xe0] sm:$0xff] }
 0x235   : > { %4412 = vst [vmem:[#allocation33_spill] sm:$0xff] %v3801_v13  ;;  %4413 = vst [vmem:[#allocation34_spill] sm:$0xff] %v3803_v45  ;;  %v1938_v49 = vadd.f32 %v1906_v8, %v1764_v6  ;;  %v1188_v36 = vadd.f32 %v3691_v39, %v3726_v3  ;;  %v1183_v24 = vadd.f32 %v3698_v48, %v3694_v52  ;;  %v3827_v11 = vpop.permute.xlu1 %726  ;;  %v1416_v6 = vld [vmem:[%s3403_s30 + $0x1f0] sm:$0xff]  ;;  %v1393_v8 = vld [vmem:[%s3403_s30 + $0x138] sm:$0xff]  ;;  %v3838_v48 = vpop.permute.xlu0 %731 }
 0x236   : > { %v3818_v18 = vmul.f32 %v1486_v29, %v1486_v29  ;;  %v1295_v37 = vadd.f32 %v3488_v23, %v900_v43  ;;  %v904_v5 = vadd.f32 %v903_v27, %v3581_v53  ;;  %v3829_v39 = vmul.f32 %v1509_v10, %v1509_v10  ;;  %v1671_v43 = vld [vmem:[%s3514_s27 + $0xe8] sm:$0xff] }
 0x237   : > { %2045 = vadd.xlane.f32.xlu1 %v1938_v49  ;;  %v1314_v9 = vadd.f32 %v3492_v28, %v1173_v38  ;;  %v1323_v55 = vadd.f32 %v3492_v28, %v1188_v36  ;;  %v1198_v29 = vadd.f32 %v3718_v35, %v3772_v32  ;;  %v3840_v27 = vpop.f32.mrb[30].mxu0  ;;  %v1320_v3 = vadd.f32 %v3492_v28, %v1183_v24  ;;  %v1425_v49 = vld [vmem:[%s3403_s30 + $0x238] sm:$0xff]  ;;  %v3846_v36 = vpop.f32.mrb[30].mxu1 }
 0x238   : > { %4414 = vst [vmem:[#allocation35_spill] sm:$0xff] %v3829_v39  ;;  %v1487_v13 = vsub.f32 %v1391_v63, %v1295_v37  ;;  %v1297_v10 = vadd.f32 %v3486_v21, %v904_v5  ;;  %v1765_v38 = vmul.f32 %v1669_v41, %v3700_v46  ;;  %v3848_v39 = vpop.f32.mrb[31].mxu0  ;;  %v1766_v52 = vmul.f32 %v1670_v1, %v3708_v20  ;;  %v3852_v63 = vpop.f32.mrb[31].mxu1 }
 0x239   : > { %v1506_v45 = vsub.f32 %v1410_v15, %v1314_v9  ;;  %v1515_v35 = vsub.f32 %v1419_v44, %v1323_v55  ;;  %v1329_v32 = vadd.f32 %v3492_v28, %v1198_v29  ;;  %v1512_v24 = vsub.f32 %v1416_v6, %v1320_v3  ;;  %v1672_v55 = vld [vmem:[%s3514_s27 + $0xf0] sm:$0xff]  ;;  %v1674_v6 = vld [vmem:[%s3514_s27 + $0x100] sm:$0xff] }
 0x23a   : > { %v3854_v37 = vmul.f32 %v1487_v13, %v1487_v13  ;;  %v1489_v5 = vsub.f32 %v1393_v8, %v1297_v10  ;;  %v1767_v46 = vmul.f32 %v1671_v43, %v3661_v58  ;;  %v1907_v9 = vadd.f32 %v1766_v52, %v1765_v38  ;;  %v1394_v29 = vld [vmem:[%s3403_s30 + $0x140] sm:$0xff]  ;;  %v1431_v38 = vld [vmem:[%s3403_s30 + $0x268] sm:$0xff] }
 0x23b   : > { %v3857_v41 = vmul.f32 %v1506_v45, %v1506_v45  ;;  %v3859_v15 = vmul.f32 %v1515_v35, %v1515_v35  ;;  %v1521_v44 = vsub.f32 %v1425_v49, %v1329_v32  ;;  %v3862_v20 = vpop.f32.mrb[32].mxu0  ;;  %v3864_v1 = vmul.f32 %v1512_v24, %v1512_v24  ;;  %v1673_v45 = vld [vmem:[%s3514_s27 + $0xf8] sm:$0xff]  ;;  %v1422_v43 = vld [vmem:[%s3403_s30 + $0x220] sm:$0xff]  ;;  %v1428_v35 = vld [vmem:[%s3403_s30 + $0x250] sm:$0xff] }
 0x23c   : > { %v3866_v13 = vmul.f32 %v1489_v5, %v1489_v5  ;;  %v906_v58 = vadd.f32 %v3778_v47, %v3581_v53  ;;  %v1193_v3 = vadd.f32 %v3728_v26, %v3742_v34  ;;  %v3874_v8 = vpop.f32.mrb[33].mxu0  ;;  %v1939_v32 = vadd.f32 %v1907_v9, %v1767_v46  ;;  %v3884_v53 = vpop.permute.xlu1 %736 }
 0x23d   : > { %4415 = vst [vmem:[#allocation36_spill] sm:$0xff] %v3859_v15  ;;  %v3876_v52 = vmul.f32 %v1521_v44, %v1521_v44  ;;  %v1208_v10 = vadd.f32 %v3748_v62, %v3827_v11  ;;  %v1203_v49 = vadd.f32 %v3753_v51, %v3787_v31  ;;  %v910_v24 = vadd.f32 %v3799_v12, %v3594_v2  ;;  %v3893_v46 = vpop.permute.xlu0 %741  ;;  %v1396_v44 = vld [vmem:[%s3403_s30 + $0x150] sm:$0xff] }
 0x23e   : > { %v1298_v26 = vadd.f32 %v3488_v23, %v906_v58  ;;  %v1326_v47 = vadd.f32 %v3492_v28, %v1193_v3  ;;  %v1768_v5 = vmul.f32 %v1672_v55, %v3730_v30  ;;  %2047 = vadd.xlane.f32.xlu0 %v1939_v32  ;;  %v1769_v9 = vmul.f32 %v1673_v45, %v3737_v0  ;;  %v1675_v0 = vld [vmem:[%s3514_s27 + $0x108] sm:$0xff] }
 0x23f   : > { %4416 = vst [vmem:[#allocation37_spill] sm:$0xff] %v3876_v52  ;;  %v1335_v62 = vadd.f32 %v3492_v28, %v1208_v10  ;;  %v1332_v51 = vadd.f32 %v3492_v28, %v1203_v49  ;;  %v1770_v58 = vmul.f32 %v1674_v6, %v3732_v19  ;;  %v3900_v3 = vpop.f32.mrb[34].mxu0  ;;  %v1300_v55 = vadd.f32 %v3486_v21, %v910_v24 }
 0x240   : > { %v1490_v12 = vsub.f32 %v1394_v29, %v1298_v26  ;;  %v1518_v30 = vsub.f32 %v1422_v43, %v1326_v47  ;;  %v1218_v32 = vadd.f32 %v3780_v57, %v3884_v53  ;;  %v3905_v10 = vpop.f32.mrb[35].mxu0  ;;  %v1908_v15 = vadd.f32 %v1769_v9, %v1768_v5  ;;  %v1397_v26 = vld [vmem:[%s3403_s30 + $0x158] sm:$0xff]  ;;  %v1676_v47 = vld [vmem:[%s3514_s27 + $0x110] sm:$0xff]  ;;  %v3925_v24 = vpop.permute.xlu1 %746 }
 0x241   : > { %v1527_v49 = vsub.f32 %v1431_v38, %v1335_v62  ;;  %v1524_v52 = vsub.f32 %v1428_v35, %v1332_v51  ;;  %v912_v19 = vadd.f32 %v3806_v17, %v3594_v2  ;;  %v1492_v29 = vsub.f32 %v1396_v44, %v1300_v55  ;;  %v1677_v57 = vld [vmem:[%s3514_s27 + $0x118] sm:$0xff]  ;;  %v1399_v55 = vld [vmem:[%s3403_s30 + $0x168] sm:$0xff] }
 0x242   : > { %v3910_v45 = vmul.f32 %v1490_v12, %v1490_v12  ;;  %v3912_v6 = vmul.f32 %v1518_v30, %v1518_v30  ;;  %v3915_v43 = vadd.f32 %v3492_v28, %v1218_v32  ;;  %v1940_v2 = vadd.f32 %v1908_v15, %v1770_v58  ;;  %v1434_v12 = vld [vmem:[%s3403_s30 + $0x280] sm:$0xff]  ;;  %v1440_v30 = vld [vmem:[%s3403_s30 + $0x2b0] sm:$0xff] }
 0x243   : > { %v3920_v38 = vmul.f32 %v1527_v49, %v1527_v49  ;;  %v3922_v35 = vmul.f32 %v1524_v52, %v1524_v52  ;;  %v1301_v17 = vadd.f32 %v3488_v23, %v912_v19  ;;  %v3927_v5 = vpop.f32.mrb[36].mxu0  ;;  %v3929_v62 = vmul.f32 %v1492_v29, %v1492_v29  ;;  %v3937_v52 = vpop.permute.xlu0 %751 }
 0x244   : > { %v1213_v51 = vadd.f32 %v3789_v4, %v3838_v48  ;;  %v1223_v44 = vadd.f32 %v3816_v59, %v3893_v46  ;;  %v916_v9 = vadd.f32 %v3840_v27, %v3613_v42  ;;  %v3939_v15 = vpop.f32.mrb[37].mxu0  ;;  %2049 = vadd.xlane.f32.xlu1 %v1940_v2  ;;  %v1771_v32 = vmul.f32 %v1675_v0, %v3765_v22 }
 0x245   : > { %v1493_v58 = vsub.f32 %v1397_v26, %v1301_v17  ;;  %v1772_v4 = vmul.f32 %v1676_v47, %v3791_v56  ;;  %v1773_v59 = vmul.f32 %v1677_v57, %v3710_v61  ;;  %v1228_v29 = vadd.f32 %v3808_v40, %v3925_v24  ;;  %v1678_v56 = vld [vmem:[%s3514_s27 + $0x120] sm:$0xff]  ;;  %v1400_v40 = vld [vmem:[%s3403_s30 + $0x170] sm:$0xff] }
 0x246   : > { %v1338_v27 = vadd.f32 %v3492_v28, %v1213_v51  ;;  %v1344_v49 = vadd.f32 %v3492_v28, %v1223_v44  ;;  %v1303_v19 = vadd.f32 %v3486_v21, %v916_v9  ;;  %v918_v22 = vadd.f32 %v3848_v39, %v3613_v42  ;;  %v1446_v44 = vld [vmem:[%s3403_s30 + $0x2e0] sm:$0xff]  ;;  %v1679_v9 = vld [vmem:[%s3514_s27 + $0x128] sm:$0xff] }
 0x247   : > { %v3952_v26 = vmul.f32 %v1493_v58, %v1493_v58  ;;  %v1909_v2 = vadd.f32 %v1772_v4, %v1771_v32  ;;  %v1233_v61 = vadd.f32 %v3852_v63, %v3937_v52  ;;  %v3959_v0 = vpop.f32.mrb[38].mxu0  ;;  %v3962_v51 = vadd.f32 %v3492_v28, %v1228_v29  ;;  %v3974_v32 = vpop.permute.xlu1 %756 }
 0x248   : > { %v1530_v47 = vsub.f32 %v1434_v12, %v1338_v27  ;;  %v1536_v57 = vsub.f32 %v1440_v30, %v1344_v49  ;;  %v1495_v17 = vsub.f32 %v1399_v55, %v1303_v19  ;;  %v3967_v58 = vpop.f32.mrb[39].mxu0  ;;  %v1304_v39 = vadd.f32 %v3488_v23, %v918_v22  ;;  %v1680_v30 = vld [vmem:[%s3514_s27 + $0x130] sm:$0xff]  ;;  %v1681_v22 = vld [vmem:[%s3514_s27 + $0x138] sm:$0xff] }
 0x249   : > { %v1941_v42 = vadd.f32 %v1909_v2, %v1773_v59  ;;  %v1350_v63 = vadd.f32 %v3492_v28, %v1233_v61  ;;  %v922_v12 = vadd.f32 %v3862_v20, %v3622_v60  ;;  %v1402_v59 = vld [vmem:[%s3403_s30 + $0x180] sm:$0xff]  ;;  %v1774_v49 = vmul.f32 %v1678_v56, %v3818_v18 }
 0x24a   : > { %v3976_v55 = vmul.f32 %v1530_v47, %v1530_v47  ;;  %v3978_v4 = vmul.f32 %v1536_v57, %v1536_v57  ;;  %v3980_v27 = vmul.f32 %v1495_v17, %v1495_v17  ;;  %v1496_v19 = vsub.f32 %v1400_v40, %v1304_v39  ;;  %v1682_v17 = vld [vmem:[%s3514_s27 + $0x140] sm:$0xff]  ;;  %v1683_v40 = vld [vmem:[%s3514_s27 + $0x148] sm:$0xff] }
 0x24b   : > { %2051 = vadd.xlane.f32.xlu0 %v1941_v42  ;;  %v1542_v29 = vsub.f32 %v1446_v44, %v1350_v63  ;;  %v1306_v20 = vadd.f32 %v3486_v21, %v922_v12  ;;  %v1775_v2 = vmul.f32 %v1679_v9, %v3854_v37  ;;  %v3987_v61 = vpop.f32.mrb[40].mxu0  ;;  %v1776_v47 = vmul.f32 %v1680_v30, %v3755_v7  ;;  %v1403_v39 = vld [vmem:[%s3403_s30 + $0x188] sm:$0xff]  ;;  %v1684_v12 = vld [vmem:[%s3514_s27 + $0x150] sm:$0xff]  ;;  %v1685_v30 = vld [vmem:[%s3514_s27 + $0x158] sm:$0xff] }
 0x24c   : > { %v1238_v57 = vadd.f32 %v3846_v36, %v3974_v32  ;;  %v924_v18 = vadd.f32 %v3874_v8, %v3622_v60  ;;  %v928_v56 = vadd.f32 %v3900_v3, %v3646_v33  ;;  %v3998_v37 = vpop.f32.mrb[41].mxu0  ;;  %v1592_v44 = vmul.f32 %v1496_v19, %v1496_v19  ;;  %v1405_v36 = vld [vmem:[%s3403_s30 + $0x198] sm:$0xff]  ;;  %v1686_v19 = vld [vmem:[%s3514_s27 + $0x160] sm:$0xff] }
 0x24d   : > { %v4000_v9 = vmul.f32 %v1542_v29, %v1542_v29  ;;  %v1498_v7 = vsub.f32 %v1402_v59, %v1306_v20  ;;  %v1910_v42 = vadd.f32 %v1775_v2, %v1774_v49  ;;  %v1777_v3 = vmul.f32 %v1681_v22, %v3866_v13  ;;  %v1406_v13 = vld [vmem:[%s3403_s30 + $0x1a0] sm:$0xff] }
 0x24e   : > { %v4005_v63 = vadd.f32 %v3492_v28, %v1238_v57  ;;  %v1307_v60 = vadd.f32 %v3488_v23, %v924_v18  ;;  %v1309_v8 = vadd.f32 %v3486_v21, %v928_v56  ;;  %v1778_v59 = vmul.f32 %v1682_v17, %v3910_v45  ;;  %v1408_v45 = vld [vmem:[%s3403_s30 + $0x1b0] sm:$0xff] }
 0x24f   : > { %4417 = vst [vmem:[#allocation38_spill] sm:$0xff] %v4000_v9  ;;  %v1594_v29 = vmul.f32 %v1498_v7, %v1498_v7  ;;  %v1942_v9 = vadd.f32 %v1910_v42, %v1776_v47  ;;  %v1779_v49 = vmul.f32 %v1683_v40, %v3744_v54  ;;  %v4015_v28 = vpop.f32.mrb[42].mxu0  ;;  %v930_v57 = vadd.f32 %v3905_v10, %v3646_v33  ;;  %v1687_v40 = vld [vmem:[%s3514_s27 + $0x168] sm:$0xff]  ;;  %v1688_v33 = vld [vmem:[%s3514_s27 + $0x170] sm:$0xff] }
 0x250   : > { %v1499_v20 = vsub.f32 %v1403_v39, %v1307_v60  ;;  %v1501_v2 = vsub.f32 %v1405_v36, %v1309_v8  ;;  %v934_v22 = vadd.f32 %v3927_v5, %v3658_v50  ;;  %v4022_v18 = vpop.f32.mrb[43].mxu0  ;;  %v1911_v47 = vadd.f32 %v1778_v59, %v1777_v3  ;;  %v1409_v3 = vld [vmem:[%s3403_s30 + $0x1b8] sm:$0xff]  ;;  %v1690_v59 = vld [vmem:[%s3514_s27 + $0x180] sm:$0xff] }
 0x251   : > { %2053 = vadd.xlane.f32.xlu1 %v1942_v9  ;;  %v1780_v56 = vmul.f32 %v1684_v12, %v3929_v62  ;;  %v1781_v54 = vmul.f32 %v1685_v30, %v3952_v26  ;;  %v1782_v17 = vmul.f32 %v1686_v19, %v3795_v14  ;;  %v1310_v5 = vadd.f32 %v3488_v23, %v930_v57  ;;  %v1689_v9 = vld [vmem:[%s3514_s27 + $0x178] sm:$0xff]  ;;  %v1411_v12 = vld [vmem:[%s3403_s30 + $0x1c8] sm:$0xff]  ;;  %v1692_v57 = vld [vmem:[%s3514_s27 + $0x190] sm:$0xff] }
 0x252   : > { %v1595_v10 = vmul.f32 %v1499_v20, %v1499_v20  ;;  %v1597_v7 = vmul.f32 %v1501_v2, %v1501_v2  ;;  %v1312_v42 = vadd.f32 %v3486_v21, %v934_v22  ;;  %v1943_v39 = vadd.f32 %v1911_v47, %v1779_v49  ;;  %v1691_v2 = vld [vmem:[%s3514_s27 + $0x188] sm:$0xff] }
 0x253   : > { %v1912_v36 = vadd.f32 %v1781_v54, %v1780_v56  ;;  %v936_v62 = vadd.f32 %v3939_v15, %v3658_v50  ;;  %v940_v14 = vadd.f32 %v3959_v0, %v3685_v25  ;;  %v4037_v26 = vpop.f32.mrb[44].mxu0  ;;  %v1502_v60 = vsub.f32 %v1406_v13, %v1310_v5  ;;  %v1412_v56 = vld [vmem:[%s3403_s30 + $0x1d0] sm:$0xff]  ;;  %v4418_v54 = vld [vmem:[#allocation30_spill] sm:$0xff] }
 0x254   : > { %v1504_v8 = vsub.f32 %v1408_v45, %v1312_v42  ;;  %v1783_v30 = vmul.f32 %v1687_v40, %v3980_v27  ;;  %v1784_v19 = vmul.f32 %v1688_v33, %v1592_v44  ;;  %v4043_v49 = vpop.f32.mrb[45].mxu0  ;;  %2055 = vadd.xlane.f32.xlu0 %v1943_v39  ;;  %v1785_v20 = vmul.f32 %v1689_v9, %v3767_v16  ;;  %v1693_v16 = vld [vmem:[%s3514_s27 + $0x198] sm:$0xff]  ;;  %v1414_v9 = vld [vmem:[%s3403_s30 + $0x1e0] sm:$0xff] }
 0x255   : > { %v1944_v50 = vadd.f32 %v1912_v36, %v1782_v17  ;;  %v1313_v15 = vadd.f32 %v3488_v23, %v936_v62  ;;  %v1315_v0 = vadd.f32 %v3486_v21, %v940_v14  ;;  %v1598_v13 = vmul.f32 %v1502_v60, %v1502_v60  ;;  %v4419_v36 = vld [vmem:[#allocation34_spill] sm:$0xff] }
 0x256   : > { %v1600_v22 = vmul.f32 %v1504_v8, %v1504_v8  ;;  %v1913_v27 = vadd.f32 %v1784_v19, %v1783_v30  ;;  %v942_v44 = vadd.f32 %v3967_v58, %v3685_v25  ;;  %v946_v17 = vadd.f32 %v3987_v61, %v4418_v54  ;;  %v1694_v25 = vld [vmem:[%s3514_s27 + $0x1a0] sm:$0xff]  ;;  %v1695_v58 = vld [vmem:[%s3514_s27 + $0x1a8] sm:$0xff] }
 0x257   : > { %2057 = vadd.xlane.f32.xlu1 %v1944_v50  ;;  %v1505_v47 = vsub.f32 %v1409_v3, %v1313_v15  ;;  %v1507_v45 = vsub.f32 %v1411_v12, %v1315_v0  ;;  %v1786_v40 = vmul.f32 %v1690_v59, %v1594_v29  ;;  %v963_v33 = vpop.f32.mrb[46].mxu0  ;;  %v1787_v39 = vmul.f32 %v1691_v2, %v1595_v10  ;;  %v1415_v10 = vld [vmem:[%s3403_s30 + $0x1e8] sm:$0xff]  ;;  %v1417_v0 = vld [vmem:[%s3403_s30 + $0x1f8] sm:$0xff] }
 0x258   : > { %v1945_v5 = vadd.f32 %v1913_v27, %v1785_v20  ;;  %v1316_v42 = vadd.f32 %v3488_v23, %v942_v44  ;;  %v1788_v62 = vmul.f32 %v1692_v57, %v4419_v36  ;;  %v4061_v14 = vpop.f32.mrb[47].mxu0  ;;  %v1318_v29 = vadd.f32 %v3486_v21, %v946_v17  ;;  %v4420_v30 = vld [vmem:[#allocation31_spill] sm:$0xff]  ;;  %v4421_v2 = vld [vmem:[#allocation33_spill] sm:$0xff]  ;;  %v1696_v27 = vld [vmem:[%s3514_s27 + $0x1b0] sm:$0xff] }
 0x259   : > { %v1601_v60 = vmul.f32 %v1505_v47, %v1505_v47  ;;  %v1603_v61 = vmul.f32 %v1507_v45, %v1507_v45  ;;  %v948_v8 = vadd.f32 %v3998_v37, %v4418_v54  ;;  %v1914_v12 = vadd.f32 %v1787_v39, %v1786_v40  ;;  %v1697_v44 = vld [vmem:[%s3514_s27 + $0x1b8] sm:$0xff]  ;;  %v1420_v39 = vld [vmem:[%s3403_s30 + $0x210] sm:$0xff] }
 0x25a   : > { %2059 = vadd.xlane.f32.xlu0 %v1945_v5  ;;  %v1508_v3 = vsub.f32 %v1412_v56, %v1316_v42  ;;  %v952_v19 = vadd.f32 %v4015_v28, %v4420_v30  ;;  %v1789_v59 = vmul.f32 %v1693_v16, %v1597_v7  ;;  %v1510_v50 = vsub.f32 %v1414_v9, %v1318_v29  ;;  %v1698_v7 = vld [vmem:[%s3514_s27 + $0x1c0] sm:$0xff] }
 0x25b   : > { %v1319_v15 = vadd.f32 %v3488_v23, %v948_v8  ;;  %v1790_v20 = vmul.f32 %v1694_v25, %v1598_v13  ;;  %v1791_v57 = vmul.f32 %v1695_v58, %v4421_v2  ;;  %v969_v37 = vpop.f32.mrb[48].mxu0  ;;  %v1946_v45 = vadd.f32 %v1914_v12, %v1788_v62  ;;  %v1418_v16 = vld [vmem:[%s3403_s30 + $0x200] sm:$0xff]  ;;  %v1699_v25 = vld [vmem:[%s3514_s27 + $0x1c8] sm:$0xff]  ;;  %v1701_v12 = vld [vmem:[%s3514_s27 + $0x1d8] sm:$0xff] }
 0x25c   : > { %v1604_v47 = vmul.f32 %v1508_v3, %v1508_v3  ;;  %v1321_v56 = vadd.f32 %v3486_v21, %v952_v19  ;;  %v954_v28 = vadd.f32 %v4022_v18, %v4420_v30  ;;  %v971_v54 = vpop.f32.mrb[49].mxu0  ;;  %v1606_v17 = vmul.f32 %v1510_v50, %v1510_v50  ;;  %v1700_v18 = vld [vmem:[%s3514_s27 + $0x1d0] sm:$0xff]  ;;  %v1421_v50 = vld [vmem:[%s3403_s30 + $0x218] sm:$0xff] }
 0x25d   : > { %v1511_v40 = vsub.f32 %v1415_v10, %v1319_v15  ;;  %v1915_v13 = vadd.f32 %v1790_v20, %v1789_v59  ;;  %v958_v5 = vadd.f32 %v4037_v26, %v3742_v34  ;;  %2061 = vadd.xlane.f32.xlu1 %v1946_v45  ;;  %v1792_v36 = vmul.f32 %v1696_v27, %v1600_v22  ;;  %v4422_v15 = vld [vmem:[#allocation32_spill] sm:$0xff] }
 0x25e   : > { %v1513_v42 = vsub.f32 %v1417_v0, %v1321_v56  ;;  %v1322_v9 = vadd.f32 %v3488_v23, %v954_v28  ;;  %v1793_v62 = vmul.f32 %v1697_v44, %v1601_v60  ;;  %v1794_v3 = vmul.f32 %v1698_v7, %v3857_v41  ;;  %v1702_v41 = vld [vmem:[%s3514_s27 + $0x1e0] sm:$0xff]  ;;  %v1423_v56 = vld [vmem:[%s3403_s30 + $0x228] sm:$0xff] }
 0x25f   : > { %v1607_v58 = vmul.f32 %v1511_v40, %v1511_v40  ;;  %v1947_v29 = vadd.f32 %v1915_v13, %v1791_v57  ;;  %v1324_v8 = vadd.f32 %v3486_v21, %v958_v5  ;;  %v975_v26 = vpop.f32.mrb[50].mxu0  ;;  %v960_v22 = vadd.f32 %v4043_v49, %v3742_v34  ;;  %v1703_v57 = vld [vmem:[%s3514_s27 + $0x1e8] sm:$0xff]  ;;  %v1704_v34 = vld [vmem:[%s3514_s27 + $0x1f0] sm:$0xff] }
 0x260   : > { %v1609_v10 = vmul.f32 %v1513_v42, %v1513_v42  ;;  %v1514_v30 = vsub.f32 %v1418_v16, %v1322_v9  ;;  %v1916_v19 = vadd.f32 %v1793_v62, %v1792_v36  ;;  %v977_v60 = vpop.f32.mrb[51].mxu0  ;;  %v964_v0 = vadd.f32 %v963_v33, %v4422_v15  ;;  %v4423_v28 = vld [vmem:[#allocation35_spill] sm:$0xff]  ;;  %v1424_v16 = vld [vmem:[%s3403_s30 + $0x230] sm:$0xff] }
 0x261   : > { %2063 = vadd.xlane.f32.xlu0 %v1947_v29  ;;  %v1516_v59 = vsub.f32 %v1420_v39, %v1324_v8  ;;  %v1795_v20 = vmul.f32 %v1699_v25, %v1603_v61  ;;  %v1796_v2 = vmul.f32 %v1700_v18, %v1604_v47  ;;  %v1325_v45 = vadd.f32 %v3488_v23, %v960_v22  ;;  %v1705_v39 = vld [vmem:[%s3514_s27 + $0x1f8] sm:$0xff]  ;;  %v1426_v29 = vld [vmem:[%s3403_s30 + $0x240] sm:$0xff]  ;;  %v1427_v22 = vld [vmem:[%s3403_s30 + $0x248] sm:$0xff] }
 0x262   : > { %v1610_v27 = vmul.f32 %v1514_v30, %v1514_v30  ;;  %v1948_v44 = vadd.f32 %v1916_v19, %v1794_v3  ;;  %v1797_v7 = vmul.f32 %v1701_v12, %v4423_v28  ;;  %v1327_v40 = vadd.f32 %v3486_v21, %v964_v0  ;;  %v1710_v28 = vld [vmem:[%s3514_s27 + $0x220] sm:$0xff] }
 0x263   : > { %v1612_v49 = vmul.f32 %v1516_v59, %v1516_v59  ;;  %v1917_v13 = vadd.f32 %v1796_v2, %v1795_v20  ;;  %v966_v33 = vadd.f32 %v4061_v14, %v4422_v15  ;;  %v981_v61 = vpop.f32.mrb[52].mxu0  ;;  %v1517_v47 = vsub.f32 %v1421_v50, %v1325_v45  ;;  %v1706_v14 = vld [vmem:[%s3514_s27 + $0x200] sm:$0xff]  ;;  %v1429_v2 = vld [vmem:[%s3403_s30 + $0x258] sm:$0xff] }
 0x264   : > { %2065 = vadd.xlane.f32.xlu1 %v1948_v44  ;;  %v970_v5 = vadd.f32 %v969_v37, %v3787_v31  ;;  %v1798_v42 = vmul.f32 %v1702_v41, %v1606_v17  ;;  %v1799_v9 = vmul.f32 %v1703_v57, %v1607_v58  ;;  %v983_v36 = vpop.f32.mrb[53].mxu0  ;;  %v1519_v62 = vsub.f32 %v1423_v56, %v1327_v40  ;;  %v1707_v17 = vld [vmem:[%s3514_s27 + $0x208] sm:$0xff]  ;;  %v1708_v57 = vld [vmem:[%s3514_s27 + $0x210] sm:$0xff] }
 0x265   : > { %v1949_v25 = vadd.f32 %v1917_v13, %v1797_v7  ;;  %v1328_v18 = vadd.f32 %v3488_v23, %v966_v33  ;;  %v1800_v8 = vmul.f32 %v1704_v34, %v3864_v1  ;;  %v1613_v3 = vmul.f32 %v1517_v47, %v1517_v47  ;;  %v4424_v56 = vld [vmem:[#allocation36_spill] sm:$0xff] }
 0x266   : > { %v1330_v12 = vadd.f32 %v3486_v21, %v970_v5  ;;  %v1918_v30 = vadd.f32 %v1799_v9, %v1798_v42  ;;  %v972_v37 = vadd.f32 %v971_v54, %v3787_v31  ;;  %v1615_v58 = vmul.f32 %v1519_v62, %v1519_v62  ;;  %v1709_v31 = vld [vmem:[%s3514_s27 + $0x218] sm:$0xff]  ;;  %v1711_v9 = vld [vmem:[%s3514_s27 + $0x228] sm:$0xff] }
 0x267   : > { %2067 = vadd.xlane.f32.xlu0 %v1949_v25  ;;  %v1520_v19 = vsub.f32 %v1424_v16, %v1328_v18  ;;  %v976_v59 = vadd.f32 %v975_v26, %v3827_v11  ;;  %v1801_v50 = vmul.f32 %v1705_v39, %v1609_v10  ;;  %v987_v1 = vpop.f32.mrb[54].mxu0  ;;  %v1802_v41 = vmul.f32 %v1706_v14, %v1610_v27  ;;  %v1430_v27 = vld [vmem:[%s3403_s30 + $0x260] sm:$0xff]  ;;  %v1432_v16 = vld [vmem:[%s3403_s30 + $0x270] sm:$0xff] }
 0x268   : > { %v1522_v15 = vsub.f32 %v1426_v29, %v1330_v12  ;;  %v1950_v0 = vadd.f32 %v1918_v30, %v1800_v8  ;;  %v1331_v20 = vadd.f32 %v3488_v23, %v972_v37  ;;  %v989_v54 = vpop.f32.mrb[55].mxu0  ;;  %v1803_v26 = vmul.f32 %v1707_v17, %v4424_v56  ;;  %v1712_v39 = vld [vmem:[%s3514_s27 + $0x230] sm:$0xff]  ;;  %v1713_v29 = vld [vmem:[%s3514_s27 + $0x238] sm:$0xff] }
 0x269   : > { %v1616_v44 = vmul.f32 %v1520_v19, %v1520_v19  ;;  %v1333_v45 = vadd.f32 %v3486_v21, %v976_v59  ;;  %v978_v10 = vadd.f32 %v977_v60, %v3827_v11  ;;  %v1919_v40 = vadd.f32 %v1802_v41, %v1801_v50  ;;  %v1433_v30 = vld [vmem:[%s3403_s30 + $0x278] sm:$0xff]  ;;  %v1715_v59 = vld [vmem:[%s3514_s27 + $0x248] sm:$0xff]  ;;  %v1716_v41 = vld [vmem:[%s3514_s27 + $0x250] sm:$0xff] }
 0x26a   : > { %v1618_v7 = vmul.f32 %v1522_v15, %v1522_v15  ;;  %2069 = vadd.xlane.f32.xlu1 %v1950_v0  ;;  %v1523_v34 = vsub.f32 %v1427_v22, %v1331_v20  ;;  %v982_v13 = vadd.f32 %v981_v61, %v3838_v48  ;;  %v1804_v5 = vmul.f32 %v1708_v57, %v1612_v49  ;;  %v1714_v22 = vld [vmem:[%s3514_s27 + $0x240] sm:$0xff]  ;;  %v1435_v0 = vld [vmem:[%s3403_s30 + $0x288] sm:$0xff]  ;;  %v4425_v20 = vld [vmem:[#allocation37_spill] sm:$0xff] }
 0x26b   : > { %v1525_v33 = vsub.f32 %v1429_v2, %v1333_v45  ;;  %v1334_v47 = vadd.f32 %v3488_v23, %v978_v10  ;;  %v1805_v42 = vmul.f32 %v1709_v31, %v1613_v3  ;;  %v993_v62 = vpop.f32.mrb[56].mxu0  ;;  %v1951_v60 = vadd.f32 %v1919_v40, %v1803_v26  ;;  %v1436_v45 = vld [vmem:[%s3403_s30 + $0x290] sm:$0xff] }
 0x26c   : > { %v1619_v11 = vmul.f32 %v1523_v34, %v1523_v34  ;;  %v1336_v25 = vadd.f32 %v3486_v21, %v982_v13  ;;  %v1806_v18 = vmul.f32 %v1710_v28, %v3912_v6  ;;  %v995_v61 = vpop.f32.mrb[57].mxu0  ;;  %v984_v3 = vadd.f32 %v983_v36, %v3838_v48  ;;  %v1717_v28 = vld [vmem:[%s3514_s27 + $0x258] sm:$0xff]  ;;  %v1438_v13 = vld [vmem:[%s3403_s30 + $0x2a0] sm:$0xff] }
 0x26d   : > { %v1621_v8 = vmul.f32 %v1525_v33, %v1525_v33  ;;  %v1526_v14 = vsub.f32 %v1430_v27, %v1334_v47  ;;  %v1920_v49 = vadd.f32 %v1805_v42, %v1804_v5  ;;  %2071 = vadd.xlane.f32.xlu0 %v1951_v60  ;;  %v988_v37 = vadd.f32 %v987_v1, %v3884_v53  ;;  %v1718_v47 = vld [vmem:[%s3514_s27 + $0x260] sm:$0xff] }
 0x26e   : > { %v1528_v12 = vsub.f32 %v1432_v16, %v1336_v25  ;;  %v1807_v17 = vmul.f32 %v1711_v9, %v1615_v58  ;;  %v1808_v19 = vmul.f32 %v1712_v39, %v1616_v44  ;;  %v1337_v15 = vadd.f32 %v3488_v23, %v984_v3 }
 0x26f   : > { %v1622_v6 = vmul.f32 %v1526_v14, %v1526_v14  ;;  %v1952_v50 = vadd.f32 %v1920_v49, %v1806_v18  ;;  %v1809_v2 = vmul.f32 %v1713_v29, %v4425_v20  ;;  %v999_v48 = vpop.f32.mrb[58].mxu0  ;;  %v1339_v57 = vadd.f32 %v3486_v21, %v988_v37  ;;  %v1441_v14 = vld [vmem:[%s3403_s30 + $0x2b8] sm:$0xff]  ;;  %v1722_v37 = vld [vmem:[%s3514_s27 + $0x280] sm:$0xff]  ;;  %v1444_v20 = vld [vmem:[%s3403_s30 + $0x2d0] sm:$0xff] }
 0x270   : > { %v1624_v36 = vmul.f32 %v1528_v12, %v1528_v12  ;;  %v1921_v58 = vadd.f32 %v1808_v19, %v1807_v17  ;;  %v990_v1 = vadd.f32 %v989_v54, %v3884_v53  ;;  %v1001_v31 = vpop.f32.mrb[59].mxu0  ;;  %v1529_v44 = vsub.f32 %v1433_v30, %v1337_v15 }
 0x271   : > { %2073 = vadd.xlane.f32.xlu1 %v1952_v50  ;;  %v994_v56 = vadd.f32 %v993_v62, %v3893_v46  ;;  %v1810_v26 = vmul.f32 %v1714_v22, %v1618_v7  ;;  %v1811_v10 = vmul.f32 %v1715_v59, %v1619_v11  ;;  %v1531_v34 = vsub.f32 %v1435_v0, %v1339_v57  ;;  %v1719_v7 = vld [vmem:[%s3514_s27 + $0x268] sm:$0xff]  ;;  %v1442_v59 = vld [vmem:[%s3403_s30 + $0x2c0] sm:$0xff] }
 0x272   : > { %v1953_v40 = vadd.f32 %v1921_v58, %v1809_v2  ;;  %v1340_v27 = vadd.f32 %v3488_v23, %v990_v1  ;;  %v1812_v33 = vmul.f32 %v1716_v41, %v3922_v35  ;;  %v1625_v53 = vmul.f32 %v1529_v44, %v1529_v44  ;;  %v1439_v62 = vld [vmem:[%s3403_s30 + $0x2a8] sm:$0xff]  ;;  %v1437_v41 = vld [vmem:[%s3403_s30 + $0x298] sm:$0xff]  ;;  %v1724_v44 = vld [vmem:[%s3514_s27 + $0x290] sm:$0xff] }
 0x273   : > { %v1342_v54 = vadd.f32 %v3486_v21, %v994_v56  ;;  %v1922_v16 = vadd.f32 %v1811_v10, %v1810_v26  ;;  %v996_v5 = vadd.f32 %v995_v61, %v3893_v46  ;;  %v1005_v42 = vpop.f32.mrb[60].mxu0  ;;  %v1627_v9 = vmul.f32 %v1531_v34, %v1531_v34  ;;  %v1720_v46 = vld [vmem:[%s3514_s27 + $0x270] sm:$0xff]  ;;  %v1721_v61 = vld [vmem:[%s3514_s27 + $0x278] sm:$0xff] }
 0x274   : > { %2075 = vadd.xlane.f32.xlu0 %v1953_v40  ;;  %v1532_v39 = vsub.f32 %v1436_v45, %v1340_v27  ;;  %v1000_v11 = vadd.f32 %v999_v48, %v3925_v24  ;;  %v1813_v35 = vmul.f32 %v1717_v28, %v1621_v8  ;;  %v1007_v60 = vpop.f32.mrb[61].mxu0  ;;  %v1814_v49 = vmul.f32 %v1718_v47, %v1622_v6  ;;  %v1723_v48 = vld [vmem:[%s3514_s27 + $0x288] sm:$0xff]  ;;  %v1445_v28 = vld [vmem:[%s3403_s30 + $0x2d8] sm:$0xff] }
 0x275   : > { %v1534_v25 = vsub.f32 %v1438_v13, %v1342_v54  ;;  %v1954_v18 = vadd.f32 %v1922_v16, %v1812_v33  ;;  %v1343_v29 = vadd.f32 %v3488_v23, %v996_v5  ;;  %v1815_v30 = vmul.f32 %v1719_v7, %v3920_v38  ;;  %v1727_v13 = vld [vmem:[%s3514_s27 + $0x2a8] sm:$0xff]  ;;  %v1728_v5 = vld [vmem:[%s3514_s27 + $0x2b0] sm:$0xff] }
 0x276   : > { %v1628_v3 = vmul.f32 %v1532_v39, %v1532_v39  ;;  %v1345_v12 = vadd.f32 %v3486_v21, %v1000_v11  ;;  %v1002_v8 = vadd.f32 %v1001_v31, %v3925_v24  ;;  %v1923_v22 = vadd.f32 %v1814_v49, %v1813_v35  ;;  %v1447_v54 = vld [vmem:[%s3403_s30 + $0x2e8] sm:$0xff] }
 0x277   : > { %v1630_v17 = vmul.f32 %v1534_v25, %v1534_v25  ;;  %2077 = vadd.xlane.f32.xlu1 %v1954_v18  ;;  %v1535_v19 = vsub.f32 %v1439_v62, %v1343_v29  ;;  %v1006_v6 = vadd.f32 %v1005_v42, %v3937_v52  ;;  %v1011_v50 = vpop.f32.mrb[62].mxu0  ;;  %v1816_v2 = vmul.f32 %v1720_v46, %v1624_v36  ;;  %v1729_v62 = vld [vmem:[%s3514_s27 + $0x2b8] sm:$0xff]  ;;  %v1730_v29 = vld [vmem:[%s3514_s27 + $0x2c0] sm:$0xff] }
 0x278   : > { %v1537_v15 = vsub.f32 %v1441_v14, %v1345_v12  ;;  %v1346_v0 = vadd.f32 %v3488_v23, %v1002_v8  ;;  %v1817_v38 = vmul.f32 %v1721_v61, %v1625_v53  ;;  %v1013_v24 = vpop.f32.mrb[63].mxu0  ;;  %v1955_v58 = vadd.f32 %v1923_v22, %v1815_v30  ;;  %v1733_v61 = vld [vmem:[%s3514_s27 + $0x2d8] sm:$0xff] }
 0x279   : > { %v1631_v57 = vmul.f32 %v1535_v19, %v1535_v19  ;;  %v1348_v1 = vadd.f32 %v3486_v21, %v1006_v6  ;;  %v1818_v31 = vmul.f32 %v1722_v37, %v3976_v55  ;;  %v1008_v36 = vadd.f32 %v1007_v60, %v3937_v52  ;;  %v1726_v55 = vld [vmem:[%s3514_s27 + $0x2a0] sm:$0xff]  ;;  %v1725_v52 = vld [vmem:[%s3514_s27 + $0x298] sm:$0xff]  ;;  %v1448_v60 = vld [vmem:[%s3403_s30 + $0x2f0] sm:$0xff] }
 0x27a   : > { %v1633_v45 = vmul.f32 %v1537_v15, %v1537_v15  ;;  %v1538_v56 = vsub.f32 %v1442_v59, %v1346_v0  ;;  %v1924_v26 = vadd.f32 %v1817_v38, %v1816_v2  ;;  %2079 = vadd.xlane.f32.xlu0 %v1955_v58  ;;  %v1012_v34 = vadd.f32 %v1011_v50, %v3974_v32  ;;  %v1449_v37 = vld [vmem:[%s3403_s30 + $0x2f8] sm:$0xff]  ;;  %v1731_v59 = vld [vmem:[%s3514_s27 + $0x2c8] sm:$0xff]  ;;  %v1734_v50 = vld [vmem:[%s3514_s27 + $0x2e0] sm:$0xff] }
 0x27b   : > { %v1540_v10 = vsub.f32 %v1444_v20, %v1348_v1  ;;  %v1533_v40 = vsub.f32 %v1437_v41, %v3915_v43  ;;  %v1819_v27 = vmul.f32 %v1723_v48, %v1627_v9  ;;  %v1349_v53 = vadd.f32 %v3488_v23, %v1008_v36  ;;  %v1443_v9 = vld [vmem:[%s3403_s30 + $0x2c8] sm:$0xff]  ;;  %v1736_v2 = vld [vmem:[%s3514_s27 + $0x2f0] sm:$0xff]  ;;  %v1737_v1 = vld [vmem:[%s3514_s27 + $0x2f8] sm:$0xff] }
 0x27c   : > { %v1634_v33 = vmul.f32 %v1538_v56, %v1538_v56  ;;  %v1956_v47 = vadd.f32 %v1924_v26, %v1818_v31  ;;  %v1820_v16 = vmul.f32 %v1724_v44, %v1628_v3  ;;  %v1351_v42 = vadd.f32 %v3486_v21, %v1012_v34  ;;  %v1735_v15 = vld [vmem:[%s3514_s27 + $0x2e8] sm:$0xff] }
 0x27d   : > { %v1636_v7 = vmul.f32 %v1540_v10, %v1540_v10  ;;  %v1629_v39 = vmul.f32 %v1533_v40, %v1533_v40  ;;  %v1014_v43 = vadd.f32 %v1013_v24, %v3974_v32  ;;  %v1541_v11 = vsub.f32 %v1445_v28, %v1349_v53  ;;  %v1732_v32 = vld [vmem:[%s3514_s27 + $0x2d0] sm:$0xff]  ;;  %v4426_v24 = vld [vmem:[#allocation38_spill] sm:$0xff] }
 0x27e   : > { %2081 = vadd.xlane.f32.xlu1 %v1956_v47  ;;  %v1925_v35 = vadd.f32 %v1820_v16, %v1819_v27  ;;  %v1822_v25 = vmul.f32 %v1726_v55, %v1630_v17  ;;  %v1823_v18 = vmul.f32 %v1727_v13, %v1631_v57  ;;  %v1543_v14 = vsub.f32 %v1447_v54, %v1351_v42 }
 0x27f   : > { %v1821_v49 = vmul.f32 %v1725_v52, %v1629_v39  ;;  %v1352_v21 = vadd.f32 %v3488_v23, %v1014_v43  ;;  %v1824_v46 = vmul.f32 %v1728_v5, %v3978_v4  ;;  %v1637_v3 = vmul.f32 %v1541_v11, %v1541_v11 }
 0x280   : > { %v1926_v12 = vadd.f32 %v1823_v18, %v1822_v25  ;;  %v1539_v30 = vsub.f32 %v1443_v9, %v3962_v51  ;;  %v1825_v8 = vmul.f32 %v1729_v62, %v1633_v45  ;;  %v1639_v17 = vmul.f32 %v1543_v14, %v1543_v14 }
 0x281   : > { %v1957_v19 = vadd.f32 %v1925_v35, %v1821_v49  ;;  %v1544_v22 = vsub.f32 %v1448_v60, %v1352_v21  ;;  %v1826_v6 = vmul.f32 %v1730_v29, %v1634_v33  ;;  %v1828_v4 = vmul.f32 %v1732_v32, %v1636_v7 }
 0x282   : > { %v1958_v23 = vadd.f32 %v1926_v12, %v1824_v46  ;;  %v1635_v0 = vmul.f32 %v1539_v30, %v1539_v30  ;;  %v1829_v20 = vmul.f32 %v1733_v61, %v1637_v3  ;;  %v1545_v51 = vsub.f32 %v1449_v37, %v4005_v63 }
 0x283   : > { %2083 = vadd.xlane.f32.xlu0 %v1957_v19  ;;  %v1640_v38 = vmul.f32 %v1544_v22, %v1544_v22  ;;  %v1927_v41 = vadd.f32 %v1826_v6, %v1825_v8  ;;  %v1830_v57 = vmul.f32 %v1734_v50, %v4426_v24  ;;  %v1831_v31 = vmul.f32 %v1735_v15, %v1639_v17 }
 0x284   : > { %2085 = vadd.xlane.f32.xlu1 %v1958_v23  ;;  %v1827_v48 = vmul.f32 %v1731_v59, %v1635_v0  ;;  %v1928_v58 = vadd.f32 %v1829_v20, %v1828_v4  ;;  %v1641_v44 = vmul.f32 %v1545_v51, %v1545_v51 }
 0x285   : > { %v1832_v45 = vmul.f32 %v1736_v2, %v1640_v38 }
 0x286   : > { %v1959_v56 = vadd.f32 %v1927_v41, %v1827_v48  ;;  %v1960_v26 = vadd.f32 %v1928_v58, %v1830_v57  ;;  %v1833_v36 = vmul.f32 %v1737_v1, %v1641_v44 }
 0x287   : > { %v1929_v10 = vadd.f32 %v1832_v45, %v1831_v31 }
 0x288   : > { %2087 = vadd.xlane.f32.xlu0 %v1959_v56  ;;  %2089 = vadd.xlane.f32.xlu1 %v1960_v26 }
 0x289   : > { %v1961_v28 = vadd.f32 %v1929_v10, %v1833_v36 }
 0x28c   : > { %2091 = vadd.xlane.f32.xlu0 %v1961_v28 }
 0x298   : > { %v2030_v63 = vpop.xlane.xlu0 %2029 }
 0x299   : > { %2094 = vst.msk [vmem:[%s4200_s15] sm:$0xff] %vm2093_vm0, %v2030_v63 }
 0x29e   : > { %v2032_v34 = vpop.xlane.xlu1 %2031 }
 0x29f   : > { %2095 = vst.msk [vmem:[%s4200_s15 + $0x8] sm:$0xff] %vm2093_vm0, %v2032_v34 }
 0x2a2   : > { %v2034_v40 = vpop.xlane.xlu0 %2033 }
 0x2a3   : > { %2096 = vst.msk [vmem:[%s4200_s15 + $0x10] sm:$0xff] %vm2093_vm0, %v2034_v40 }
 0x2a7   : > { %v2036_v27 = vpop.xlane.xlu0 %2035 }
 0x2a8   : > { %2097 = vst.msk [vmem:[%s4200_s15 + $0x18] sm:$0xff] %vm2093_vm0, %v2036_v27 }
 0x2ab   : > { %v2038_v55 = vpop.xlane.xlu1 %2037 }
 0x2ac   : > { %2098 = vst.msk [vmem:[%s4200_s15 + $0x20] sm:$0xff] %vm2093_vm0, %v2038_v55 }
 0x2b0   : > { %v2040_v13 = vpop.xlane.xlu0 %2039 }
 0x2b1   : > { %2099 = vst.msk [vmem:[%s4200_s15 + $0x28] sm:$0xff] %vm2093_vm0, %v2040_v13 }
 0x2b5   : > { %v2042_v33 = vpop.xlane.xlu1 %2041 }
 0x2b6   : > { %2100 = vst.msk [vmem:[%s4200_s15 + $0x30] sm:$0xff] %vm2093_vm0, %v2042_v33 }
 0x2be   : > { %v2044_v47 = vpop.xlane.xlu0 %2043 }
 0x2bf   : > { %2101 = vst.msk [vmem:[%s4200_s15 + $0x38] sm:$0xff] %vm2093_vm0, %v2044_v47 }
 0x2c4   : > { %v2046_v53 = vpop.xlane.xlu1 %2045 }
 0x2c5   : > { %2102 = vst.msk [vmem:[%s4200_s15 + $0x40] sm:$0xff] %vm2093_vm0, %v2046_v53 }
 0x2cb   : > { %v2048_v54 = vpop.xlane.xlu0 %2047 }
 0x2cc   : > { %2103 = vst.msk [vmem:[%s4200_s15 + $0x48] sm:$0xff] %vm2093_vm0, %v2048_v54 }
 0x2d1   : > { %v2050_v52 = vpop.xlane.xlu1 %2049 }
 0x2d2   : > { %2104 = vst.msk [vmem:[%s4200_s15 + $0x50] sm:$0xff] %vm2093_vm0, %v2050_v52 }
 0x2d8   : > { %v2052_v16 = vpop.xlane.xlu0 %2051 }
 0x2d9   : > { %2105 = vst.msk [vmem:[%s4200_s15 + $0x58] sm:$0xff] %vm2093_vm0, %v2052_v16 }
 0x2de   : > { %v2054_v5 = vpop.xlane.xlu1 %2053 }
 0x2df   : > { %2106 = vst.msk [vmem:[%s4200_s15 + $0x60] sm:$0xff] %vm2093_vm0, %v2054_v5 }
 0x2e1   : > { %v2056_v7 = vpop.xlane.xlu0 %2055 }
 0x2e2   : > { %2107 = vst.msk [vmem:[%s4200_s15 + $0x68] sm:$0xff] %vm2093_vm0, %v2056_v7 }
 0x2e4   : > { %v2058_v42 = vpop.xlane.xlu1 %2057 }
 0x2e5   : > { %2108 = vst.msk [vmem:[%s4200_s15 + $0x70] sm:$0xff] %vm2093_vm0, %v2058_v42 }
 0x2e7   : > { %v2060_v39 = vpop.xlane.xlu0 %2059 }
 0x2e8   : > { %2109 = vst.msk [vmem:[%s4200_s15 + $0x78] sm:$0xff] %vm2093_vm0, %v2060_v39 }
 0x2ea   : > { %v2062_v43 = vpop.xlane.xlu1 %2061 }
 0x2eb   : > { %2110 = vst.msk [vmem:[%s4200_s15 + $0x80] sm:$0xff] %vm2093_vm0, %v2062_v43 }
 0x2ee   : > { %v2064_v9 = vpop.xlane.xlu0 %2063 }
 0x2ef   : > { %2111 = vst.msk [vmem:[%s4200_s15 + $0x88] sm:$0xff] %vm2093_vm0, %v2064_v9 }
 0x2f1   : > { %v2066_v62 = vpop.xlane.xlu1 %2065 }
 0x2f2   : > { %2112 = vst.msk [vmem:[%s4200_s15 + $0x90] sm:$0xff] %vm2093_vm0, %v2066_v62 }
 0x2f4   : > { %v2068_v11 = vpop.xlane.xlu0 %2067 }
 0x2f5   : > { %2113 = vst.msk [vmem:[%s4200_s15 + $0x98] sm:$0xff] %vm2093_vm0, %v2068_v11 }
 0x2f7   : > { %v2070_v35 = vpop.xlane.xlu1 %2069 }
 0x2f8   : > { %2114 = vst.msk [vmem:[%s4200_s15 + $0xa0] sm:$0xff] %vm2093_vm0, %v2070_v35 }
 0x2fa   : > { %v2072_v60 = vpop.xlane.xlu0 %2071 }
 0x2fb   : > { %2115 = vst.msk [vmem:[%s4200_s15 + $0xa8] sm:$0xff] %vm2093_vm0, %v2072_v60 }
 0x2fe   : > { %v2074_v25 = vpop.xlane.xlu1 %2073 }
 0x2ff   : > { %2116 = vst.msk [vmem:[%s4200_s15 + $0xb0] sm:$0xff] %vm2093_vm0, %v2074_v25 }
 0x301   : > { %v2076_v18 = vpop.xlane.xlu0 %2075 }
 0x302   : > { %2117 = vst.msk [vmem:[%s4200_s15 + $0xb8] sm:$0xff] %vm2093_vm0, %v2076_v18 }
 0x304   : > { %v2078_v29 = vpop.xlane.xlu1 %2077 }
 0x305   : > { %2118 = vst.msk [vmem:[%s4200_s15 + $0xc0] sm:$0xff] %vm2093_vm0, %v2078_v29 }
 0x307   : > { %v2080_v14 = vpop.xlane.xlu0 %2079 }
 0x308   : > { %2119 = vst.msk [vmem:[%s4200_s15 + $0xc8] sm:$0xff] %vm2093_vm0, %v2080_v14 }
 0x30b   : > { %v2082_v49 = vpop.xlane.xlu1 %2081 }
 0x30c   : > { %2120 = vst.msk [vmem:[%s4200_s15 + $0xd0] sm:$0xff] %vm2093_vm0, %v2082_v49 }
 0x310   : > { %v2084_v21 = vpop.xlane.xlu0 %2083 }
 0x311   : > { %2121 = vst.msk [vmem:[%s4200_s15 + $0xd8] sm:$0xff] %vm2093_vm0, %v2084_v21  ;;  %v2086_v46 = vpop.xlane.xlu1 %2085 }
 0x312   : > { %2122 = vst.msk [vmem:[%s4200_s15 + $0xe0] sm:$0xff] %vm2093_vm0, %v2086_v46 }
 0x315   : > { %v2088_v32 = vpop.xlane.xlu0 %2087  ;;  %v2090_v61 = vpop.xlane.xlu1 %2089 }
 0x316   : > { %2123 = vst.msk [vmem:[%s4200_s15 + $0xe8] sm:$0xff] %vm2093_vm0, %v2088_v32  ;;  %2124 = vst.msk [vmem:[%s4200_s15 + $0xf0] sm:$0xff] %vm2093_vm0, %v2090_v61 }
 0x319   : > { %v2092_v3 = vpop.xlane.xlu0 %2091 }
 0x31a   : > { %2125 = vst.msk [vmem:[%s4200_s15 + $0xf8] sm:$0xff] %vm2093_vm0, %v2092_v3 }
 0x31b   : > { %2934 = shalt.err (!%p2931_p13)
}
 0x31c   : > { %s2935_s9 = scalar_lea.hbm %s4269_s28, 4096  ;;  %s2939_s14 = scalar_lea.hbm %s4429_s29, 8192 }
 0x31d   : > { %p2936_p0 = scmp.ne.s32.totalorder %s4269_s28, %s2935_s9  ;;  %p2940_p8 = scmp.lt.u32.totalorder %s4269_s28, %s4429_s29 }
 0x31e   : > { %p2941_p1 = scmp.lt.u32.totalorder %s2939_s14, %s2935_s9  ;;  %p2943_p10 = scmp.lt.u32.totalorder %s2935_s9, %s4269_s28 }
 0x31f   : > { %p2937_p4 = pnand %p2936_p0, %p4430_p12 }
 0x320   : > { %p2942_p6 = por %p2941_p1, %p2940_p8 }
 0x321   : > { %p2938_p9 = pneg %p2937_p4 }
 0x322   : > { %p2944_p5 = por %p2943_p10, %p2942_p6 }
 0x324   : > { %p2945_p3 = pnand %p2944_p5, %p2938_p9 }
 0x326   : > { %2948 = shalt.err (!%p2945_p3)
}
 0x327   : > { %s3033_s6 = smov 128   ;;  %s3034_s7 = smov 8  }
 0x328   : > { %2654 = dma.vmem_to_hbm [thread:$0]  (%p4430_p12), %s4271_s22, 4096, %s4269_s28, %s2127_s23, %s3033_s6, %s3033_s6, %s3034_s7  }
 0x329 PF: > { %s4431_s8 = sld [smem:[#allocation20_spill]]  ;;  %s4432_s17 = sld [smem:[#allocation26_spill]] }
 0x32a   : > { %s4433_s30 = sld [smem:[#allocation24_spill]] }
 0x32f   : > { %s2155_s27 = sand.u32 1, %s4431_s8   ;;  %p4434_p7 = scmp.ne.s32.totalorder %s4432_s17, 0 }
 0x330   : > { %p4435_p2 = scmp.ge.s32.totalorder %s4433_s30, 2  ;;  %s2156_s15 = scalar_lea.sflag [#allocation5], %s2155_s27 }
 0x332   : > { %p2677_p11 = pnand %p4435_p2, %p4434_p7 }
 0x334   : > { %2994 = dma.done.wait (!%p2677_p11), %s2156_s15, 4096  }
 0x335   : > { %2996 = vsyncadd (!%p2677_p11), %s2156_s15, 4294963200  ;;  %s26_s26 = sadd.s32 1, %s4433_s30   ;;  %s4436_s21 = sld [smem:[#allocation21_spill]] }
 0x336   : > { %p23_p13 = scmp.ge.s32.totalorder %s26_s26, 4   ;;  %s4437_s22 = sld [smem:[#allocation22_spill]] }
 0x337   : > { %s4438_s23 = sld [smem:[#allocation29_spill]]  ;;  %s4439_s10 = sld [smem:[#allocation27_spill]] }
 0x338   : > { %s4440_s24 = smov %s3015_s25  ;;  %25 = sbr.rel (!%p23_p13) target bundleno = 14 (0xe), region = 142 }
 0x33d   : > { %s4441_s25 = smov %s4439_s10 }
 0x33f   :  { %2161 = vsyncpa [#allocation4], 1 }
 0x340   :  { %2163 = vsyncpa [#allocation4 + $0x1], 1 }
 0x341   :  { %2164 = vsyncpa [#allocation7], 1 }
 0x342   :  { %2165 = vsyncpa [#allocation11], 1 }
 0x343   :  { %2167 = vsyncpa [#allocation11 + $0x1], 1 }
 0x344   :  { %2168 = vsyncpa [#allocation5], 1 }
 0x345   :  { %2170 = vsyncpa [#allocation5 + $0x1], 1 }

// kernel: tpu_custom_call.1
= control target key start
LH: loop header
LB: loop body
LE: loop exit
PB: predicated region body
PF: predicated region fallthrough
CT: control target
= control target key end

     0   :  { %s4322_s0 = inlined_call_operand.hbm [shape: f32[512,128], index: 0, kind: input, shape index: {}]   ;;  %s4323_s1 = inlined_call_operand.hbm [shape: f32[384,128], index: 1, kind: input, shape index: {}]   ;;  %s4324_s2 = inlined_call_operand.hbm [shape: f32[512,1], index: 2, kind: input, shape index: {}]   ;;  %s4325_s3 = inlined_call_operand.hbm [shape: f32[1,384], index: 3, kind: input, shape index: {}]   ;;  %s4326_s4 = inlined_call_operand.hbm [shape: f32[512,384], index: 4, kind: input, shape index: {}]   ;;  %s4327_s5 = inlined_call_operand.hbm [shape: f32[512,384], index: 5, kind: input, shape index: {}]   ;;  %s4328_s6 = inlined_call_operand.hbm [shape: f32[512,1], index: 6, kind: output, shape index: {}]  }
   0x1   :  { %4364 = sst [smem:[#allocation39_spill]] %s4322_s0 }
   0x2   :  { %4365 = sst [smem:[#allocation40_spill]] %s4323_s1 }
   0x3   :  { %4366 = sst [smem:[#allocation41_spill]] %s4326_s4 }
   0x4   :  { %4367 = sst [smem:[#allocation42_spill]] %s4328_s6 }
   0x5   :  { %11 = vsyncpa [#allocation4], 0 }
   0x6   :  { %13 = vsyncpa [#allocation4 + $0x1], 0 }
   0x7   :  { %14 = vsyncpa [#allocation7], 0 }
   0x8   :  { %15 = vsyncpa [#allocation11], 0 }
   0x9   :  { %17 = vsyncpa [#allocation11 + $0x1], 0 }
   0xa   :  { %18 = vsyncpa [#allocation5], 0 }
   0xb   :  { %20 = vsyncpa [#allocation5 + $0x1], 0  ;;  %s3070_s21 = smov 0   ;;  %s3072_s22 = smov 0  }
   0xc   :  { %s3074_s23 = smov 0   ;;  %s3076_s24 = smov 0  }
   0xd   :  { %s3078_s25 = smov 0   ;;  %s3080_s26 = smov 0  }
   0xe LB: > { %4368 = sst [smem:[#allocation20_spill]] %s2999_s21  ;;  %s3101_s27 = sadd.s32 4294967295, %s3019_s26   ;;  %s3019_s26 = sphi %s3080_s26, %s26_s26   ;;  %s3015_s25 = sphi %s3078_s25, %s4441_s25   ;;  %s3011_s24 = sphi %s3076_s24, %s4440_s24   ;;  %s3007_s23 = sphi %s3074_s23, %s4438_s23   ;;  %s3003_s22 = sphi %s3072_s22, %s4437_s22   ;;  %s2999_s21 = sphi %s3070_s21, %s4436_s21  }
   0xf   : > { %4369 = sst [smem:[#allocation21_spill]] %s3003_s22  ;;  %s2314_s28 = sadd.s32 4294967294, %s3019_s26  }
  0x10   : > { %4370 = sst [smem:[#allocation22_spill]] %s3007_s23  ;;  %p58_p0 = scmp.ne.s32.totalorder %s3003_s22, %s2999_s21 }
  0x11   : > { %4371 = sst [smem:[#allocation23_spill]] %s3011_s24  ;;  %p4329_p1 = scmp.eq.s32.totalorder %s3101_s27, 0 }
  0x12   : > { %4372 = sst [smem:[#allocation24_spill]] %s3019_s26  ;;  %p217_p3 = scmp.eq.s32.totalorder %s2314_s28, 1 }
  0x13   : > { %p3110_p4 = por %p4329_p1, %p58_p0  ;;  %p2315_p5 = scmp.ge.s32.totalorder %s3019_s26, 1 }
  0x14   : > { %p3115_p6 = por %p217_p3, %p58_p0  ;;  %p224_p7 = scmp.lt.s32.totalorder %s3019_s26, 3 }
  0x15   : > { %s4373_s29 = scalar_select %p3110_p4, 1, 0 }
  0x16   : > { %s4375_s30 = scalar_select %p3115_p6, 1, 0 }
  0x17   : > { %4374 = sst [smem:[#allocation25_spill]] %s4373_s29  ;;  %p3120_p8 = pnand %p2315_p5, %p224_p7 }
  0x18   : > { %4376 = sst [smem:[#allocation26_spill]] %s4375_s30  ;;  %s3021_s8 = smov [#allocation6]  }
  0x19   : > { %s4377_s7 = scalar_select %p3120_p8, 1, 0 }
  0x1a   : > { %s236_s9 = sshll.u32 %s3021_s8, 4  ;;  %p2656_p9 = pneg %p3120_p8  ;;  %s237_s9 = int_to_ptr.vmem [resolvable:$true] %s236_s9 }
  0x1b   : > { %s38_s11 = sadd.s32 1, %s3015_s25  ;;  %s4379_s1 = sld [smem:[#allocation40_spill]] }
  0x1c   : > { %p3129_p11 = pnand %p2656_p9, %p4329_p1 }
  0x1e   : > { %s4378_s10 = scalar_select %p3129_p11, 1, 0 }
  0x1f   : > { %p4339_p13 = pneg %p3129_p11 }
  0x21   : > { %s2745_s14 = scalar_lea.hbm %s4379_s1, 6144 }
  0x22   : > { %p2746_p12 = scmp.ne.s32.totalorder %s4379_s1, %s2745_s14  ;;  %p2752_p5 = scmp.lt.u32.totalorder %s2745_s14, %s4379_s1 }
  0x24   : > { %p2748_p0 = pnand %p4339_p13, %p2746_p12 }
  0x26   : > { %p2749_p3 = pneg %p2748_p0 }
  0x28   : > { %p2754_p7 = pnand %p2752_p5, %p2749_p3 }
  0x2a   : > { %2757 = shalt.err (!%p2754_p7)
}
  0x2b   : > { %s2758_s19 = scalar_lea.vmem %s237_s9, 6144  ;;  %p2766_p2 = scmp.lt.s32.totalorder %s237_s9, %s237_s9 }
  0x2c   : > { %p2759_p9 = scmp.ne.s32.totalorder %s237_s9, %s2758_s19  ;;  %p2767_p6 = scmp.lt.s32.totalorder %s2758_s19, %s2758_s19 }
  0x2e   : > { %p2761_p10 = pnand %p2759_p9, %p4339_p13  ;;  %p2768_p4 = por %p2767_p6, %p2766_p2 }
  0x30   : > { %p2762_p1 = pneg %p2761_p10 }
  0x32   : > { %p2769_p8 = pnand %p2768_p4, %p2762_p1 }
  0x34   : > { %2772 = shalt.err (!%p2769_p8)
}
  0x35   : > { %s4332_s20 = smov 128   ;;  %s4334_s28 = smov 8  }
  0x36   : > { %2659 = dma.hbm_to_vmem [thread:$0]  (!%p3129_p11), %s4379_s1, 6144, %s237_s9, [#allocation7], %s4332_s20, %s4332_s20, %s4334_s28  }
  0x37   : > { %p40_p1 = scmp.ge.s32.totalorder %s38_s11, 2  ;;  %s45_s13 = sadd.s32 1, %s3007_s23 }
  0x38   : > { %p52_p2 = scmp.ne.s32.totalorder %s3007_s23, %s3003_s22  ;;  %p53_p4 = scmp.eq.s32.totalorder %s3019_s26, 0 }
  0x39   : > { %s4443_s11 = smov (%p40_p1, %s38_s11), 0  ;;  %p4382_p8 = scmp.eq.s32.totalorder %s3101_s27, 1 }
  0x3a   : > { %4380 = sst [smem:[#allocation27_spill]] %s4443_s11  ;;  %p3165_p6 = por %p53_p4, %p52_p2 }
  0x3b   : > { %p3171_p10 = por %p4382_p8, %p52_p2  ;;  %s42_s16 = ssub.s32 %s3015_s25, %s4443_s11 }
  0x3c   : > { %p2682_p12 = scmp.lt.s32.totalorder %s3019_s26, 2  ;;  %p43_p0 = scmp.eq.s32.totalorder %s42_s16, 0 }
  0x3d   : > { %s4383_s15 = scalar_select %p3171_p10, 1, 0 }
  0x3e   : > { %s4336_s17 = sand.u32 1, %s3007_s23   ;;  %s2342_s8 = sshll.u32 %s3015_s25, 12 }
  0x3f   : > { %4384 = sst [smem:[#allocation28_spill]] %s4383_s15  ;;  %s3185_s19 = sshll.u32 %s4336_s17, 8 }
  0x40   : > { %s3181_s18 = scalar_select %p43_p0, %s3007_s23, %s45_s13  }
  0x41   : > { %s4386_s0 = sld [smem:[#allocation39_spill]]  ;;  %s268_s1 = scalar_lea.vmem [#allocation3], %s3185_s19 }
  0x42   : > { %4385 = sst [smem:[#allocation29_spill]] %s3181_s18  ;;  %s275_s16 = sshll.u32 %s268_s1, 4  ;;  %s3200_s16 = int_to_ptr.vmem [resolvable:$true] %s275_s16 }
  0x43   : > { %p3196_p3 = pnand %p2682_p12, %p3165_p6  ;;  %s3205_s20 = scalar_lea.hbm %s4324_s2, %s2342_s8 }
  0x44   : > { %s4388_s12 = sand.u32 1, %s3019_s26  }
  0x45   : > { %s4387_s13 = scalar_select %p3196_p3, 1, 0 }
  0x46   : > { %s3209_s11 = scalar_lea.sflag [#allocation4], %s4388_s12  ;;  %p3215_p7 = pneg %p3196_p3 }
  0x47   : > { %s3191_s28 = scalar_lea.hbm %s4386_s0, %s2342_s8  ;;  %s2778_s9 = scalar_lea.hbm %s4386_s0, 8192 }
  0x48   : > { %s2773_s18 = scalar_lea.hbm %s3191_s28, 4096  ;;  %p2779_p2 = scmp.lt.u32.totalorder %s3191_s28, %s4386_s0 }
  0x49   : > { %p2774_p5 = scmp.ne.s32.totalorder %s3191_s28, %s2773_s18  ;;  %p2780_p4 = scmp.lt.u32.totalorder %s2778_s9, %s2773_s18 }
  0x4a   : > { %s4389_s1 = scalar_select %p3215_p7, 1, 0 }
  0x4b   : > { %p2776_p9 = pnand %p3215_p7, %p2774_p5  ;;  %p2781_p6 = por %p2780_p4, %p2779_p2 }
  0x4c   : > { %p2782_p8 = scmp.lt.u32.totalorder %s2773_s18, %s3191_s28 }
  0x4d   : > { %p2777_p1 = pneg %p2776_p9 }
  0x4e   : > { %p2783_p12 = por %p2782_p8, %p2781_p6 }
  0x50   : > { %p2784_p0 = pnand %p2783_p12, %p2777_p1 }
  0x52   : > { %2787 = shalt.err (!%p2784_p0)
}
  0x53   : > { %s2788_s12 = scalar_lea.vmem %s3200_s16, 4096  ;;  %s3024_s30 = smov [#allocation3]  }
  0x54   : > { %p2789_p5 = scmp.ne.s32.totalorder %s3200_s16, %s2788_s12  ;;  %s2793_s14 = sshll.u32 %s3024_s30, 4  ;;  %s2794_s14 = int_to_ptr.vmem [resolvable:$false] %s2793_s14 }
  0x55   : > { %s2795_s17 = scalar_lea.vmem %s2794_s14, 8192  ;;  %p2796_p10 = scmp.lt.s32.totalorder %s3200_s16, %s2794_s14 }
  0x56   : > { %p2791_p9 = pnand %p2789_p5, %p3215_p7  ;;  %p2797_p11 = scmp.lt.s32.totalorder %s2795_s17, %s2788_s12 }
  0x58   : > { %p2792_p13 = pneg %p2791_p9  ;;  %p2798_p2 = por %p2797_p11, %p2796_p10 }
  0x5a   : > { %p2799_p4 = pnand %p2798_p2, %p2792_p13 }
  0x5c   : > { %2802 = shalt.err (!%p2799_p4)
}
  0x5d   : > { %s4390_s18 = smov 8   ;;  %s4391_s9 = smov 128  }
  0x5e   : > { %2666 = dma.hbm_to_vmem [thread:$0]  (!%p3196_p3), %s3191_s28, 4096, %s3200_s16, %s3209_s11, %s4391_s9, %s4391_s9, %s4390_s18  }
  0x5f   : > { %s289_s8 = scalar_lea.vmem [#allocation8], %s3185_s19  ;;  %s4392_s30 = sand.u32 1, %s3007_s23  }
  0x60   : > { %s296_s12 = sshll.u32 %s289_s8, 4  ;;  %s3247_s14 = smul.u32 768, %s4392_s30  ;;  %s3243_s12 = int_to_ptr.vmem [resolvable:$true] %s296_s12 }
  0x61   : > { %s4346_s17 = smul.u32 12288, %s3015_s25  ;;  %s4393_s4 = sld [smem:[#allocation41_spill]] }
  0x62   : > { %s310_s28 = scalar_lea.vmem [#allocation10], %s3247_s14  ;;  %s4394_s16 = sand.u32 1, %s3019_s26  }
  0x63   : > { %s320_s19 = sshll.u32 %s310_s28, 4  ;;  %s3262_s8 = scalar_lea.sflag [#allocation11], %s4394_s16  ;;  %s3258_s19 = int_to_ptr.vmem [resolvable:$true] %s320_s19 }
  0x67   : > { %s3255_s6 = scalar_lea.hbm %s4393_s4, %s4346_s17  ;;  %s2808_s21 = scalar_lea.hbm %s4393_s4, 24576 }
  0x68   : > { %s2803_s30 = scalar_lea.hbm %s3255_s6, 12288  ;;  %p2809_p1 = scmp.lt.u32.totalorder %s3255_s6, %s4393_s4 }
  0x69   : > { %p2804_p11 = scmp.ne.s32.totalorder %s3255_s6, %s2803_s30  ;;  %p2810_p6 = scmp.lt.u32.totalorder %s2808_s21, %s2803_s30 }
  0x6a   : > { %p2812_p12 = scmp.lt.u32.totalorder %s2803_s30, %s3255_s6 }
  0x6b   : > { %p2806_p13 = pnand %p2804_p11, %p3215_p7  ;;  %p2811_p8 = por %p2810_p6, %p2809_p1 }
  0x6d   : > { %p2807_p10 = pneg %p2806_p13  ;;  %p2813_p0 = por %p2812_p12, %p2811_p8 }
  0x6f   : > { %p2814_p5 = pnand %p2813_p0, %p2807_p10 }
  0x71   : > { %2817 = shalt.err (!%p2814_p5)
}
  0x72   : > { %s2818_s28 = scalar_lea.vmem %s3258_s19, 12288  ;;  %s3025_s23 = smov [#allocation10]  }
  0x73   : > { %p2819_p9 = scmp.ne.s32.totalorder %s3258_s19, %s2818_s28  ;;  %s2823_s16 = sshll.u32 %s3025_s23, 4  ;;  %s2824_s16 = int_to_ptr.vmem [resolvable:$false] %s2823_s16 }
  0x74   : > { %s2825_s15 = scalar_lea.vmem %s2824_s16, 24576  ;;  %p2826_p11 = scmp.lt.s32.totalorder %s3258_s19, %s2824_s16 }
  0x75   : > { %p2821_p2 = pnand %p2819_p9, %p3215_p7  ;;  %p2827_p13 = scmp.lt.s32.totalorder %s2825_s15, %s2818_s28 }
  0x77   : > { %p2822_p4 = pneg %p2821_p2  ;;  %p2828_p1 = por %p2827_p13, %p2826_p11 }
  0x79   : > { %p2829_p6 = pnand %p2828_p1, %p2822_p4 }
  0x7b   : > { %2832 = shalt.err (!%p2829_p6)
}
  0x7c   : > { %s3026_s17 = smov 384   ;;  %s3027_s30 = smov 24  }
  0x7d   : > { %2672 = dma.hbm_to_vmem [thread:$0]  (!%p3196_p3), %s3255_s6, 12288, %s3258_s19, %s3262_s8, %s3026_s17, %s3026_s17, %s3027_s30  }
  0x7e   : > { %s3028_s0 = smov [#allocation9]   ;;  %s4395_s28 = smul.u32 12288, %s3015_s25 }
  0x7f   : > { %s253_s21 = sshll.u32 %s3028_s0, 4  ;;  %s2833_s24 = scalar_lea.hbm %s4325_s3, 48  ;;  %s254_s21 = int_to_ptr.vmem [resolvable:$true] %s253_s21 }
  0x80   : > { %s3294_s15 = scalar_lea.hbm %s4327_s5, %s4395_s28  ;;  %p2834_p10 = scmp.ne.s32.totalorder %s4325_s3, %s2833_s24 }
  0x81   : > { %p4396_p8 = scmp.ne.s32.totalorder %s4378_s10, 0  ;;  %p2840_p9 = scmp.lt.u32.totalorder %s2833_s24, %s4325_s3 }
  0x83   : > { %p4397_p12 = pneg %p4396_p8 }
  0x85   : > { %p2836_p0 = pnand %p2834_p10, %p4397_p12 }
  0x87   : > { %p2837_p5 = pneg %p2836_p0 }
  0x89   : > { %p2842_p2 = pnand %p2840_p9, %p2837_p5 }
  0x8b   : > { %2845 = shalt.err (!%p2842_p2)
}
  0x8c   : > { %s2846_s0 = scalar_lea.vmem %s254_s21, 48  ;;  %p4398_p11 = pmov %p4397_p12 }
  0x8d   : > { %p2847_p4 = scmp.ne.s32.totalorder %s254_s21, %s2846_s0  ;;  %s2853_s4 = scalar_lea.vmem %s254_s21, 64 }
  0x8e   : > { %p2854_p6 = scmp.lt.s32.totalorder %s254_s21, %s254_s21  ;;  %p2855_p3 = scmp.lt.s32.totalorder %s2853_s4, %s2846_s0 }
  0x8f   : > { %p2849_p13 = pnand %p2847_p4, %p4398_p11 }
  0x90   : > { %p2856_p7 = por %p2855_p3, %p2854_p6 }
  0x91   : > { %p2850_p1 = pneg %p2849_p13 }
  0x93   : > { %p2857_p10 = pnand %p2856_p7, %p2850_p1 }
  0x95   : > { %2860 = shalt.err (!%p2857_p10)
}
  0x96   : > { %2662 = dma.hbm_to_vmem [thread:$0]  (!%p4396_p8), %s4325_s3, 48, %s254_s21, [#allocation7]  }
  0x97   : > { %s2861_s24 = scalar_lea.hbm %s3205_s20, 4096  ;;  %p4399_p0 = scmp.ne.s32.totalorder %s4389_s1, 0 }
  0x98   : > { %p2862_p12 = scmp.ne.s32.totalorder %s3205_s20, %s2861_s24  ;;  %s2866_s23 = scalar_lea.hbm %s4324_s2, 8192 }
  0x99   : > { %p2867_p3 = scmp.lt.u32.totalorder %s3205_s20, %s4324_s2  ;;  %p2868_p7 = scmp.lt.u32.totalorder %s2866_s23, %s2861_s24 }
  0x9a   : > { %p2864_p5 = pnand %p2862_p12, %p4399_p0  ;;  %p2870_p4 = scmp.lt.u32.totalorder %s2861_s24, %s3205_s20 }
  0x9b   : > { %p2869_p2 = por %p2868_p7, %p2867_p3 }
  0x9c   : > { %p2865_p9 = pneg %p2864_p5 }
  0x9d   : > { %p2871_p11 = por %p2870_p4, %p2869_p2 }
  0x9f   : > { %p2872_p13 = pnand %p2871_p11, %p2865_p9 }
  0xa1   : > { %2875 = shalt.err (!%p2872_p13)
}
  0xa2   : > { %s2876_s21 = scalar_lea.vmem %s3243_s12, 4096  ;;  %s3029_s6 = smov [#allocation8]  }
  0xa3   : > { %p2877_p8 = scmp.ne.s32.totalorder %s3243_s12, %s2876_s21  ;;  %s2881_s19 = sshll.u32 %s3029_s6, 4  ;;  %s2882_s19 = int_to_ptr.vmem [resolvable:$false] %s2881_s19 }
  0xa4   : > { %s2883_s0 = scalar_lea.vmem %s2882_s19, 8192  ;;  %p2884_p10 = scmp.lt.s32.totalorder %s3243_s12, %s2882_s19 }
  0xa5   : > { %p2879_p1 = pnand %p2877_p8, %p4399_p0  ;;  %p2885_p12 = scmp.lt.s32.totalorder %s2883_s0, %s2876_s21 }
  0xa7   : > { %p2880_p6 = pneg %p2879_p1  ;;  %p2886_p5 = por %p2885_p12, %p2884_p10 }
  0xa9   : > { %p2887_p3 = pnand %p2886_p5, %p2880_p6 }
  0xab   : > { %2890 = shalt.err (!%p2887_p3)
}
  0xac   : > { %p4400_p9 = scmp.ne.s32.totalorder %s4387_s13, 0  ;;  %s334_s4 = scalar_lea.vmem [#allocation12], %s3247_s14 }
  0xad   : > { %s344_s22 = sshll.u32 %s334_s4, 4  ;;  %s2891_s26 = scalar_lea.hbm %s3294_s15, 12288  ;;  %s3342_s22 = int_to_ptr.vmem [resolvable:$true] %s344_s22 }
  0xae   : > { %2669 = dma.hbm_to_vmem [thread:$0]  (!%p4400_p9), %s3205_s20, 4096, %s3243_s12, %s3209_s11, %s4391_s9, %s4391_s9, %s4390_s18  }
  0xaf   : > { %p2892_p7 = scmp.ne.s32.totalorder %s3294_s15, %s2891_s26  ;;  %s2896_s28 = scalar_lea.hbm %s4327_s5, 24576 }
  0xb0   : > { %p2897_p11 = scmp.lt.u32.totalorder %s3294_s15, %s4327_s5  ;;  %p2898_p13 = scmp.lt.u32.totalorder %s2896_s28, %s2891_s26 }
  0xb1   : > { %p2894_p2 = pnand %p2892_p7, %p4399_p0  ;;  %p2900_p1 = scmp.lt.u32.totalorder %s2891_s26, %s3294_s15 }
  0xb2   : > { %p2899_p8 = por %p2898_p13, %p2897_p11 }
  0xb3   : > { %p2895_p4 = pneg %p2894_p2 }
  0xb4   : > { %p2901_p6 = por %p2900_p1, %p2899_p8 }
  0xb6   : > { %p2902_p10 = pnand %p2901_p6, %p2895_p4 }
  0xb8   : > { %2905 = shalt.err (!%p2902_p10)
}
  0xb9   : > { %s2906_s11 = scalar_lea.vmem %s3342_s22, 12288  ;;  %s3030_s20 = smov [#allocation12]  }
  0xba   : > { %p2907_p12 = scmp.ne.s32.totalorder %s3342_s22, %s2906_s11  ;;  %s2911_s18 = sshll.u32 %s3030_s20, 4  ;;  %s2912_s18 = int_to_ptr.vmem [resolvable:$false] %s2911_s18 }
  0xbb   : > { %s2913_s9 = scalar_lea.vmem %s2912_s18, 24576  ;;  %p2914_p7 = scmp.lt.s32.totalorder %s3342_s22, %s2912_s18 }
  0xbc   : > { %p2909_p5 = pnand %p2907_p12, %p4399_p0  ;;  %p2915_p2 = scmp.lt.s32.totalorder %s2913_s9, %s2906_s11 }
  0xbe   : > { %p2910_p3 = pneg %p2909_p5  ;;  %p2916_p11 = por %p2915_p2, %p2914_p7 }
  0xc0   : > { %p2917_p13 = pnand %p2916_p11, %p2910_p3 }
  0xc2   : > { %2920 = shalt.err (!%p2917_p13)
}
  0xc3   : > { %2675 = dma.hbm_to_vmem [thread:$0]  (!%p4400_p9), %s3294_s15, 12288, %s3342_s22, %s3262_s8, %s3026_s17, %s3026_s17, %s3027_s30  }
  0xc4   : > { %p4401_p0 = scmp.ne.s32.totalorder %s4377_s7, 0 }
  0xc6   : > { %356 = sbr.rel (%p4401_p0) target bundleno = 809 (0x329), region = 44 }
  0xcd   : > { %s4402_s1 = sld [smem:[#allocation21_spill]]  ;;  %s4403_s12 = sld [smem:[#allocation25_spill]] }
  0xce   : > { %s358_s14 = sand.u32 1, %s3101_s27  }
  0xcf   : > { %s359_s13 = scalar_lea.sflag [#allocation4], %s358_s14 }
  0xd3   : > { %s3373_s10 = sand.u32 1, %s4402_s1   ;;  %p4404_p4 = scmp.ne.s32.totalorder %s4403_s12, 0 }
  0xd4   : > { %s3376_s21 = sshll.u32 %s3373_s10, 8 }
  0xd5   : > { %s3379_s6 = scalar_lea.vmem [#allocation3], %s3376_s21 }
  0xd6   : > { %2974 = dma.done.wait (%p4404_p4), %s359_s13, 4096  }
  0xd7   : > { %2976 = vsyncadd (%p4404_p4), %s359_s13, 4294963200  ;;  %p4405_p9 = scmp.eq.s32.totalorder %s3101_s27, 0 }
  0xd9   : > { %2978 = dma.done.wait (%p4405_p9), [#allocation7], 6144   ;;  %p4406_p8 = pmov %p4405_p9 }
  0xda   : > { %s3390_s7 = scalar_lea.vmem [#allocation8], %s3376_s21 }
  0xdb   : > { %2980 = vsyncadd (%p4406_p8), [#allocation7], 4294961152 }
  0xdc   : > { %2982 = dma.done.wait (%p4404_p4), %s359_s13, 4096  }
  0xdd   : > { %2984 = vsyncadd (%p4404_p4), %s359_s13, 4294963200  ;;  %p4407_p1 = pmov %p4406_p8 }
  0xdf   : > { %2986 = dma.done.wait (%p4407_p1), [#allocation7], 48   ;;  %p4408_p6 = pmov %p4407_p1 }
  0xe0   : > { %s2637_s8 = smul.u32 768, %s3373_s10  ;;  %s385_s17 = scalar_lea.sflag [#allocation11], %s358_s14 }
  0xe1   : > { %2988 = vsyncadd (%p4408_p6), [#allocation7], 4294967248 }
  0xe2   : > { %s3403_s30 = scalar_lea.vmem [#allocation10], %s2637_s8 }
  0xe3   : > { %2990 = dma.done.wait (%p4404_p4), %s385_s17, 24576  }
  0xe4   : > { %2992 = vsyncadd (%p4404_p4), %s385_s17, 4294942720  ;;  %v503_v0 = vld [vmem:[#allocation6 + $0x80] sm:$0xff]  ;;  %v504_v1 = vld [vmem:[#allocation6 + $0x88] sm:$0xff]  ;;  %v3031_v34 = vmov 0   ;;  %s3514_s27 = scalar_lea.vmem [#allocation12], %s2637_s8  ;;  %vm2093_vm0 = vcmask 7168  }
  0xe5   : > { %v519_v2 = vld [vmem:[#allocation6 + $0x100] sm:$0xff]  ;;  %v2569_v3 = vpack.c.bf16 %v504_v1, %v503_v0  ;;  %v520_v4 = vld [vmem:[#allocation6 + $0x108] sm:$0xff]  ;;  %v505_v9 = vld [vmem:[#allocation6 + $0x90] sm:$0xff]  ;;  %2743 = vset.pattern.permute.xlu0 %v3031_v34  ;;  %2744 = vset.pattern.permute.xlu1 %v3031_v34  ;;  %s4200_s15 = scalar_lea.vmem [#allocation13], %s3376_s21  ;;  %s4427_s19 = sld [smem:[#allocation23_spill]] }
  0xe6   : > { %v487_v5 = vld [vmem:[#allocation6] sm:$0xff]  ;;  %v488_v6 = vld [vmem:[#allocation6 + $0x8] sm:$0xff]  ;;  %v2601_v7 = vpack.c.bf16 %v520_v4, %v519_v2  ;;  %v506_v10 = vld [vmem:[#allocation6 + $0x98] sm:$0xff]  ;;  %s4428_s0 = sld [smem:[#allocation28_spill]]  ;;  %s2140_s22 = sshll.u32 %s4200_s15, 4  ;;  %s4271_s22 = int_to_ptr.vmem [resolvable:$true] %s2140_s22 }
  0xe7   : > { %v2571_v8 = vpack.c.bf16 %v488_v6, %v487_v5  ;;  %v521_v11 = vld [vmem:[#allocation6 + $0x110] sm:$0xff]  ;;  %2570 = vmatprep.subr.bf16.mxu0 %v2569_v3  ;;  %v2573_v12 = vpack.c.bf16 %v506_v10, %v505_v9  ;;  %v522_v13 = vld [vmem:[#allocation6 + $0x118] sm:$0xff]  ;;  %v507_v17 = vld [vmem:[#allocation6 + $0xa0] sm:$0xff]  ;;  %s4429_s29 = sld [smem:[#allocation42_spill]]  ;;  %s2127_s23 = scalar_lea.sflag [#allocation5], %s3373_s10 }
  0xe8   : > { %2602 = vmatprep.subr.bf16.mxu1 %v2601_v7  ;;  %v2605_v14 = vpack.c.bf16 %v522_v13, %v521_v11  ;;  %v489_v15 = vld [vmem:[#allocation6 + $0x10] sm:$0xff]  ;;  %v490_v16 = vld [vmem:[#allocation6 + $0x18] sm:$0xff]  ;;  %v508_v18 = vld [vmem:[#allocation6 + $0xa8] sm:$0xff]  ;;  %s2921_s16 = scalar_lea.vmem %s4271_s22, 4096  ;;  %s3032_s11 = smov [#allocation13]  }
  0xe9   : > { %2572 = vmatpush3.bf16.xpose.msra.mxu0 %v2571_v8  ;;  %2604 = vmatpush3.bf16.xpose.msra.mxu1 %v2601_v7  ;;  %v523_v19 = vld [vmem:[#allocation6 + $0x120] sm:$0xff]  ;;  %v524_v20 = vld [vmem:[#allocation6 + $0x128] sm:$0xff]  ;;  %v2575_v21 = vpack.c.bf16 %v490_v16, %v489_v15  ;;  %v2577_v22 = vpack.c.bf16 %v508_v18, %v507_v17  ;;  %v509_v26 = vld [vmem:[#allocation6 + $0xb0] sm:$0xff]  ;;  %p2922_p10 = scmp.ne.s32.totalorder %s4271_s22, %s2921_s16  ;;  %s2925_s20 = sshll.u32 %s3032_s11, 4  ;;  %s2926_s20 = int_to_ptr.vmem [resolvable:$false] %s2925_s20 }
  0xea   : > { %2574 = vmatprep.subr.bf16.mxu0 %v2573_v12  ;;  %2606 = vmatprep.subr.bf16.mxu1 %v2605_v14  ;;  %v2609_v23 = vpack.c.bf16 %v524_v20, %v523_v19  ;;  %v491_v24 = vld [vmem:[#allocation6 + $0x20] sm:$0xff]  ;;  %v492_v25 = vld [vmem:[#allocation6 + $0x28] sm:$0xff]  ;;  %v510_v27 = vld [vmem:[#allocation6 + $0xb8] sm:$0xff]  ;;  %s2927_s18 = scalar_lea.vmem %s2926_s20, 8192  ;;  %p2928_p7 = scmp.lt.s32.totalorder %s4271_s22, %s2926_s20 }
  0xeb   : > { %v525_v28 = vld [vmem:[#allocation6 + $0x130] sm:$0xff]  ;;  %v526_v29 = vld [vmem:[#allocation6 + $0x138] sm:$0xff]  ;;  %v2579_v30 = vpack.c.bf16 %v492_v25, %v491_v24  ;;  %v3410_v31 = vld [vmem:[%s3379_s6] sm:$0xff]  ;;  %v2581_v32 = vpack.c.bf16 %v510_v27, %v509_v26  ;;  %s2344_s4 = sshll.u32 %s4427_s19, 12  ;;  %p2929_p2 = scmp.lt.s32.totalorder %s2927_s18, %s2921_s16 }
  0xec   : > { %2377 = vmatprep.mubr.f32.mxu0 %v3410_v31  ;;  %2521 = vmatprep.mubr.f32.mxu1 %v3410_v31  ;;  %v2613_v33 = vpack.c.bf16 %v526_v29, %v525_v28  ;;  %v493_v35 = vld [vmem:[#allocation6 + $0x30] sm:$0xff]  ;;  %v494_v36 = vld [vmem:[#allocation6 + $0x38] sm:$0xff]  ;;  %v511_v37 = vld [vmem:[#allocation6 + $0xc0] sm:$0xff]  ;;  %p4430_p12 = scmp.ne.s32.totalorder %s4428_s0, 0 }
  0xed   : > { %v512_v38 = vld [vmem:[#allocation6 + $0xc8] sm:$0xff]  ;;  %v527_v39 = vld [vmem:[#allocation6 + $0x140] sm:$0xff]  ;;  %v2583_v41 = vpack.c.bf16 %v494_v36, %v493_v35  ;;  %v569_v45 = vld [vmem:[%s3390_s7 + $0x10] sm:$0xff]  ;;  %s4269_s28 = scalar_lea.hbm %s4429_s29, %s2344_s4  ;;  %p2930_p11 = por %p2929_p2, %p2928_p7 }
  0xee   : > { %v528_v40 = vld [vmem:[#allocation6 + $0x148] sm:$0xff]  ;;  %v2585_v42 = vpack.c.bf16 %v512_v38, %v511_v37  ;;  %v567_v44 = vld [vmem:[%s3390_s7] sm:$0xff]  ;;  %611 = vperm.xlu1 %2744, %v569_v45   ;;  %v513_v49 = vld [vmem:[#allocation6 + $0xd0] sm:$0xff]  ;;  %p2923_p5 = pnand %p2922_p10, %p4430_p12 }
  0xef   : > { %v2617_v43 = vpack.c.bf16 %v528_v40, %v527_v39  ;;  %601 = vperm.xlu0 %2743, %v567_v44   ;;  %v568_v46 = vld [vmem:[%s3390_s7 + $0x8] sm:$0xff]  ;;  %v495_v47 = vld [vmem:[#allocation6 + $0x40] sm:$0xff]  ;;  %v514_v50 = vld [vmem:[#allocation6 + $0xd8] sm:$0xff] }
  0xf0   : > { %v496_v48 = vld [vmem:[#allocation6 + $0x48] sm:$0xff]  ;;  %v529_v51 = vld [vmem:[#allocation6 + $0x150] sm:$0xff]  ;;  %v530_v52 = vld [vmem:[#allocation6 + $0x158] sm:$0xff]  ;;  %v2589_v56 = vpack.c.bf16 %v514_v50, %v513_v49  ;;  %p2924_p3 = pneg %p2923_p5 }
  0xf1   : > { %2576 = vmatpush3.bf16.xpose.msra.mxu0 %v2575_v21  ;;  %2608 = vmatpush3.bf16.xpose.msra.mxu1 %v2605_v14  ;;  %v570_v53 = vld [vmem:[%s3390_s7 + $0x18] sm:$0xff]  ;;  %v2587_v54 = vpack.c.bf16 %v496_v48, %v495_v47  ;;  %v571_v55 = vld [vmem:[%s3390_s7 + $0x20] sm:$0xff]  ;;  %v2621_v57 = vpack.c.bf16 %v530_v52, %v529_v51  ;;  %v572_v58 = vld [vmem:[%s3390_s7 + $0x28] sm:$0xff] }
  0xf2   : > { %2578 = vmatprep.subr.bf16.mxu0 %v2577_v22  ;;  %2610 = vmatprep.subr.bf16.mxu1 %v2609_v23  ;;  %v573_v59 = vld [vmem:[%s3390_s7 + $0x30] sm:$0xff]  ;;  %v498_v61 = vld [vmem:[#allocation6 + $0x58] sm:$0xff]  ;;  %v515_v62 = vld [vmem:[#allocation6 + $0xe0] sm:$0xff]  ;;  %p2931_p13 = pnand %p2930_p11, %p2924_p3 }
  0xf3   : > { %606 = vperm.xlu0 %2743, %v568_v46   ;;  %616 = vperm.xlu1 %2744, %v570_v53   ;;  %v497_v60 = vld [vmem:[#allocation6 + $0x50] sm:$0xff]  ;;  %v516_v63 = vld [vmem:[#allocation6 + $0xe8] sm:$0xff]  ;;  %v531_v0 = vld [vmem:[#allocation6 + $0x160] sm:$0xff] }
  0xf4   : > { %v532_v1 = vld [vmem:[#allocation6 + $0x168] sm:$0xff]  ;;  %v574_v2 = vld [vmem:[%s3390_s7 + $0x38] sm:$0xff]  ;;  %v2591_v3 = vpack.c.bf16 %v498_v61, %v497_v60  ;;  %v575_v4 = vld [vmem:[%s3390_s7 + $0x40] sm:$0xff]  ;;  %v2593_v5 = vpack.c.bf16 %v516_v63, %v515_v62 }
  0xf5   : > { %v2625_v6 = vpack.c.bf16 %v532_v1, %v531_v0  ;;  %v576_v7 = vld [vmem:[%s3390_s7 + $0x48] sm:$0xff]  ;;  %v577_v8 = vld [vmem:[%s3390_s7 + $0x50] sm:$0xff]  ;;  %v499_v9 = vld [vmem:[#allocation6 + $0x60] sm:$0xff] }
  0xf6   : > { %v500_v10 = vld [vmem:[#allocation6 + $0x68] sm:$0xff]  ;;  %v517_v11 = vld [vmem:[#allocation6 + $0xf0] sm:$0xff]  ;;  %v518_v12 = vld [vmem:[#allocation6 + $0xf8] sm:$0xff] }
  0xf7   : > { %621 = vperm.xlu0 %2743, %v571_v55   ;;  %626 = vperm.xlu1 %2744, %v572_v58   ;;  %v533_v13 = vld [vmem:[#allocation6 + $0x170] sm:$0xff]  ;;  %v534_v14 = vld [vmem:[#allocation6 + $0x178] sm:$0xff]  ;;  %v2595_v16 = vpack.c.bf16 %v500_v10, %v499_v9  ;;  %v579_v17 = vld [vmem:[%s3390_s7 + $0x60] sm:$0xff]  ;;  %v2597_v18 = vpack.c.bf16 %v518_v12, %v517_v11  ;;  %v1243_v11 = vlaneseq }
  0xf8   : > { %v578_v15 = vld [vmem:[%s3390_s7 + $0x58] sm:$0xff]  ;;  %v2629_v19 = vpack.c.bf16 %v534_v14, %v533_v13  ;;  %v580_v20 = vld [vmem:[%s3390_s7 + $0x68] sm:$0xff]  ;;  %v581_v21 = vld [vmem:[%s3390_s7 + $0x70] sm:$0xff] }
  0xf9   : > { %2580 = vmatpush3.bf16.xpose.msra.mxu0 %v2579_v30  ;;  %2612 = vmatpush3.bf16.xpose.msra.mxu1 %v2609_v23  ;;  %v501_v22 = vld [vmem:[#allocation6 + $0x70] sm:$0xff]  ;;  %v502_v23 = vld [vmem:[#allocation6 + $0x78] sm:$0xff]  ;;  %v583_v26 = vld [vmem:[%s3390_s7 + $0x80] sm:$0xff]  ;;  %v1244_v13 = vshrl.u32 %v1243_v11, 7 }
  0xfa   : > { %2582 = vmatprep.subr.bf16.mxu0 %v2581_v32  ;;  %2614 = vmatprep.subr.bf16.mxu1 %v2613_v33  ;;  %v582_v24 = vld [vmem:[%s3390_s7 + $0x78] sm:$0xff]  ;;  %v2599_v25 = vpack.c.bf16 %v502_v23, %v501_v22  ;;  %v584_v27 = vld [vmem:[%s3390_s7 + $0x88] sm:$0xff]  ;;  %v585_v28 = vld [vmem:[%s3390_s7 + $0x90] sm:$0xff] }
  0xfb   : > { %631 = vperm.xlu0 %2743, %v573_v59   ;;  %636 = vperm.xlu1 %2744, %v574_v2   ;;  %v586_v29 = vld [vmem:[%s3390_s7 + $0x98] sm:$0xff]  ;;  %v587_v30 = vld [vmem:[%s3390_s7 + $0xa0] sm:$0xff]  ;;  %v536_v32 = vld [vmem:[%s3379_s6 + $0x8] sm:$0xff] }
  0xfc   : > { %v588_v34 = vld [vmem:[%s3390_s7 + $0xa8] sm:$0xff]  ;;  %v589_v35 = vld [vmem:[%s3390_s7 + $0xb0] sm:$0xff]  ;;  %v538_v36 = vld [vmem:[%s3379_s6 + $0x18] sm:$0xff] }
  0xfd   : > { %v539_v37 = vld [vmem:[%s3379_s6 + $0x20] sm:$0xff]  ;;  %v590_v38 = vld [vmem:[%s3390_s7 + $0xb8] sm:$0xff]  ;;  %v540_v39 = vld [vmem:[%s3379_s6 + $0x28] sm:$0xff] }
  0xfe   : > { %v541_v40 = vld [vmem:[%s3379_s6 + $0x30] sm:$0xff]  ;;  %v543_v44 = vld [vmem:[%s3379_s6 + $0x40] sm:$0xff]  ;;  %v594_v45 = vld [vmem:[%s3390_s7 + $0xd8] sm:$0xff] }
  0xff   : > { %641 = vperm.xlu0 %2743, %v575_v4   ;;  %646 = vperm.xlu1 %2744, %v576_v7   ;;  %v595_v46 = vld [vmem:[%s3390_s7 + $0xe0] sm:$0xff]  ;;  %v544_v47 = vld [vmem:[%s3379_s6 + $0x48] sm:$0xff]  ;;  %v545_v48 = vld [vmem:[%s3379_s6 + $0x50] sm:$0xff] }
 0x100   : > { %v596_v49 = vld [vmem:[%s3390_s7 + $0xe8] sm:$0xff]  ;;  %v597_v50 = vld [vmem:[%s3390_s7 + $0xf0] sm:$0xff]  ;;  %v546_v51 = vld [vmem:[%s3379_s6 + $0x58] sm:$0xff] }
 0x101   : > { %2584 = vmatpush3.bf16.xpose.msra.mxu0 %v2583_v41  ;;  %2616 = vmatpush3.bf16.xpose.msra.mxu1 %v2613_v33  ;;  %v537_v33 = vld [vmem:[%s3379_s6 + $0x10] sm:$0xff]  ;;  %v592_v41 = vld [vmem:[%s3390_s7 + $0xc8] sm:$0xff]  ;;  %v547_v52 = vld [vmem:[%s3379_s6 + $0x60] sm:$0xff] }
 0x102   : > { %2586 = vmatprep.subr.bf16.mxu0 %v2585_v42  ;;  %2618 = vmatprep.subr.bf16.mxu1 %v2617_v43  ;;  %v593_v42 = vld [vmem:[%s3390_s7 + $0xd0] sm:$0xff]  ;;  %v598_v53 = vld [vmem:[%s3390_s7 + $0xf8] sm:$0xff]  ;;  %v552_v58 = vld [vmem:[%s3379_s6 + $0x88] sm:$0xff] }
 0x103   : > { %651 = vperm.xlu0 %2743, %v577_v8   ;;  %656 = vperm.xlu1 %2744, %v578_v15   ;;  %v549_v55 = vld [vmem:[%s3379_s6 + $0x70] sm:$0xff]  ;;  %v554_v60 = vld [vmem:[%s3379_s6 + $0x98] sm:$0xff]  ;;  %v555_v61 = vld [vmem:[%s3379_s6 + $0xa0] sm:$0xff] }
 0x104   : > { %v553_v59 = vld [vmem:[%s3379_s6 + $0x90] sm:$0xff]  ;;  %v556_v62 = vld [vmem:[%s3379_s6 + $0xa8] sm:$0xff]  ;;  %v558_v0 = vld [vmem:[%s3379_s6 + $0xb8] sm:$0xff] }
 0x105   : > { %v557_v63 = vld [vmem:[%s3379_s6 + $0xb0] sm:$0xff]  ;;  %v559_v1 = vld [vmem:[%s3379_s6 + $0xc0] sm:$0xff]  ;;  %v560_v2 = vld [vmem:[%s3379_s6 + $0xc8] sm:$0xff] }
 0x106   : > { %v562_v4 = vld [vmem:[%s3379_s6 + $0xd8] sm:$0xff]  ;;  %v565_v7 = vld [vmem:[%s3379_s6 + $0xf0] sm:$0xff] }
 0x107   : > { %661 = vperm.xlu0 %2743, %v579_v17   ;;  %666 = vperm.xlu1 %2744, %v580_v20   ;;  %v566_v8 = vld [vmem:[%s3379_s6 + $0xf8] sm:$0xff]  ;;  %v1241_v17 = vld [vmem:[#allocation9] sm:$0x7] }
 0x109   : > { %2588 = vmatpush3.bf16.xpose.msra.mxu0 %v2587_v54  ;;  %2620 = vmatpush3.bf16.xpose.msra.mxu1 %v2617_v43  ;;  %v542_v43 = vld [vmem:[%s3379_s6 + $0x38] sm:$0xff]  ;;  %v548_v54 = vld [vmem:[%s3379_s6 + $0x68] sm:$0xff] }
 0x10a   : > { %2590 = vmatprep.subr.bf16.mxu0 %v2589_v56  ;;  %2622 = vmatprep.subr.bf16.mxu1 %v2621_v57  ;;  %v550_v56 = vld [vmem:[%s3379_s6 + $0x78] sm:$0xff] }
 0x10b   : > { %671 = vperm.xlu0 %2743, %v581_v21   ;;  %676 = vperm.xlu1 %2744, %v582_v24  }
 0x10f   : > { %681 = vperm.xlu0 %2743, %v583_v26   ;;  %686 = vperm.xlu1 %2744, %v584_v27  }
 0x111   : > { %2592 = vmatpush3.bf16.xpose.msra.mxu0 %v2591_v3  ;;  %2624 = vmatpush3.bf16.xpose.msra.mxu1 %v2621_v57  ;;  %v551_v57 = vld [vmem:[%s3379_s6 + $0x80] sm:$0xff]  ;;  %v561_v3 = vld [vmem:[%s3379_s6 + $0xd0] sm:$0xff] }
 0x112   : > { %2594 = vmatprep.subr.bf16.mxu0 %v2593_v5  ;;  %2626 = vmatprep.subr.bf16.mxu1 %v2625_v6  ;;  %v563_v5 = vld [vmem:[%s3379_s6 + $0xe0] sm:$0xff] }
 0x113   : > { %691 = vperm.xlu0 %2743, %v585_v28   ;;  %696 = vperm.xlu1 %2744, %v586_v29   ;;  %v1354_v29 = vld [vmem:[%s3403_s30] sm:$0xff] }
 0x117   : > { %701 = vperm.xlu0 %2743, %v587_v30   ;;  %706 = vperm.xlu1 %2744, %v588_v34  }
 0x119   : > { %2596 = vmatpush3.bf16.xpose.msra.mxu0 %v2595_v16  ;;  %2628 = vmatpush3.bf16.xpose.msra.mxu1 %v2625_v6  ;;  %v564_v6 = vld [vmem:[%s3379_s6 + $0xe8] sm:$0xff]  ;;  %v1245_v16 = vsub.s32 0, %v1244_v13 }
 0x11a   : > { %2598 = vmatprep.subr.bf16.mxu0 %v2597_v18  ;;  %2630 = vmatprep.subr.bf16.mxu1 %v2629_v19  ;;  %v1249_v18 = vsub.s32 1, %v1244_v13 }
 0x11b   : > { %711 = vperm.xlu0 %2743, %v589_v35   ;;  %716 = vperm.xlu1 %2744, %v590_v38   ;;  %v3486_v21 = vrot.slane %v1241_v17, %v1245_v16  ;;  %v1355_v35 = vld [vmem:[%s3403_s30 + $0x8] sm:$0xff] }
 0x11c   : > { %v3488_v23 = vrot.slane %v1241_v17, %v1249_v18 }
 0x11f   : > { %726 = vperm.xlu1 %2744, %v592_v41  }
 0x121   : > { %2600 = vmatpush3.bf16.xpose.msra.mxu0 %v2599_v25  ;;  %2632 = vmatpush3.bf16.xpose.msra.mxu1 %v2629_v19  ;;  %v1253_v19 = vsub.s32 2, %v1244_v13  ;;  %v1360_v13 = vld [vmem:[%s3403_s30 + $0x30] sm:$0xff] }
 0x123   : > { %736 = vperm.xlu1 %2744, %v594_v45   ;;  %v3492_v28 = vrot.slane %v1241_v17, %v1253_v19 }
 0x127   : > { %746 = vperm.xlu1 %2744, %v596_v49  }
 0x128   : > { %2378 = vmatmul.mubr.f32.vlgmr.msra.gmra.mrb[0].mxu0 %v3410_v31  ;;  %2522 = vmatmul.mubr.f32.vlgmr.msra.gmra.mrb[0].mxu1 %v536_v32  ;;  %v591_v31 = vld [vmem:[%s3390_s7 + $0xc0] sm:$0xff] }
 0x129   : > { %2379 = vmatprep.mubr.f32.mxu0 %v536_v32  ;;  %2524 = vmatprep.mubr.f32.mxu1 %v537_v33 }
 0x12a   : > { %721 = vperm.xlu0 %2743, %v591_v31   ;;  %v1356_v31 = vld [vmem:[%s3403_s30 + $0x10] sm:$0xff] }
 0x12b   : > { %756 = vperm.xlu1 %2744, %v598_v53  }
 0x12c   : > { %2380 = vmatmul.mubr.f32.gmra.mrb[2].mxu0 %v536_v32  ;;  %2525 = vmatmul.mubr.f32.gmra.mrb[2].mxu1 %v538_v36 }
 0x12d   : > { %2381 = vmatprep.mubr.f32.mxu0 %v537_v33  ;;  %2527 = vmatprep.mubr.f32.mxu1 %v539_v37 }
 0x12e   : > { %731 = vperm.xlu0 %2743, %v593_v42  }
 0x130   : > { %2382 = vmatmul.mubr.f32.gmra.mrb[4].mxu0 %v537_v33  ;;  %2528 = vmatmul.mubr.f32.gmra.mrb[4].mxu1 %v540_v39 }
 0x131   : > { %2383 = vmatprep.mubr.f32.mxu0 %v538_v36  ;;  %2530 = vmatprep.mubr.f32.mxu1 %v541_v40 }
 0x132   : > { %741 = vperm.xlu0 %2743, %v595_v46  }
 0x134   : > { %2384 = vmatmul.mubr.f32.gmra.mrb[6].mxu0 %v538_v36  ;;  %2531 = vmatmul.mubr.f32.gmra.mrb[6].mxu1 %v542_v43 }
 0x135   : > { %2385 = vmatprep.mubr.f32.mxu0 %v539_v37  ;;  %2533 = vmatprep.mubr.f32.mxu1 %v543_v44 }
 0x136   : > { %751 = vperm.xlu0 %2743, %v597_v50  }
 0x138   : > { %2386 = vmatmul.mubr.f32.gmra.mrb[8].mxu0 %v539_v37  ;;  %2534 = vmatmul.mubr.f32.gmra.mrb[8].mxu1 %v544_v47  ;;  %v1359_v37 = vld [vmem:[%s3403_s30 + $0x28] sm:$0xff] }
 0x139   : > { %2387 = vmatprep.mubr.f32.mxu0 %v540_v39  ;;  %2536 = vmatprep.mubr.f32.mxu1 %v545_v48 }
 0x13c   : > { %2388 = vmatmul.mubr.f32.gmra.mrb[10].mxu0 %v540_v39  ;;  %2537 = vmatmul.mubr.f32.gmra.mrb[10].mxu1 %v546_v51 }
 0x13d   : > { %2389 = vmatprep.mubr.f32.mxu0 %v541_v40  ;;  %2539 = vmatprep.mubr.f32.mxu1 %v547_v52 }
 0x140   : > { %2390 = vmatmul.mubr.f32.gmra.mrb[12].mxu0 %v541_v40  ;;  %2540 = vmatmul.mubr.f32.gmra.mrb[12].mxu1 %v548_v54 }
 0x141   : > { %2391 = vmatprep.mubr.f32.mxu0 %v542_v43  ;;  %2542 = vmatprep.mubr.f32.mxu1 %v549_v55 }
 0x144   : > { %2392 = vmatmul.mubr.f32.gmra.mrb[14].mxu0 %v542_v43  ;;  %2543 = vmatmul.mubr.f32.gmra.mrb[14].mxu1 %v550_v56 }
 0x145   : > { %2393 = vmatprep.mubr.f32.mxu0 %v543_v44  ;;  %2545 = vmatprep.mubr.f32.mxu1 %v551_v57 }
 0x148   : > { %2394 = vmatmul.mubr.f32.gmra.mrb[16].mxu0 %v543_v44  ;;  %2546 = vmatmul.mubr.f32.gmra.mrb[16].mxu1 %v552_v58 }
 0x149   : > { %2395 = vmatprep.mubr.f32.mxu0 %v544_v47  ;;  %2548 = vmatprep.mubr.f32.mxu1 %v553_v59 }
 0x14c   : > { %2396 = vmatmul.mubr.f32.gmra.mrb[18].mxu0 %v544_v47  ;;  %2549 = vmatmul.mubr.f32.gmra.mrb[18].mxu1 %v554_v60 }
 0x14d   : > { %2397 = vmatprep.mubr.f32.mxu0 %v545_v48  ;;  %2551 = vmatprep.mubr.f32.mxu1 %v555_v61 }
 0x150   : > { %2398 = vmatmul.mubr.f32.gmra.mrb[20].mxu0 %v545_v48  ;;  %2552 = vmatmul.mubr.f32.gmra.mrb[20].mxu1 %v556_v62  ;;  %v1357_v48 = vld [vmem:[%s3403_s30 + $0x18] sm:$0xff] }
 0x151   : > { %2399 = vmatprep.mubr.f32.mxu0 %v546_v51  ;;  %2554 = vmatprep.mubr.f32.mxu1 %v557_v63 }
 0x154   : > { %2400 = vmatmul.mubr.f32.gmra.mrb[22].mxu0 %v546_v51  ;;  %2555 = vmatmul.mubr.f32.gmra.mrb[22].mxu1 %v558_v0 }
 0x155   : > { %2401 = vmatprep.mubr.f32.mxu0 %v547_v52  ;;  %2557 = vmatprep.mubr.f32.mxu1 %v559_v1 }
 0x158   : > { %2402 = vmatmul.mubr.f32.gmra.mrb[24].mxu0 %v547_v52  ;;  %2558 = vmatmul.mubr.f32.gmra.mrb[24].mxu1 %v560_v2 }
 0x159   : > { %2403 = vmatprep.mubr.f32.mxu0 %v548_v54  ;;  %2560 = vmatprep.mubr.f32.mxu1 %v561_v3 }
 0x15c   : > { %2404 = vmatmul.mubr.f32.gmra.mrb[26].mxu0 %v548_v54  ;;  %2561 = vmatmul.mubr.f32.gmra.mrb[26].mxu1 %v562_v4 }
 0x15d   : > { %2405 = vmatprep.mubr.f32.mxu0 %v549_v55  ;;  %2563 = vmatprep.mubr.f32.mxu1 %v563_v5 }
 0x160   : > { %2406 = vmatmul.mubr.f32.gmra.mrb[28].mxu0 %v549_v55  ;;  %2564 = vmatmul.mubr.f32.gmra.mrb[28].mxu1 %v564_v6 }
 0x161   : > { %2407 = vmatprep.mubr.f32.mxu0 %v550_v56  ;;  %2566 = vmatprep.mubr.f32.mxu1 %v565_v7 }
 0x164   : > { %2408 = vmatmul.mubr.f32.gmra.mrb[30].mxu0 %v550_v56  ;;  %2567 = vmatmul.mubr.f32.gmra.mrb[30].mxu1 %v566_v8 }
 0x165   : > { %2409 = vmatprep.mubr.f32.mxu0 %v551_v57 }
 0x168   : > { %2410 = vmatmul.mubr.f32.gmra.mrb[32].mxu0 %v551_v57  ;;  %v1358_v57 = vld [vmem:[%s3403_s30 + $0x20] sm:$0xff] }
 0x169   : > { %2411 = vmatprep.mubr.f32.mxu0 %v552_v58 }
 0x16c   : > { %2412 = vmatmul.mubr.f32.gmra.mrb[34].mxu0 %v552_v58  ;;  %v1365_v58 = vld [vmem:[%s3403_s30 + $0x58] sm:$0xff] }
 0x16d   : > { %2413 = vmatprep.mubr.f32.mxu0 %v553_v59  ;;  %v3478_v10 = vpop.permute.xlu1 %611 }
 0x16e   : > { %v602_v9 = vpop.permute.xlu0 %601 }
 0x170   : > { %2414 = vmatmul.mubr.f32.gmra.mrb[36].mxu0 %v553_v59 }
 0x171   : > { %2415 = vmatprep.mubr.f32.mxu0 %v554_v60 }
 0x172   : > { %v607_v12 = vpop.permute.xlu0 %606  ;;  %v3480_v14 = vpop.permute.xlu1 %616 }
 0x174   : > { %2416 = vmatmul.mubr.f32.gmra.mrb[38].mxu0 %v554_v60  ;;  %v1642_v60 = vld [vmem:[%s3514_s27] sm:$0xff] }
 0x175   : > { %2417 = vmatprep.mubr.f32.mxu0 %v555_v61 }
 0x176   : > { %v3482_v15 = vpop.permute.xlu0 %621  ;;  %v3484_v20 = vpop.permute.xlu1 %626 }
 0x178   : > { %2418 = vmatmul.mubr.f32.gmra.mrb[40].mxu0 %v555_v61 }
 0x179   : > { %2419 = vmatprep.mubr.f32.mxu0 %v556_v62 }
 0x17a   : > { %v3490_v24 = vpop.permute.xlu0 %631  ;;  %v3501_v41 = vpop.permute.xlu1 %636 }
 0x17c   : > { %2420 = vmatmul.mubr.f32.gmra.mrb[42].mxu0 %v556_v62 }
 0x17d   : > { %2421 = vmatprep.mubr.f32.mxu0 %v557_v63 }
 0x17e   : > { %v3506_v52 = vpop.permute.xlu0 %641 }
 0x180   : > { %2422 = vmatmul.mubr.f32.gmra.mrb[44].mxu0 %v557_v63 }
 0x181   : > { %2423 = vmatprep.mubr.f32.mxu0 %v558_v0 }
 0x184   : > { %2424 = vmatmul.mubr.f32.gmra.mrb[46].mxu0 %v558_v0 }
 0x185   : > { %2425 = vmatprep.mubr.f32.mxu0 %v559_v1 }
 0x188   : > { %2426 = vmatmul.mubr.f32.gmra.mrb[48].mxu0 %v559_v1  ;;  %v1362_v1 = vld [vmem:[%s3403_s30 + $0x40] sm:$0xff] }
 0x189   : > { %2427 = vmatprep.mubr.f32.mxu0 %v560_v2 }
 0x18c   : > { %2428 = vmatmul.mubr.f32.gmra.mrb[50].mxu0 %v560_v2  ;;  %v1643_v2 = vld [vmem:[%s3514_s27 + $0x8] sm:$0xff] }
 0x18d   : > { %2429 = vmatprep.mubr.f32.mxu0 %v561_v3 }
 0x190   : > { %2430 = vmatmul.mubr.f32.gmra.mrb[52].mxu0 %v561_v3 }
 0x191   : > { %2431 = vmatprep.mubr.f32.mxu0 %v562_v4 }
 0x194   : > { %2432 = vmatmul.mubr.f32.gmra.mrb[54].mxu0 %v562_v4 }
 0x195   : > { %2433 = vmatprep.mubr.f32.mxu0 %v563_v5 }
 0x198   : > { %2434 = vmatmul.mubr.f32.gmra.mrb[56].mxu0 %v563_v5 }
 0x199   : > { %2435 = vmatprep.mubr.f32.mxu0 %v564_v6 }
 0x19c   : > { %2436 = vmatmul.mubr.f32.gmra.mrb[58].mxu0 %v564_v6 }
 0x19d   : > { %2437 = vmatprep.mubr.f32.mxu0 %v565_v7 }
 0x1a0   : > { %2438 = vmatmul.mubr.f32.gmra.mrb[60].mxu0 %v565_v7 }
 0x1a1   : > { %2439 = vmatprep.mubr.f32.mxu0 %v566_v8 }
 0x1a4   : > { %2440 = vmatmul.mubr.f32.gmra.mrb[62].mxu0 %v566_v8 }
 0x1fb   : > { %v825_v22 = vpop.f32.mrb[0].mxu0  ;;  %v2523_v27 = vpop.f32.mrb[0].mxu1 }
 0x1fc   : > { %v826_v25 = vadd.f32 %v825_v22, %v602_v9  ;;  %v827_v26 = vpop.f32.mrb[1].mxu0  ;;  %v1082_v32 = vpop.f32.mrb[1].mxu1  ;;  %v1088_v33 = vadd.f32 %v2523_v27, %v607_v12  ;;  %v1361_v27 = vld [vmem:[%s3403_s30 + $0x38] sm:$0xff] }
 0x1fd   : > { %v828_v30 = vadd.f32 %v827_v26, %v602_v9  ;;  %v1083_v36 = vadd.f32 %v1082_v32, %v602_v9  ;;  %v1644_v9 = vld [vmem:[%s3514_s27 + $0x10] sm:$0xff]  ;;  %v3526_v22 = vpop.permute.xlu1 %646 }
 0x1fe   : > { %v1258_v34 = vadd.f32 %v3486_v21, %v826_v25  ;;  %v1263_v39 = vadd.f32 %v3492_v28, %v1088_v33 }
 0x1ff   : > { %v1259_v38 = vadd.f32 %v3488_v23, %v828_v30  ;;  %v831_v40 = vpop.f32.mrb[2].mxu0  ;;  %v1260_v43 = vadd.f32 %v3492_v28, %v1083_v36  ;;  %v2526_v46 = vpop.f32.mrb[2].mxu1  ;;  %v1645_v36 = vld [vmem:[%s3514_s27 + $0x18] sm:$0xff] }
 0x200   : > { %v1450_v42 = vsub.f32 %v1354_v29, %v1258_v34  ;;  %v832_v44 = vadd.f32 %v831_v40, %v607_v12  ;;  %v833_v45 = vpop.f32.mrb[3].mxu0  ;;  %v1098_v50 = vadd.f32 %v2526_v46, %v3480_v14  ;;  %v1092_v51 = vpop.f32.mrb[3].mxu1  ;;  %v1455_v53 = vsub.f32 %v1359_v37, %v1263_v39 }
 0x201   : > { %v1451_v47 = vsub.f32 %v1355_v35, %v1259_v38  ;;  %v834_v49 = vadd.f32 %v833_v45, %v607_v12  ;;  %v1452_v55 = vsub.f32 %v1356_v31, %v1260_v43  ;;  %v1093_v59 = vadd.f32 %v1092_v51, %v3478_v10  ;;  %v3534_v37 = vpop.permute.xlu0 %651  ;;  %v1363_v45 = vld [vmem:[%s3403_s30 + $0x48] sm:$0xff] }
 0x202   : > { %v1546_v54 = vmul.f32 %v1450_v42, %v1450_v42  ;;  %v1261_v56 = vadd.f32 %v3486_v21, %v832_v44  ;;  %v1269_v0 = vadd.f32 %v3492_v28, %v1098_v50  ;;  %v1551_v3 = vmul.f32 %v1455_v53, %v1455_v53  ;;  %v1647_v50 = vld [vmem:[%s3514_s27 + $0x28] sm:$0xff] }
 0x203   : > { %v1547_v61 = vmul.f32 %v1451_v47, %v1451_v47  ;;  %v1262_v62 = vadd.f32 %v3488_v23, %v834_v49  ;;  %v837_v63 = vpop.f32.mrb[4].mxu0  ;;  %v1548_v4 = vmul.f32 %v1452_v55, %v1452_v55  ;;  %v1266_v8 = vadd.f32 %v3492_v28, %v1093_v59  ;;  %v2529_v11 = vpop.f32.mrb[4].mxu1  ;;  %v1646_v49 = vld [vmem:[%s3514_s27 + $0x20] sm:$0xff]  ;;  %v1364_v55 = vld [vmem:[%s3403_s30 + $0x50] sm:$0xff] }
 0x204   : > { %v1453_v5 = vsub.f32 %v1357_v48, %v1261_v56  ;;  %v838_v6 = vadd.f32 %v837_v63, %v3478_v10  ;;  %v839_v7 = vpop.f32.mrb[5].mxu0  ;;  %v1461_v17 = vsub.f32 %v1365_v58, %v1269_v0  ;;  %v1738_v18 = vmul.f32 %v1642_v60, %v1546_v54  ;;  %v1102_v19 = vpop.f32.mrb[5].mxu1  ;;  %v1368_v58 = vld [vmem:[%s3403_s30 + $0x70] sm:$0xff] }
 0x205   : > { %v1454_v12 = vsub.f32 %v1358_v57, %v1262_v62  ;;  %v840_v16 = vadd.f32 %v839_v7, %v3478_v10  ;;  %v1458_v29 = vsub.f32 %v1362_v1, %v1266_v8  ;;  %v1739_v30 = vmul.f32 %v1643_v2, %v1547_v61  ;;  %v1371_v57 = vld [vmem:[%s3403_s30 + $0x88] sm:$0xff]  ;;  %v1648_v0 = vld [vmem:[%s3514_s27 + $0x30] sm:$0xff]  ;;  %v3553_v1 = vpop.permute.xlu1 %656 }
 0x206   : > { %v1549_v25 = vmul.f32 %v1453_v5, %v1453_v5  ;;  %v1264_v26 = vadd.f32 %v3486_v21, %v838_v6  ;;  %v3531_v34 = vmul.f32 %v1461_v17, %v1461_v17  ;;  %v1740_v10 = vmul.f32 %v1644_v9, %v1548_v4  ;;  %v1649_v17 = vld [vmem:[%s3514_s27 + $0x38] sm:$0xff] }
 0x207   : > { %v1550_v32 = vmul.f32 %v1454_v12, %v1454_v12  ;;  %v1265_v33 = vadd.f32 %v3488_v23, %v840_v16  ;;  %v843_v35 = vpop.f32.mrb[6].mxu0  ;;  %v3536_v31 = vmul.f32 %v1458_v29, %v1458_v29  ;;  %v1898_v42 = vadd.f32 %v1739_v30, %v1738_v18  ;;  %v2532_v43 = vpop.f32.mrb[6].mxu1 }
 0x208   : > { %v1456_v38 = vsub.f32 %v1360_v13, %v1264_v26  ;;  %v844_v39 = vadd.f32 %v843_v35, %v3480_v14  ;;  %v845_v40 = vpop.f32.mrb[7].mxu0  ;;  %v1108_v47 = vadd.f32 %v2529_v11, %v3484_v20  ;;  %v1103_v48 = vadd.f32 %v1102_v19, %v3482_v15  ;;  %v1112_v51 = vpop.f32.mrb[7].mxu1  ;;  %v1366_v11 = vld [vmem:[%s3403_s30 + $0x60] sm:$0xff] }
 0x209   : > { %v1457_v44 = vsub.f32 %v1361_v27, %v1265_v33  ;;  %v846_v46 = vadd.f32 %v845_v40, %v3480_v14  ;;  %v1930_v56 = vadd.f32 %v1898_v42, %v1740_v10  ;;  %v1741_v59 = vmul.f32 %v1645_v36, %v1549_v25  ;;  %v3561_v18 = vpop.permute.xlu0 %661  ;;  %v1367_v27 = vld [vmem:[%s3403_s30 + $0x68] sm:$0xff] }
 0x20a   : > { %v1552_v53 = vmul.f32 %v1456_v38, %v1456_v38  ;;  %v1267_v54 = vadd.f32 %v3486_v21, %v844_v39  ;;  %v1275_v62 = vadd.f32 %v3492_v28, %v1108_v47  ;;  %v1272_v63 = vadd.f32 %v3492_v28, %v1103_v48  ;;  %v1369_v47 = vld [vmem:[%s3403_s30 + $0x78] sm:$0xff] }
 0x20b   : > { %v1553_v60 = vmul.f32 %v1457_v44, %v1457_v44  ;;  %v1268_v14 = vadd.f32 %v3488_v23, %v846_v46  ;;  %v849_v61 = vpop.f32.mrb[8].mxu0  ;;  %2029 = vadd.xlane.f32.xlu0 %v1930_v56  ;;  %v1742_v6 = vmul.f32 %v1646_v49, %v1550_v32  ;;  %v1743_v7 = vmul.f32 %v1647_v50, %v1551_v3  ;;  %v3556_v8 = vpop.f32.mrb[8].mxu1  ;;  %v1650_v3 = vld [vmem:[%s3514_s27 + $0x40] sm:$0xff]  ;;  %v1651_v44 = vld [vmem:[%s3514_s27 + $0x48] sm:$0xff] }
 0x20c   : > { %v1459_v2 = vsub.f32 %v1363_v45, %v1267_v54  ;;  %v850_v4 = vadd.f32 %v849_v61, %v3482_v15  ;;  %v851_v5 = vpop.f32.mrb[9].mxu0  ;;  %v1467_v13 = vsub.f32 %v1371_v57, %v1275_v62  ;;  %v1464_v16 = vsub.f32 %v1368_v58, %v1272_v63  ;;  %v3563_v19 = vpop.f32.mrb[9].mxu1  ;;  %v1370_v57 = vld [vmem:[%s3403_s30 + $0x80] sm:$0xff]  ;;  %v1653_v63 = vld [vmem:[%s3514_s27 + $0x58] sm:$0xff] }
 0x20d   : > { %v1460_v9 = vsub.f32 %v1364_v55, %v1268_v14  ;;  %v852_v12 = vadd.f32 %v851_v5, %v3482_v15  ;;  %v1899_v29 = vadd.f32 %v1742_v6, %v1741_v59  ;;  %v1744_v30 = vmul.f32 %v1648_v0, %v1552_v53  ;;  %v3581_v53 = vpop.permute.xlu1 %666  ;;  %v1377_v59 = vld [vmem:[%s3403_s30 + $0xb8] sm:$0xff]  ;;  %v1374_v62 = vld [vmem:[%s3403_s30 + $0xa0] sm:$0xff] }
 0x20e   : > { %v1555_v25 = vmul.f32 %v1459_v2, %v1459_v2  ;;  %v1270_v26 = vadd.f32 %v3486_v21, %v850_v4  ;;  %v3569_v15 = vmul.f32 %v1467_v13, %v1467_v13  ;;  %v3571_v35 = vmul.f32 %v1464_v16, %v1464_v16  ;;  %v3594_v2 = vpop.permute.xlu0 %671 }
 0x20f   : > { %v1556_v32 = vmul.f32 %v1460_v9, %v1460_v9  ;;  %v1271_v33 = vadd.f32 %v3488_v23, %v852_v12  ;;  %v855_v10 = vpop.f32.mrb[10].mxu0  ;;  %v1931_v39 = vadd.f32 %v1899_v29, %v1743_v7  ;;  %v1745_v42 = vmul.f32 %v1649_v17, %v1553_v60  ;;  %v3575_v45 = vpop.f32.mrb[10].mxu1  ;;  %v1372_v12 = vld [vmem:[%s3403_s30 + $0x90] sm:$0xff] }
 0x210   : > { %v1462_v36 = vsub.f32 %v1366_v11, %v1270_v26  ;;  %v856_v38 = vadd.f32 %v855_v10, %v3484_v20  ;;  %v857_v40 = vpop.f32.mrb[11].mxu0  ;;  %v1746_v49 = vmul.f32 %v1650_v3, %v3536_v31  ;;  %v1118_v50 = vadd.f32 %v2532_v43, %v3501_v41  ;;  %v3583_v54 = vpop.f32.mrb[11].mxu1  ;;  %v1373_v3 = vld [vmem:[%s3403_s30 + $0x98] sm:$0xff]  ;;  %v1655_v10 = vld [vmem:[%s3514_s27 + $0x68] sm:$0xff] }
 0x211   : > { %v1463_v46 = vsub.f32 %v1367_v27, %v1271_v33  ;;  %v858_v48 = vadd.f32 %v857_v40, %v3484_v20  ;;  %2031 = vadd.xlane.f32.xlu1 %v1931_v39  ;;  %v1900_v58 = vadd.f32 %v1745_v42, %v1744_v30  ;;  %v1113_v60 = vadd.f32 %v1112_v51, %v3490_v24  ;;  %v1652_v20 = vld [vmem:[%s3514_s27 + $0x50] sm:$0xff]  ;;  %v3613_v42 = vpop.permute.xlu1 %676 }
 0x212   : > { %v1558_v55 = vmul.f32 %v1462_v36, %v1462_v36  ;;  %v1273_v56 = vadd.f32 %v3486_v21, %v856_v38  ;;  %v1281_v61 = vadd.f32 %v3492_v28, %v1118_v50  ;;  %v1747_v0 = vmul.f32 %v1651_v44, %v1555_v25  ;;  %v1654_v25 = vld [vmem:[%s3514_s27 + $0x60] sm:$0xff]  ;;  %v1656_v40 = vld [vmem:[%s3514_s27 + $0x70] sm:$0xff] }
 0x213   : > { %v1559_v31 = vmul.f32 %v1463_v46, %v1463_v46  ;;  %v1274_v14 = vadd.f32 %v3488_v23, %v858_v48  ;;  %v861_v43 = vpop.f32.mrb[12].mxu0  ;;  %v1932_v6 = vadd.f32 %v1900_v58, %v1746_v49  ;;  %v1278_v7 = vadd.f32 %v3492_v28, %v1113_v60  ;;  %v3598_v9 = vpop.f32.mrb[12].mxu1 }
 0x214   : > { %v1465_v4 = vsub.f32 %v1369_v47, %v1273_v56  ;;  %v862_v5 = vadd.f32 %v861_v43, %v3490_v24  ;;  %v863_v51 = vpop.f32.mrb[13].mxu0  ;;  %v1473_v16 = vsub.f32 %v1377_v59, %v1281_v61  ;;  %v1748_v17 = vmul.f32 %v1652_v20, %v1556_v32  ;;  %v3603_v26 = vpop.f32.mrb[13].mxu1  ;;  %v1375_v56 = vld [vmem:[%s3403_s30 + $0xa8] sm:$0xff]  ;;  %v1657_v20 = vld [vmem:[%s3514_s27 + $0x78] sm:$0xff] }
 0x215   : > { %v1466_v11 = vsub.f32 %v1370_v57, %v1274_v14  ;;  %v864_v13 = vadd.f32 %v863_v51, %v3490_v24  ;;  %2033 = vadd.xlane.f32.xlu0 %v1932_v6  ;;  %v1470_v30 = vsub.f32 %v1374_v62, %v1278_v7  ;;  %v1749_v33 = vmul.f32 %v1653_v63, %v3531_v34  ;;  %v3622_v60 = vpop.permute.xlu0 %681  ;;  %v1658_v51 = vld [vmem:[%s3514_s27 + $0x80] sm:$0xff] }
 0x216   : > { %v1561_v27 = vmul.f32 %v1465_v4, %v1465_v4  ;;  %v1276_v29 = vadd.f32 %v3486_v21, %v862_v5  ;;  %v3610_v24 = vmul.f32 %v1473_v16, %v1473_v16  ;;  %v1901_v32 = vadd.f32 %v1748_v17, %v1747_v0  ;;  %v1383_v5 = vld [vmem:[%s3403_s30 + $0xe8] sm:$0xff] }
 0x217   : > { %v1562_v36 = vmul.f32 %v1466_v11, %v1466_v11  ;;  %v1277_v38 = vadd.f32 %v3488_v23, %v864_v13  ;;  %v867_v39 = vpop.f32.mrb[14].mxu0  ;;  %v3615_v46 = vmul.f32 %v1470_v30, %v1470_v30  ;;  %v1750_v48 = vmul.f32 %v1654_v25, %v1558_v55  ;;  %v3618_v49 = vpop.f32.mrb[14].mxu1  ;;  %v1376_v55 = vld [vmem:[%s3403_s30 + $0xb0] sm:$0xff]  ;;  %v1659_v13 = vld [vmem:[%s3514_s27 + $0x88] sm:$0xff] }
 0x218   : > { %v1468_v44 = vsub.f32 %v1372_v12, %v1276_v29  ;;  %v868_v47 = vadd.f32 %v867_v39, %v3501_v41  ;;  %v869_v34 = vpop.f32.mrb[15].mxu0  ;;  %v1933_v57 = vadd.f32 %v1901_v32, %v1749_v33  ;;  %v1751_v59 = vmul.f32 %v1655_v10, %v1559_v31  ;;  %v3625_v14 = vpop.f32.mrb[15].mxu1  ;;  %v1378_v29 = vld [vmem:[%s3403_s30 + $0xc0] sm:$0xff]  ;;  %v1379_v32 = vld [vmem:[%s3403_s30 + $0xc8] sm:$0xff] }
 0x219   : > { %v1469_v50 = vsub.f32 %v1373_v3, %v1277_v38  ;;  %v870_v58 = vadd.f32 %v869_v34, %v3501_v41  ;;  %v1752_v62 = vmul.f32 %v1656_v40, %v3571_v35  ;;  %v1128_v63 = vadd.f32 %v3556_v8, %v3526_v22  ;;  %v1380_v8 = vld [vmem:[%s3403_s30 + $0xd0] sm:$0xff]  ;;  %v3646_v33 = vpop.permute.xlu1 %686 }
 0x21a   : > { %v1564_v43 = vmul.f32 %v1468_v44, %v1468_v44  ;;  %v1279_v61 = vadd.f32 %v3486_v21, %v868_v47  ;;  %2035 = vadd.xlane.f32.xlu0 %v1933_v57  ;;  %v1902_v4 = vadd.f32 %v1751_v59, %v1750_v48  ;;  %v1123_v6 = vadd.f32 %v3563_v19, %v3506_v52 }
 0x21b   : > { %v1565_v0 = vmul.f32 %v1469_v50, %v1469_v50  ;;  %v1280_v41 = vadd.f32 %v3488_v23, %v870_v58  ;;  %v873_v31 = vpop.f32.mrb[16].mxu0  ;;  %v1287_v12 = vadd.f32 %v3492_v28, %v1128_v63  ;;  %v1753_v16 = vmul.f32 %v1657_v20, %v1561_v27  ;;  %v3641_v17 = vpop.f32.mrb[16].mxu1 }
 0x21c   : > { %v1471_v7 = vsub.f32 %v1375_v56, %v1279_v61  ;;  %v874_v11 = vadd.f32 %v873_v31, %v3506_v52  ;;  %v875_v35 = vpop.f32.mrb[17].mxu0  ;;  %v1934_v3 = vadd.f32 %v1902_v4, %v1752_v62  ;;  %v1284_v19 = vadd.f32 %v3492_v28, %v1123_v6  ;;  %v3648_v10 = vpop.f32.mrb[17].mxu1  ;;  %v1660_v56 = vld [vmem:[%s3514_s27 + $0x90] sm:$0xff]  ;;  %v1661_v61 = vld [vmem:[%s3514_s27 + $0x98] sm:$0xff]  ;;  %v1662_v4 = vld [vmem:[%s3514_s27 + $0xa0] sm:$0xff] }
 0x21d   : > { %v1472_v25 = vsub.f32 %v1376_v55, %v1280_v41  ;;  %v876_v30 = vadd.f32 %v875_v35, %v3506_v52  ;;  %v1479_v27 = vsub.f32 %v1383_v5, %v1287_v12  ;;  %v1754_v40 = vmul.f32 %v1658_v51, %v1562_v36  ;;  %v3658_v50 = vpop.permute.xlu0 %691  ;;  %v1381_v41 = vld [vmem:[%s3403_s30 + $0xd8] sm:$0xff] }
 0x21e   : > { %v3650_v38 = vmul.f32 %v1471_v7, %v1471_v7  ;;  %v1282_v39 = vadd.f32 %v3486_v21, %v874_v11  ;;  %2037 = vadd.xlane.f32.xlu1 %v1934_v3  ;;  %v1476_v47 = vsub.f32 %v1380_v8, %v1284_v19  ;;  %v1755_v48 = vmul.f32 %v1659_v13, %v3569_v15  ;;  %v1382_v11 = vld [vmem:[%s3403_s30 + $0xe0] sm:$0xff]  ;;  %v1389_v35 = vld [vmem:[%s3403_s30 + $0x118] sm:$0xff] }
 0x21f   : > { %v3654_v44 = vmul.f32 %v1472_v25, %v1472_v25  ;;  %v1283_v52 = vadd.f32 %v3488_v23, %v876_v30  ;;  %v879_v34 = vpop.f32.mrb[18].mxu0  ;;  %v3661_v58 = vmul.f32 %v1479_v27, %v1479_v27  ;;  %v1903_v59 = vadd.f32 %v1754_v40, %v1753_v16  ;;  %v3665_v55 = vpop.f32.mrb[18].mxu1  ;;  %v1384_v27 = vld [vmem:[%s3403_s30 + $0xf0] sm:$0xff] }
 0x220   : > { %v1474_v57 = vsub.f32 %v1378_v29, %v1282_v39  ;;  %v880_v36 = vadd.f32 %v879_v34, %v3526_v22  ;;  %v881_v20 = vpop.f32.mrb[19].mxu0  ;;  %v3667_v63 = vmul.f32 %v1476_v47, %v1476_v47  ;;  %v1138_v31 = vadd.f32 %v3575_v45, %v3553_v1  ;;  %v3674_v5 = vpop.f32.mrb[19].mxu1  ;;  %v1386_v34 = vld [vmem:[%s3403_s30 + $0x100] sm:$0xff] }
 0x221   : > { %v1475_v62 = vsub.f32 %v1379_v32, %v1283_v52  ;;  %v882_v15 = vadd.f32 %v881_v20, %v3526_v22  ;;  %v1935_v7 = vadd.f32 %v1903_v59, %v1755_v48  ;;  %v1756_v12 = vmul.f32 %v1660_v56, %v1564_v43  ;;  %v3685_v25 = vpop.permute.xlu1 %696  ;;  %v3694_v52 = vpop.permute.xlu0 %701  ;;  %v1663_v59 = vld [vmem:[%s3514_s27 + $0xa8] sm:$0xff] }
 0x222   : > { %v3676_v6 = vmul.f32 %v1474_v57, %v1474_v57  ;;  %v1285_v51 = vadd.f32 %v3486_v21, %v880_v36  ;;  %v1293_v16 = vadd.f32 %v3492_v28, %v1138_v31  ;;  %v1757_v45 = vmul.f32 %v1661_v61, %v1565_v0  ;;  %4409 = vst [vmem:[#allocation30_spill] sm:$0xff] %v3694_v52 }
 0x223   : > { %v3681_v8 = vmul.f32 %v1475_v62, %v1475_v62  ;;  %v1286_v13 = vadd.f32 %v3488_v23, %v882_v15  ;;  %v885_v22 = vpop.f32.mrb[20].mxu0  ;;  %2039 = vadd.xlane.f32.xlu0 %v1935_v7  ;;  %v1758_v30 = vmul.f32 %v1662_v4, %v3615_v46  ;;  %v1133_v43 = vadd.f32 %v3583_v54, %v3534_v37  ;;  %v3691_v39 = vpop.f32.mrb[20].mxu1  ;;  %v1385_v54 = vld [vmem:[%s3403_s30 + $0xf8] sm:$0xff] }
 0x224   : > { %v1477_v29 = vsub.f32 %v1381_v41, %v1285_v51  ;;  %v886_v3 = vadd.f32 %v885_v22, %v3534_v37  ;;  %v887_v19 = vpop.f32.mrb[21].mxu0  ;;  %v1485_v40 = vsub.f32 %v1389_v35, %v1293_v16  ;;  %v1904_v0 = vadd.f32 %v1757_v45, %v1756_v12  ;;  %v3698_v48 = vpop.f32.mrb[21].mxu1  ;;  %v1395_v41 = vld [vmem:[%s3403_s30 + $0x148] sm:$0xff]  ;;  %v1665_v45 = vld [vmem:[%s3514_s27 + $0xb8] sm:$0xff] }
 0x225   : > { %v1478_v32 = vsub.f32 %v1382_v11, %v1286_v13  ;;  %v888_v47 = vadd.f32 %v887_v19, %v3534_v37  ;;  %v1290_v57 = vadd.f32 %v3492_v28, %v1133_v43  ;;  %v1148_v36 = vadd.f32 %v3598_v9, %v3581_v53  ;;  %v1664_v9 = vld [vmem:[%s3514_s27 + $0xb0] sm:$0xff] }
 0x226   : > { %v3700_v46 = vmul.f32 %v1477_v29, %v1477_v29  ;;  %v1288_v56 = vadd.f32 %v3486_v21, %v886_v3  ;;  %v3710_v61 = vmul.f32 %v1485_v40, %v1485_v40  ;;  %v1936_v37 = vadd.f32 %v1904_v0, %v1758_v30  ;;  %v1392_v13 = vld [vmem:[%s3403_s30 + $0x130] sm:$0xff]  ;;  %v3726_v3 = vpop.permute.xlu1 %706  ;;  %v1401_v40 = vld [vmem:[%s3403_s30 + $0x178] sm:$0xff] }
 0x227   : > { %v3708_v20 = vmul.f32 %v1478_v32, %v1478_v32  ;;  %v1289_v62 = vadd.f32 %v3488_v23, %v888_v47  ;;  %v891_v15 = vpop.f32.mrb[22].mxu0  ;;  %v1482_v4 = vsub.f32 %v1386_v34, %v1290_v57  ;;  %v1299_v51 = vadd.f32 %v3492_v28, %v1148_v36  ;;  %v3718_v35 = vpop.f32.mrb[22].mxu1  ;;  %4410 = vst [vmem:[#allocation31_spill] sm:$0xff] %v3726_v3 }
 0x228   : > { %v1480_v31 = vsub.f32 %v1384_v27, %v1288_v56  ;;  %v1143_v7 = vadd.f32 %v3603_v26, %v3561_v18  ;;  %v893_v11 = vpop.f32.mrb[23].mxu0  ;;  %2041 = vadd.xlane.f32.xlu1 %v1936_v37  ;;  %v892_v22 = vadd.f32 %v891_v15, %v3553_v1  ;;  %v1158_v16 = vadd.f32 %v3618_v49, %v3613_v42  ;;  %v3728_v26 = vpop.f32.mrb[23].mxu1  ;;  %v1387_v27 = vld [vmem:[%s3403_s30 + $0x108] sm:$0xff] }
 0x229   : > { %v1481_v12 = vsub.f32 %v1385_v54, %v1289_v62  ;;  %v1759_v29 = vmul.f32 %v1663_v59, %v3650_v38  ;;  %v3732_v19 = vmul.f32 %v1482_v4, %v1482_v4  ;;  %v1491_v43 = vsub.f32 %v1395_v41, %v1299_v51  ;;  %v3742_v34 = vpop.permute.xlu0 %711 }
 0x22a   : > { %v3730_v30 = vmul.f32 %v1480_v31, %v1480_v31  ;;  %v1296_v32 = vadd.f32 %v3492_v28, %v1143_v7  ;;  %v1291_v49 = vadd.f32 %v3486_v21, %v892_v22  ;;  %v1305_v38 = vadd.f32 %v3492_v28, %v1158_v16  ;;  %v1388_v31 = vld [vmem:[%s3403_s30 + $0x110] sm:$0xff] }
 0x22b   : > { %v3737_v0 = vmul.f32 %v1481_v12, %v1481_v12  ;;  %v1760_v47 = vmul.f32 %v1664_v9, %v3654_v44  ;;  %v897_v56 = vpop.f32.mrb[24].mxu0  ;;  %v3744_v54 = vmul.f32 %v1491_v43, %v1491_v43  ;;  %v1761_v36 = vmul.f32 %v1665_v45, %v3610_v24  ;;  %v3748_v62 = vpop.f32.mrb[24].mxu1  ;;  %v1398_v9 = vld [vmem:[%s3403_s30 + $0x160] sm:$0xff]  ;;  %v1404_v43 = vld [vmem:[%s3403_s30 + $0x190] sm:$0xff] }
 0x22c   : > { %v1488_v57 = vsub.f32 %v1392_v13, %v1296_v32  ;;  %v894_v59 = vadd.f32 %v893_v11, %v3553_v1  ;;  %v899_v37 = vpop.f32.mrb[25].mxu0  ;;  %v1483_v41 = vsub.f32 %v1387_v27, %v1291_v49  ;;  %v1497_v15 = vsub.f32 %v1401_v40, %v1305_v38  ;;  %v3753_v51 = vpop.f32.mrb[25].mxu1  ;;  %v1666_v12 = vld [vmem:[%s3514_s27 + $0xc0] sm:$0xff]  ;;  %v1667_v13 = vld [vmem:[%s3514_s27 + $0xc8] sm:$0xff]  ;;  %v1668_v38 = vld [vmem:[%s3514_s27 + $0xd0] sm:$0xff] }
 0x22d   : > { %v1905_v44 = vadd.f32 %v1760_v47, %v1759_v29  ;;  %v1153_v4 = vadd.f32 %v3625_v14, %v3594_v2  ;;  %v1168_v1 = vadd.f32 %v3641_v17, %v3646_v33  ;;  %v1163_v11 = vadd.f32 %v3648_v10, %v3622_v60  ;;  %v1407_v29 = vld [vmem:[%s3403_s30 + $0x1a8] sm:$0xff]  ;;  %v3772_v32 = vpop.permute.xlu1 %716 }
 0x22e   : > { %v3755_v7 = vmul.f32 %v1488_v57, %v1488_v57  ;;  %v1292_v24 = vadd.f32 %v3488_v23, %v894_v59  ;;  %v3765_v22 = vmul.f32 %v1483_v41, %v1483_v41  ;;  %v3767_v16 = vmul.f32 %v1497_v15, %v1497_v15  ;;  %4411 = vst [vmem:[#allocation32_spill] sm:$0xff] %v3772_v32  ;;  %v1390_v59 = vld [vmem:[%s3403_s30 + $0x120] sm:$0xff] }
 0x22f   : > { %v1937_v14 = vadd.f32 %v1905_v44, %v1761_v36  ;;  %v1302_v45 = vadd.f32 %v3492_v28, %v1153_v4  ;;  %v903_v27 = vpop.f32.mrb[26].mxu0  ;;  %v1311_v40 = vadd.f32 %v3492_v28, %v1168_v1  ;;  %v1308_v10 = vadd.f32 %v3492_v28, %v1163_v11  ;;  %v3780_v57 = vpop.f32.mrb[26].mxu1 }
 0x230   : > { %v1484_v17 = vsub.f32 %v1388_v31, %v1292_v24  ;;  %v898_v49 = vadd.f32 %v897_v56, %v3561_v18  ;;  %v3778_v47 = vpop.f32.mrb[27].mxu0  ;;  %v1178_v41 = vadd.f32 %v3665_v55, %v3685_v25  ;;  %v1762_v15 = vmul.f32 %v1666_v12, %v3676_v6  ;;  %v3787_v31 = vpop.permute.xlu0 %721 }
 0x231   : > { %2043 = vadd.xlane.f32.xlu0 %v1937_v14  ;;  %v1494_v36 = vsub.f32 %v1398_v9, %v1302_v45  ;;  %v1763_v44 = vmul.f32 %v1667_v13, %v3681_v8  ;;  %v3789_v4 = vpop.f32.mrb[27].mxu1  ;;  %v1503_v24 = vsub.f32 %v1407_v29, %v1311_v40  ;;  %v1500_v1 = vsub.f32 %v1404_v43, %v1308_v10  ;;  %v1413_v9 = vld [vmem:[%s3403_s30 + $0x1d8] sm:$0xff] }
 0x232   : > { %v3791_v56 = vmul.f32 %v1484_v17, %v1484_v17  ;;  %v1294_v11 = vadd.f32 %v3486_v21, %v898_v49  ;;  %v1317_v55 = vadd.f32 %v3492_v28, %v1178_v41  ;;  %v1764_v6 = vmul.f32 %v1668_v38, %v3667_v63  ;;  %v1391_v63 = vld [vmem:[%s3403_s30 + $0x128] sm:$0xff]  ;;  %v1669_v41 = vld [vmem:[%s3514_s27 + $0xd8] sm:$0xff] }
 0x233   : > { %v3795_v14 = vmul.f32 %v1494_v36, %v1494_v36  ;;  %v1906_v8 = vadd.f32 %v1763_v44, %v1762_v15  ;;  %v3799_v12 = vpop.f32.mrb[28].mxu0  ;;  %v3801_v13 = vmul.f32 %v1503_v24, %v1503_v24  ;;  %v3803_v45 = vmul.f32 %v1500_v1, %v1500_v1  ;;  %v3808_v40 = vpop.f32.mrb[28].mxu1  ;;  %v1410_v15 = vld [vmem:[%s3403_s30 + $0x1c0] sm:$0xff]  ;;  %v1419_v44 = vld [vmem:[%s3403_s30 + $0x208] sm:$0xff] }
 0x234   : > { %v1486_v29 = vsub.f32 %v1390_v59, %v1294_v11  ;;  %v900_v43 = vadd.f32 %v899_v37, %v3561_v18  ;;  %v3806_v17 = vpop.f32.mrb[29].mxu0  ;;  %v1509_v10 = vsub.f32 %v1413_v9, %v1317_v55  ;;  %v1173_v38 = vadd.f32 %v3674_v5, %v3658_v50  ;;  %v3816_v59 = vpop.f32.mrb[29].mxu1  ;;  %v1670_v1 = vld [vmem:[%s3514_s27 + $0xe0] sm:$0xff] }
 0x235   : > { %4412 = vst [vmem:[#allocation33_spill] sm:$0xff] %v3801_v13  ;;  %4413 = vst [vmem:[#allocation34_spill] sm:$0xff] %v3803_v45  ;;  %v1938_v49 = vadd.f32 %v1906_v8, %v1764_v6  ;;  %v1188_v36 = vadd.f32 %v3691_v39, %v3726_v3  ;;  %v1183_v24 = vadd.f32 %v3698_v48, %v3694_v52  ;;  %v3827_v11 = vpop.permute.xlu1 %726  ;;  %v1416_v6 = vld [vmem:[%s3403_s30 + $0x1f0] sm:$0xff]  ;;  %v1393_v8 = vld [vmem:[%s3403_s30 + $0x138] sm:$0xff]  ;;  %v3838_v48 = vpop.permute.xlu0 %731 }
 0x236   : > { %v3818_v18 = vmul.f32 %v1486_v29, %v1486_v29  ;;  %v1295_v37 = vadd.f32 %v3488_v23, %v900_v43  ;;  %v904_v5 = vadd.f32 %v903_v27, %v3581_v53  ;;  %v3829_v39 = vmul.f32 %v1509_v10, %v1509_v10  ;;  %v1671_v43 = vld [vmem:[%s3514_s27 + $0xe8] sm:$0xff] }
 0x237   : > { %2045 = vadd.xlane.f32.xlu1 %v1938_v49  ;;  %v1314_v9 = vadd.f32 %v3492_v28, %v1173_v38  ;;  %v1323_v55 = vadd.f32 %v3492_v28, %v1188_v36  ;;  %v1198_v29 = vadd.f32 %v3718_v35, %v3772_v32  ;;  %v3840_v27 = vpop.f32.mrb[30].mxu0  ;;  %v1320_v3 = vadd.f32 %v3492_v28, %v1183_v24  ;;  %v1425_v49 = vld [vmem:[%s3403_s30 + $0x238] sm:$0xff]  ;;  %v3846_v36 = vpop.f32.mrb[30].mxu1 }
 0x238   : > { %4414 = vst [vmem:[#allocation35_spill] sm:$0xff] %v3829_v39  ;;  %v1487_v13 = vsub.f32 %v1391_v63, %v1295_v37  ;;  %v1297_v10 = vadd.f32 %v3486_v21, %v904_v5  ;;  %v1765_v38 = vmul.f32 %v1669_v41, %v3700_v46  ;;  %v3848_v39 = vpop.f32.mrb[31].mxu0  ;;  %v1766_v52 = vmul.f32 %v1670_v1, %v3708_v20  ;;  %v3852_v63 = vpop.f32.mrb[31].mxu1 }
 0x239   : > { %v1506_v45 = vsub.f32 %v1410_v15, %v1314_v9  ;;  %v1515_v35 = vsub.f32 %v1419_v44, %v1323_v55  ;;  %v1329_v32 = vadd.f32 %v3492_v28, %v1198_v29  ;;  %v1512_v24 = vsub.f32 %v1416_v6, %v1320_v3  ;;  %v1672_v55 = vld [vmem:[%s3514_s27 + $0xf0] sm:$0xff]  ;;  %v1674_v6 = vld [vmem:[%s3514_s27 + $0x100] sm:$0xff] }
 0x23a   : > { %v3854_v37 = vmul.f32 %v1487_v13, %v1487_v13  ;;  %v1489_v5 = vsub.f32 %v1393_v8, %v1297_v10  ;;  %v1767_v46 = vmul.f32 %v1671_v43, %v3661_v58  ;;  %v1907_v9 = vadd.f32 %v1766_v52, %v1765_v38  ;;  %v1394_v29 = vld [vmem:[%s3403_s30 + $0x140] sm:$0xff]  ;;  %v1431_v38 = vld [vmem:[%s3403_s30 + $0x268] sm:$0xff] }
 0x23b   : > { %v3857_v41 = vmul.f32 %v1506_v45, %v1506_v45  ;;  %v3859_v15 = vmul.f32 %v1515_v35, %v1515_v35  ;;  %v1521_v44 = vsub.f32 %v1425_v49, %v1329_v32  ;;  %v3862_v20 = vpop.f32.mrb[32].mxu0  ;;  %v3864_v1 = vmul.f32 %v1512_v24, %v1512_v24  ;;  %v1673_v45 = vld [vmem:[%s3514_s27 + $0xf8] sm:$0xff]  ;;  %v1422_v43 = vld [vmem:[%s3403_s30 + $0x220] sm:$0xff]  ;;  %v1428_v35 = vld [vmem:[%s3403_s30 + $0x250] sm:$0xff] }
 0x23c   : > { %v3866_v13 = vmul.f32 %v1489_v5, %v1489_v5  ;;  %v906_v58 = vadd.f32 %v3778_v47, %v3581_v53  ;;  %v1193_v3 = vadd.f32 %v3728_v26, %v3742_v34  ;;  %v3874_v8 = vpop.f32.mrb[33].mxu0  ;;  %v1939_v32 = vadd.f32 %v1907_v9, %v1767_v46  ;;  %v3884_v53 = vpop.permute.xlu1 %736 }
 0x23d   : > { %4415 = vst [vmem:[#allocation36_spill] sm:$0xff] %v3859_v15  ;;  %v3876_v52 = vmul.f32 %v1521_v44, %v1521_v44  ;;  %v1208_v10 = vadd.f32 %v3748_v62, %v3827_v11  ;;  %v1203_v49 = vadd.f32 %v3753_v51, %v3787_v31  ;;  %v910_v24 = vadd.f32 %v3799_v12, %v3594_v2  ;;  %v3893_v46 = vpop.permute.xlu0 %741  ;;  %v1396_v44 = vld [vmem:[%s3403_s30 + $0x150] sm:$0xff] }
 0x23e   : > { %v1298_v26 = vadd.f32 %v3488_v23, %v906_v58  ;;  %v1326_v47 = vadd.f32 %v3492_v28, %v1193_v3  ;;  %v1768_v5 = vmul.f32 %v1672_v55, %v3730_v30  ;;  %2047 = vadd.xlane.f32.xlu0 %v1939_v32  ;;  %v1769_v9 = vmul.f32 %v1673_v45, %v3737_v0  ;;  %v1675_v0 = vld [vmem:[%s3514_s27 + $0x108] sm:$0xff] }
 0x23f   : > { %4416 = vst [vmem:[#allocation37_spill] sm:$0xff] %v3876_v52  ;;  %v1335_v62 = vadd.f32 %v3492_v28, %v1208_v10  ;;  %v1332_v51 = vadd.f32 %v3492_v28, %v1203_v49  ;;  %v1770_v58 = vmul.f32 %v1674_v6, %v3732_v19  ;;  %v3900_v3 = vpop.f32.mrb[34].mxu0  ;;  %v1300_v55 = vadd.f32 %v3486_v21, %v910_v24 }
 0x240   : > { %v1490_v12 = vsub.f32 %v1394_v29, %v1298_v26  ;;  %v1518_v30 = vsub.f32 %v1422_v43, %v1326_v47  ;;  %v1218_v32 = vadd.f32 %v3780_v57, %v3884_v53  ;;  %v3905_v10 = vpop.f32.mrb[35].mxu0  ;;  %v1908_v15 = vadd.f32 %v1769_v9, %v1768_v5  ;;  %v1397_v26 = vld [vmem:[%s3403_s30 + $0x158] sm:$0xff]  ;;  %v1676_v47 = vld [vmem:[%s3514_s27 + $0x110] sm:$0xff]  ;;  %v3925_v24 = vpop.permute.xlu1 %746 }
 0x241   : > { %v1527_v49 = vsub.f32 %v1431_v38, %v1335_v62  ;;  %v1524_v52 = vsub.f32 %v1428_v35, %v1332_v51  ;;  %v912_v19 = vadd.f32 %v3806_v17, %v3594_v2  ;;  %v1492_v29 = vsub.f32 %v1396_v44, %v1300_v55  ;;  %v1677_v57 = vld [vmem:[%s3514_s27 + $0x118] sm:$0xff]  ;;  %v1399_v55 = vld [vmem:[%s3403_s30 + $0x168] sm:$0xff] }
 0x242   : > { %v3910_v45 = vmul.f32 %v1490_v12, %v1490_v12  ;;  %v3912_v6 = vmul.f32 %v1518_v30, %v1518_v30  ;;  %v3915_v43 = vadd.f32 %v3492_v28, %v1218_v32  ;;  %v1940_v2 = vadd.f32 %v1908_v15, %v1770_v58  ;;  %v1434_v12 = vld [vmem:[%s3403_s30 + $0x280] sm:$0xff]  ;;  %v1440_v30 = vld [vmem:[%s3403_s30 + $0x2b0] sm:$0xff] }
 0x243   : > { %v3920_v38 = vmul.f32 %v1527_v49, %v1527_v49  ;;  %v3922_v35 = vmul.f32 %v1524_v52, %v1524_v52  ;;  %v1301_v17 = vadd.f32 %v3488_v23, %v912_v19  ;;  %v3927_v5 = vpop.f32.mrb[36].mxu0  ;;  %v3929_v62 = vmul.f32 %v1492_v29, %v1492_v29  ;;  %v3937_v52 = vpop.permute.xlu0 %751 }
 0x244   : > { %v1213_v51 = vadd.f32 %v3789_v4, %v3838_v48  ;;  %v1223_v44 = vadd.f32 %v3816_v59, %v3893_v46  ;;  %v916_v9 = vadd.f32 %v3840_v27, %v3613_v42  ;;  %v3939_v15 = vpop.f32.mrb[37].mxu0  ;;  %2049 = vadd.xlane.f32.xlu1 %v1940_v2  ;;  %v1771_v32 = vmul.f32 %v1675_v0, %v3765_v22 }
 0x245   : > { %v1493_v58 = vsub.f32 %v1397_v26, %v1301_v17  ;;  %v1772_v4 = vmul.f32 %v1676_v47, %v3791_v56  ;;  %v1773_v59 = vmul.f32 %v1677_v57, %v3710_v61  ;;  %v1228_v29 = vadd.f32 %v3808_v40, %v3925_v24  ;;  %v1678_v56 = vld [vmem:[%s3514_s27 + $0x120] sm:$0xff]  ;;  %v1400_v40 = vld [vmem:[%s3403_s30 + $0x170] sm:$0xff] }
 0x246   : > { %v1338_v27 = vadd.f32 %v3492_v28, %v1213_v51  ;;  %v1344_v49 = vadd.f32 %v3492_v28, %v1223_v44  ;;  %v1303_v19 = vadd.f32 %v3486_v21, %v916_v9  ;;  %v918_v22 = vadd.f32 %v3848_v39, %v3613_v42  ;;  %v1446_v44 = vld [vmem:[%s3403_s30 + $0x2e0] sm:$0xff]  ;;  %v1679_v9 = vld [vmem:[%s3514_s27 + $0x128] sm:$0xff] }
 0x247   : > { %v3952_v26 = vmul.f32 %v1493_v58, %v1493_v58  ;;  %v1909_v2 = vadd.f32 %v1772_v4, %v1771_v32  ;;  %v1233_v61 = vadd.f32 %v3852_v63, %v3937_v52  ;;  %v3959_v0 = vpop.f32.mrb[38].mxu0  ;;  %v3962_v51 = vadd.f32 %v3492_v28, %v1228_v29  ;;  %v3974_v32 = vpop.permute.xlu1 %756 }
 0x248   : > { %v1530_v47 = vsub.f32 %v1434_v12, %v1338_v27  ;;  %v1536_v57 = vsub.f32 %v1440_v30, %v1344_v49  ;;  %v1495_v17 = vsub.f32 %v1399_v55, %v1303_v19  ;;  %v3967_v58 = vpop.f32.mrb[39].mxu0  ;;  %v1304_v39 = vadd.f32 %v3488_v23, %v918_v22  ;;  %v1680_v30 = vld [vmem:[%s3514_s27 + $0x130] sm:$0xff]  ;;  %v1681_v22 = vld [vmem:[%s3514_s27 + $0x138] sm:$0xff] }
 0x249   : > { %v1941_v42 = vadd.f32 %v1909_v2, %v1773_v59  ;;  %v1350_v63 = vadd.f32 %v3492_v28, %v1233_v61  ;;  %v922_v12 = vadd.f32 %v3862_v20, %v3622_v60  ;;  %v1402_v59 = vld [vmem:[%s3403_s30 + $0x180] sm:$0xff]  ;;  %v1774_v49 = vmul.f32 %v1678_v56, %v3818_v18 }
 0x24a   : > { %v3976_v55 = vmul.f32 %v1530_v47, %v1530_v47  ;;  %v3978_v4 = vmul.f32 %v1536_v57, %v1536_v57  ;;  %v3980_v27 = vmul.f32 %v1495_v17, %v1495_v17  ;;  %v1496_v19 = vsub.f32 %v1400_v40, %v1304_v39  ;;  %v1682_v17 = vld [vmem:[%s3514_s27 + $0x140] sm:$0xff]  ;;  %v1683_v40 = vld [vmem:[%s3514_s27 + $0x148] sm:$0xff] }
 0x24b   : > { %2051 = vadd.xlane.f32.xlu0 %v1941_v42  ;;  %v1542_v29 = vsub.f32 %v1446_v44, %v1350_v63  ;;  %v1306_v20 = vadd.f32 %v3486_v21, %v922_v12  ;;  %v1775_v2 = vmul.f32 %v1679_v9, %v3854_v37  ;;  %v3987_v61 = vpop.f32.mrb[40].mxu0  ;;  %v1776_v47 = vmul.f32 %v1680_v30, %v3755_v7  ;;  %v1403_v39 = vld [vmem:[%s3403_s30 + $0x188] sm:$0xff]  ;;  %v1684_v12 = vld [vmem:[%s3514_s27 + $0x150] sm:$0xff]  ;;  %v1685_v30 = vld [vmem:[%s3514_s27 + $0x158] sm:$0xff] }
 0x24c   : > { %v1238_v57 = vadd.f32 %v3846_v36, %v3974_v32  ;;  %v924_v18 = vadd.f32 %v3874_v8, %v3622_v60  ;;  %v928_v56 = vadd.f32 %v3900_v3, %v3646_v33  ;;  %v3998_v37 = vpop.f32.mrb[41].mxu0  ;;  %v1592_v44 = vmul.f32 %v1496_v19, %v1496_v19  ;;  %v1405_v36 = vld [vmem:[%s3403_s30 + $0x198] sm:$0xff]  ;;  %v1686_v19 = vld [vmem:[%s3514_s27 + $0x160] sm:$0xff] }
 0x24d   : > { %v4000_v9 = vmul.f32 %v1542_v29, %v1542_v29  ;;  %v1498_v7 = vsub.f32 %v1402_v59, %v1306_v20  ;;  %v1910_v42 = vadd.f32 %v1775_v2, %v1774_v49  ;;  %v1777_v3 = vmul.f32 %v1681_v22, %v3866_v13  ;;  %v1406_v13 = vld [vmem:[%s3403_s30 + $0x1a0] sm:$0xff] }
 0x24e   : > { %v4005_v63 = vadd.f32 %v3492_v28, %v1238_v57  ;;  %v1307_v60 = vadd.f32 %v3488_v23, %v924_v18  ;;  %v1309_v8 = vadd.f32 %v3486_v21, %v928_v56  ;;  %v1778_v59 = vmul.f32 %v1682_v17, %v3910_v45  ;;  %v1408_v45 = vld [vmem:[%s3403_s30 + $0x1b0] sm:$0xff] }
 0x24f   : > { %4417 = vst [vmem:[#allocation38_spill] sm:$0xff] %v4000_v9  ;;  %v1594_v29 = vmul.f32 %v1498_v7, %v1498_v7  ;;  %v1942_v9 = vadd.f32 %v1910_v42, %v1776_v47  ;;  %v1779_v49 = vmul.f32 %v1683_v40, %v3744_v54  ;;  %v4015_v28 = vpop.f32.mrb[42].mxu0  ;;  %v930_v57 = vadd.f32 %v3905_v10, %v3646_v33  ;;  %v1687_v40 = vld [vmem:[%s3514_s27 + $0x168] sm:$0xff]  ;;  %v1688_v33 = vld [vmem:[%s3514_s27 + $0x170] sm:$0xff] }
 0x250   : > { %v1499_v20 = vsub.f32 %v1403_v39, %v1307_v60  ;;  %v1501_v2 = vsub.f32 %v1405_v36, %v1309_v8  ;;  %v934_v22 = vadd.f32 %v3927_v5, %v3658_v50  ;;  %v4022_v18 = vpop.f32.mrb[43].mxu0  ;;  %v1911_v47 = vadd.f32 %v1778_v59, %v1777_v3  ;;  %v1409_v3 = vld [vmem:[%s3403_s30 + $0x1b8] sm:$0xff]  ;;  %v1690_v59 = vld [vmem:[%s3514_s27 + $0x180] sm:$0xff] }
 0x251   : > { %2053 = vadd.xlane.f32.xlu1 %v1942_v9  ;;  %v1780_v56 = vmul.f32 %v1684_v12, %v3929_v62  ;;  %v1781_v54 = vmul.f32 %v1685_v30, %v3952_v26  ;;  %v1782_v17 = vmul.f32 %v1686_v19, %v3795_v14  ;;  %v1310_v5 = vadd.f32 %v3488_v23, %v930_v57  ;;  %v1689_v9 = vld [vmem:[%s3514_s27 + $0x178] sm:$0xff]  ;;  %v1411_v12 = vld [vmem:[%s3403_s30 + $0x1c8] sm:$0xff]  ;;  %v1692_v57 = vld [vmem:[%s3514_s27 + $0x190] sm:$0xff] }
 0x252   : > { %v1595_v10 = vmul.f32 %v1499_v20, %v1499_v20  ;;  %v1597_v7 = vmul.f32 %v1501_v2, %v1501_v2  ;;  %v1312_v42 = vadd.f32 %v3486_v21, %v934_v22  ;;  %v1943_v39 = vadd.f32 %v1911_v47, %v1779_v49  ;;  %v1691_v2 = vld [vmem:[%s3514_s27 + $0x188] sm:$0xff] }
 0x253   : > { %v1912_v36 = vadd.f32 %v1781_v54, %v1780_v56  ;;  %v936_v62 = vadd.f32 %v3939_v15, %v3658_v50  ;;  %v940_v14 = vadd.f32 %v3959_v0, %v3685_v25  ;;  %v4037_v26 = vpop.f32.mrb[44].mxu0  ;;  %v1502_v60 = vsub.f32 %v1406_v13, %v1310_v5  ;;  %v1412_v56 = vld [vmem:[%s3403_s30 + $0x1d0] sm:$0xff]  ;;  %v4418_v54 = vld [vmem:[#allocation30_spill] sm:$0xff] }
 0x254   : > { %v1504_v8 = vsub.f32 %v1408_v45, %v1312_v42  ;;  %v1783_v30 = vmul.f32 %v1687_v40, %v3980_v27  ;;  %v1784_v19 = vmul.f32 %v1688_v33, %v1592_v44  ;;  %v4043_v49 = vpop.f32.mrb[45].mxu0  ;;  %2055 = vadd.xlane.f32.xlu0 %v1943_v39  ;;  %v1785_v20 = vmul.f32 %v1689_v9, %v3767_v16  ;;  %v1693_v16 = vld [vmem:[%s3514_s27 + $0x198] sm:$0xff]  ;;  %v1414_v9 = vld [vmem:[%s3403_s30 + $0x1e0] sm:$0xff] }
 0x255   : > { %v1944_v50 = vadd.f32 %v1912_v36, %v1782_v17  ;;  %v1313_v15 = vadd.f32 %v3488_v23, %v936_v62  ;;  %v1315_v0 = vadd.f32 %v3486_v21, %v940_v14  ;;  %v1598_v13 = vmul.f32 %v1502_v60, %v1502_v60  ;;  %v4419_v36 = vld [vmem:[#allocation34_spill] sm:$0xff] }
 0x256   : > { %v1600_v22 = vmul.f32 %v1504_v8, %v1504_v8  ;;  %v1913_v27 = vadd.f32 %v1784_v19, %v1783_v30  ;;  %v942_v44 = vadd.f32 %v3967_v58, %v3685_v25  ;;  %v946_v17 = vadd.f32 %v3987_v61, %v4418_v54  ;;  %v1694_v25 = vld [vmem:[%s3514_s27 + $0x1a0] sm:$0xff]  ;;  %v1695_v58 = vld [vmem:[%s3514_s27 + $0x1a8] sm:$0xff] }
 0x257   : > { %2057 = vadd.xlane.f32.xlu1 %v1944_v50  ;;  %v1505_v47 = vsub.f32 %v1409_v3, %v1313_v15  ;;  %v1507_v45 = vsub.f32 %v1411_v12, %v1315_v0  ;;  %v1786_v40 = vmul.f32 %v1690_v59, %v1594_v29  ;;  %v963_v33 = vpop.f32.mrb[46].mxu0  ;;  %v1787_v39 = vmul.f32 %v1691_v2, %v1595_v10  ;;  %v1415_v10 = vld [vmem:[%s3403_s30 + $0x1e8] sm:$0xff]  ;;  %v1417_v0 = vld [vmem:[%s3403_s30 + $0x1f8] sm:$0xff] }
 0x258   : > { %v1945_v5 = vadd.f32 %v1913_v27, %v1785_v20  ;;  %v1316_v42 = vadd.f32 %v3488_v23, %v942_v44  ;;  %v1788_v62 = vmul.f32 %v1692_v57, %v4419_v36  ;;  %v4061_v14 = vpop.f32.mrb[47].mxu0  ;;  %v1318_v29 = vadd.f32 %v3486_v21, %v946_v17  ;;  %v4420_v30 = vld [vmem:[#allocation31_spill] sm:$0xff]  ;;  %v4421_v2 = vld [vmem:[#allocation33_spill] sm:$0xff]  ;;  %v1696_v27 = vld [vmem:[%s3514_s27 + $0x1b0] sm:$0xff] }
 0x259   : > { %v1601_v60 = vmul.f32 %v1505_v47, %v1505_v47  ;;  %v1603_v61 = vmul.f32 %v1507_v45, %v1507_v45  ;;  %v948_v8 = vadd.f32 %v3998_v37, %v4418_v54  ;;  %v1914_v12 = vadd.f32 %v1787_v39, %v1786_v40  ;;  %v1697_v44 = vld [vmem:[%s3514_s27 + $0x1b8] sm:$0xff]  ;;  %v1420_v39 = vld [vmem:[%s3403_s30 + $0x210] sm:$0xff] }
 0x25a   : > { %2059 = vadd.xlane.f32.xlu0 %v1945_v5  ;;  %v1508_v3 = vsub.f32 %v1412_v56, %v1316_v42  ;;  %v952_v19 = vadd.f32 %v4015_v28, %v4420_v30  ;;  %v1789_v59 = vmul.f32 %v1693_v16, %v1597_v7  ;;  %v1510_v50 = vsub.f32 %v1414_v9, %v1318_v29  ;;  %v1698_v7 = vld [vmem:[%s3514_s27 + $0x1c0] sm:$0xff] }
 0x25b   : > { %v1319_v15 = vadd.f32 %v3488_v23, %v948_v8  ;;  %v1790_v20 = vmul.f32 %v1694_v25, %v1598_v13  ;;  %v1791_v57 = vmul.f32 %v1695_v58, %v4421_v2  ;;  %v969_v37 = vpop.f32.mrb[48].mxu0  ;;  %v1946_v45 = vadd.f32 %v1914_v12, %v1788_v62  ;;  %v1418_v16 = vld [vmem:[%s3403_s30 + $0x200] sm:$0xff]  ;;  %v1699_v25 = vld [vmem:[%s3514_s27 + $0x1c8] sm:$0xff]  ;;  %v1701_v12 = vld [vmem:[%s3514_s27 + $0x1d8] sm:$0xff] }
 0x25c   : > { %v1604_v47 = vmul.f32 %v1508_v3, %v1508_v3  ;;  %v1321_v56 = vadd.f32 %v3486_v21, %v952_v19  ;;  %v954_v28 = vadd.f32 %v4022_v18, %v4420_v30  ;;  %v971_v54 = vpop.f32.mrb[49].mxu0  ;;  %v1606_v17 = vmul.f32 %v1510_v50, %v1510_v50  ;;  %v1700_v18 = vld [vmem:[%s3514_s27 + $0x1d0] sm:$0xff]  ;;  %v1421_v50 = vld [vmem:[%s3403_s30 + $0x218] sm:$0xff] }
 0x25d   : > { %v1511_v40 = vsub.f32 %v1415_v10, %v1319_v15  ;;  %v1915_v13 = vadd.f32 %v1790_v20, %v1789_v59  ;;  %v958_v5 = vadd.f32 %v4037_v26, %v3742_v34  ;;  %2061 = vadd.xlane.f32.xlu1 %v1946_v45  ;;  %v1792_v36 = vmul.f32 %v1696_v27, %v1600_v22  ;;  %v4422_v15 = vld [vmem:[#allocation32_spill] sm:$0xff] }
 0x25e   : > { %v1513_v42 = vsub.f32 %v1417_v0, %v1321_v56  ;;  %v1322_v9 = vadd.f32 %v3488_v23, %v954_v28  ;;  %v1793_v62 = vmul.f32 %v1697_v44, %v1601_v60  ;;  %v1794_v3 = vmul.f32 %v1698_v7, %v3857_v41  ;;  %v1702_v41 = vld [vmem:[%s3514_s27 + $0x1e0] sm:$0xff]  ;;  %v1423_v56 = vld [vmem:[%s3403_s30 + $0x228] sm:$0xff] }
 0x25f   : > { %v1607_v58 = vmul.f32 %v1511_v40, %v1511_v40  ;;  %v1947_v29 = vadd.f32 %v1915_v13, %v1791_v57  ;;  %v1324_v8 = vadd.f32 %v3486_v21, %v958_v5  ;;  %v975_v26 = vpop.f32.mrb[50].mxu0  ;;  %v960_v22 = vadd.f32 %v4043_v49, %v3742_v34  ;;  %v1703_v57 = vld [vmem:[%s3514_s27 + $0x1e8] sm:$0xff]  ;;  %v1704_v34 = vld [vmem:[%s3514_s27 + $0x1f0] sm:$0xff] }
 0x260   : > { %v1609_v10 = vmul.f32 %v1513_v42, %v1513_v42  ;;  %v1514_v30 = vsub.f32 %v1418_v16, %v1322_v9  ;;  %v1916_v19 = vadd.f32 %v1793_v62, %v1792_v36  ;;  %v977_v60 = vpop.f32.mrb[51].mxu0  ;;  %v964_v0 = vadd.f32 %v963_v33, %v4422_v15  ;;  %v4423_v28 = vld [vmem:[#allocation35_spill] sm:$0xff]  ;;  %v1424_v16 = vld [vmem:[%s3403_s30 + $0x230] sm:$0xff] }
 0x261   : > { %2063 = vadd.xlane.f32.xlu0 %v1947_v29  ;;  %v1516_v59 = vsub.f32 %v1420_v39, %v1324_v8  ;;  %v1795_v20 = vmul.f32 %v1699_v25, %v1603_v61  ;;  %v1796_v2 = vmul.f32 %v1700_v18, %v1604_v47  ;;  %v1325_v45 = vadd.f32 %v3488_v23, %v960_v22  ;;  %v1705_v39 = vld [vmem:[%s3514_s27 + $0x1f8] sm:$0xff]  ;;  %v1426_v29 = vld [vmem:[%s3403_s30 + $0x240] sm:$0xff]  ;;  %v1427_v22 = vld [vmem:[%s3403_s30 + $0x248] sm:$0xff] }
 0x262   : > { %v1610_v27 = vmul.f32 %v1514_v30, %v1514_v30  ;;  %v1948_v44 = vadd.f32 %v1916_v19, %v1794_v3  ;;  %v1797_v7 = vmul.f32 %v1701_v12, %v4423_v28  ;;  %v1327_v40 = vadd.f32 %v3486_v21, %v964_v0  ;;  %v1710_v28 = vld [vmem:[%s3514_s27 + $0x220] sm:$0xff] }
 0x263   : > { %v1612_v49 = vmul.f32 %v1516_v59, %v1516_v59  ;;  %v1917_v13 = vadd.f32 %v1796_v2, %v1795_v20  ;;  %v966_v33 = vadd.f32 %v4061_v14, %v4422_v15  ;;  %v981_v61 = vpop.f32.mrb[52].mxu0  ;;  %v1517_v47 = vsub.f32 %v1421_v50, %v1325_v45  ;;  %v1706_v14 = vld [vmem:[%s3514_s27 + $0x200] sm:$0xff]  ;;  %v1429_v2 = vld [vmem:[%s3403_s30 + $0x258] sm:$0xff] }
 0x264   : > { %2065 = vadd.xlane.f32.xlu1 %v1948_v44  ;;  %v970_v5 = vadd.f32 %v969_v37, %v3787_v31  ;;  %v1798_v42 = vmul.f32 %v1702_v41, %v1606_v17  ;;  %v1799_v9 = vmul.f32 %v1703_v57, %v1607_v58  ;;  %v983_v36 = vpop.f32.mrb[53].mxu0  ;;  %v1519_v62 = vsub.f32 %v1423_v56, %v1327_v40  ;;  %v1707_v17 = vld [vmem:[%s3514_s27 + $0x208] sm:$0xff]  ;;  %v1708_v57 = vld [vmem:[%s3514_s27 + $0x210] sm:$0xff] }
 0x265   : > { %v1949_v25 = vadd.f32 %v1917_v13, %v1797_v7  ;;  %v1328_v18 = vadd.f32 %v3488_v23, %v966_v33  ;;  %v1800_v8 = vmul.f32 %v1704_v34, %v3864_v1  ;;  %v1613_v3 = vmul.f32 %v1517_v47, %v1517_v47  ;;  %v4424_v56 = vld [vmem:[#allocation36_spill] sm:$0xff] }
 0x266   : > { %v1330_v12 = vadd.f32 %v3486_v21, %v970_v5  ;;  %v1918_v30 = vadd.f32 %v1799_v9, %v1798_v42  ;;  %v972_v37 = vadd.f32 %v971_v54, %v3787_v31  ;;  %v1615_v58 = vmul.f32 %v1519_v62, %v1519_v62  ;;  %v1709_v31 = vld [vmem:[%s3514_s27 + $0x218] sm:$0xff]  ;;  %v1711_v9 = vld [vmem:[%s3514_s27 + $0x228] sm:$0xff] }
 0x267   : > { %2067 = vadd.xlane.f32.xlu0 %v1949_v25  ;;  %v1520_v19 = vsub.f32 %v1424_v16, %v1328_v18  ;;  %v976_v59 = vadd.f32 %v975_v26, %v3827_v11  ;;  %v1801_v50 = vmul.f32 %v1705_v39, %v1609_v10  ;;  %v987_v1 = vpop.f32.mrb[54].mxu0  ;;  %v1802_v41 = vmul.f32 %v1706_v14, %v1610_v27  ;;  %v1430_v27 = vld [vmem:[%s3403_s30 + $0x260] sm:$0xff]  ;;  %v1432_v16 = vld [vmem:[%s3403_s30 + $0x270] sm:$0xff] }
 0x268   : > { %v1522_v15 = vsub.f32 %v1426_v29, %v1330_v12  ;;  %v1950_v0 = vadd.f32 %v1918_v30, %v1800_v8  ;;  %v1331_v20 = vadd.f32 %v3488_v23, %v972_v37  ;;  %v989_v54 = vpop.f32.mrb[55].mxu0  ;;  %v1803_v26 = vmul.f32 %v1707_v17, %v4424_v56  ;;  %v1712_v39 = vld [vmem:[%s3514_s27 + $0x230] sm:$0xff]  ;;  %v1713_v29 = vld [vmem:[%s3514_s27 + $0x238] sm:$0xff] }
 0x269   : > { %v1616_v44 = vmul.f32 %v1520_v19, %v1520_v19  ;;  %v1333_v45 = vadd.f32 %v3486_v21, %v976_v59  ;;  %v978_v10 = vadd.f32 %v977_v60, %v3827_v11  ;;  %v1919_v40 = vadd.f32 %v1802_v41, %v1801_v50  ;;  %v1433_v30 = vld [vmem:[%s3403_s30 + $0x278] sm:$0xff]  ;;  %v1715_v59 = vld [vmem:[%s3514_s27 + $0x248] sm:$0xff]  ;;  %v1716_v41 = vld [vmem:[%s3514_s27 + $0x250] sm:$0xff] }
 0x26a   : > { %v1618_v7 = vmul.f32 %v1522_v15, %v1522_v15  ;;  %2069 = vadd.xlane.f32.xlu1 %v1950_v0  ;;  %v1523_v34 = vsub.f32 %v1427_v22, %v1331_v20  ;;  %v982_v13 = vadd.f32 %v981_v61, %v3838_v48  ;;  %v1804_v5 = vmul.f32 %v1708_v57, %v1612_v49  ;;  %v1714_v22 = vld [vmem:[%s3514_s27 + $0x240] sm:$0xff]  ;;  %v1435_v0 = vld [vmem:[%s3403_s30 + $0x288] sm:$0xff]  ;;  %v4425_v20 = vld [vmem:[#allocation37_spill] sm:$0xff] }
 0x26b   : > { %v1525_v33 = vsub.f32 %v1429_v2, %v1333_v45  ;;  %v1334_v47 = vadd.f32 %v3488_v23, %v978_v10  ;;  %v1805_v42 = vmul.f32 %v1709_v31, %v1613_v3  ;;  %v993_v62 = vpop.f32.mrb[56].mxu0  ;;  %v1951_v60 = vadd.f32 %v1919_v40, %v1803_v26  ;;  %v1436_v45 = vld [vmem:[%s3403_s30 + $0x290] sm:$0xff] }
 0x26c   : > { %v1619_v11 = vmul.f32 %v1523_v34, %v1523_v34  ;;  %v1336_v25 = vadd.f32 %v3486_v21, %v982_v13  ;;  %v1806_v18 = vmul.f32 %v1710_v28, %v3912_v6  ;;  %v995_v61 = vpop.f32.mrb[57].mxu0  ;;  %v984_v3 = vadd.f32 %v983_v36, %v3838_v48  ;;  %v1717_v28 = vld [vmem:[%s3514_s27 + $0x258] sm:$0xff]  ;;  %v1438_v13 = vld [vmem:[%s3403_s30 + $0x2a0] sm:$0xff] }
 0x26d   : > { %v1621_v8 = vmul.f32 %v1525_v33, %v1525_v33  ;;  %v1526_v14 = vsub.f32 %v1430_v27, %v1334_v47  ;;  %v1920_v49 = vadd.f32 %v1805_v42, %v1804_v5  ;;  %2071 = vadd.xlane.f32.xlu0 %v1951_v60  ;;  %v988_v37 = vadd.f32 %v987_v1, %v3884_v53  ;;  %v1718_v47 = vld [vmem:[%s3514_s27 + $0x260] sm:$0xff] }
 0x26e   : > { %v1528_v12 = vsub.f32 %v1432_v16, %v1336_v25  ;;  %v1807_v17 = vmul.f32 %v1711_v9, %v1615_v58  ;;  %v1808_v19 = vmul.f32 %v1712_v39, %v1616_v44  ;;  %v1337_v15 = vadd.f32 %v3488_v23, %v984_v3 }
 0x26f   : > { %v1622_v6 = vmul.f32 %v1526_v14, %v1526_v14  ;;  %v1952_v50 = vadd.f32 %v1920_v49, %v1806_v18  ;;  %v1809_v2 = vmul.f32 %v1713_v29, %v4425_v20  ;;  %v999_v48 = vpop.f32.mrb[58].mxu0  ;;  %v1339_v57 = vadd.f32 %v3486_v21, %v988_v37  ;;  %v1441_v14 = vld [vmem:[%s3403_s30 + $0x2b8] sm:$0xff]  ;;  %v1722_v37 = vld [vmem:[%s3514_s27 + $0x280] sm:$0xff]  ;;  %v1444_v20 = vld [vmem:[%s3403_s30 + $0x2d0] sm:$0xff] }
 0x270   : > { %v1624_v36 = vmul.f32 %v1528_v12, %v1528_v12  ;;  %v1921_v58 = vadd.f32 %v1808_v19, %v1807_v17  ;;  %v990_v1 = vadd.f32 %v989_v54, %v3884_v53  ;;  %v1001_v31 = vpop.f32.mrb[59].mxu0  ;;  %v1529_v44 = vsub.f32 %v1433_v30, %v1337_v15 }
 0x271   : > { %2073 = vadd.xlane.f32.xlu1 %v1952_v50  ;;  %v994_v56 = vadd.f32 %v993_v62, %v3893_v46  ;;  %v1810_v26 = vmul.f32 %v1714_v22, %v1618_v7  ;;  %v1811_v10 = vmul.f32 %v1715_v59, %v1619_v11  ;;  %v1531_v34 = vsub.f32 %v1435_v0, %v1339_v57  ;;  %v1719_v7 = vld [vmem:[%s3514_s27 + $0x268] sm:$0xff]  ;;  %v1442_v59 = vld [vmem:[%s3403_s30 + $0x2c0] sm:$0xff] }
 0x272   : > { %v1953_v40 = vadd.f32 %v1921_v58, %v1809_v2  ;;  %v1340_v27 = vadd.f32 %v3488_v23, %v990_v1  ;;  %v1812_v33 = vmul.f32 %v1716_v41, %v3922_v35  ;;  %v1625_v53 = vmul.f32 %v1529_v44, %v1529_v44  ;;  %v1439_v62 = vld [vmem:[%s3403_s30 + $0x2a8] sm:$0xff]  ;;  %v1437_v41 = vld [vmem:[%s3403_s30 + $0x298] sm:$0xff]  ;;  %v1724_v44 = vld [vmem:[%s3514_s27 + $0x290] sm:$0xff] }
 0x273   : > { %v1342_v54 = vadd.f32 %v3486_v21, %v994_v56  ;;  %v1922_v16 = vadd.f32 %v1811_v10, %v1810_v26  ;;  %v996_v5 = vadd.f32 %v995_v61, %v3893_v46  ;;  %v1005_v42 = vpop.f32.mrb[60].mxu0  ;;  %v1627_v9 = vmul.f32 %v1531_v34, %v1531_v34  ;;  %v1720_v46 = vld [vmem:[%s3514_s27 + $0x270] sm:$0xff]  ;;  %v1721_v61 = vld [vmem:[%s3514_s27 + $0x278] sm:$0xff] }
 0x274   : > { %2075 = vadd.xlane.f32.xlu0 %v1953_v40  ;;  %v1532_v39 = vsub.f32 %v1436_v45, %v1340_v27  ;;  %v1000_v11 = vadd.f32 %v999_v48, %v3925_v24  ;;  %v1813_v35 = vmul.f32 %v1717_v28, %v1621_v8  ;;  %v1007_v60 = vpop.f32.mrb[61].mxu0  ;;  %v1814_v49 = vmul.f32 %v1718_v47, %v1622_v6  ;;  %v1723_v48 = vld [vmem:[%s3514_s27 + $0x288] sm:$0xff]  ;;  %v1445_v28 = vld [vmem:[%s3403_s30 + $0x2d8] sm:$0xff] }
 0x275   : > { %v1534_v25 = vsub.f32 %v1438_v13, %v1342_v54  ;;  %v1954_v18 = vadd.f32 %v1922_v16, %v1812_v33  ;;  %v1343_v29 = vadd.f32 %v3488_v23, %v996_v5  ;;  %v1815_v30 = vmul.f32 %v1719_v7, %v3920_v38  ;;  %v1727_v13 = vld [vmem:[%s3514_s27 + $0x2a8] sm:$0xff]  ;;  %v1728_v5 = vld [vmem:[%s3514_s27 + $0x2b0] sm:$0xff] }
 0x276   : > { %v1628_v3 = vmul.f32 %v1532_v39, %v1532_v39  ;;  %v1345_v12 = vadd.f32 %v3486_v21, %v1000_v11  ;;  %v1002_v8 = vadd.f32 %v1001_v31, %v3925_v24  ;;  %v1923_v22 = vadd.f32 %v1814_v49, %v1813_v35  ;;  %v1447_v54 = vld [vmem:[%s3403_s30 + $0x2e8] sm:$0xff] }
 0x277   : > { %v1630_v17 = vmul.f32 %v1534_v25, %v1534_v25  ;;  %2077 = vadd.xlane.f32.xlu1 %v1954_v18  ;;  %v1535_v19 = vsub.f32 %v1439_v62, %v1343_v29  ;;  %v1006_v6 = vadd.f32 %v1005_v42, %v3937_v52  ;;  %v1011_v50 = vpop.f32.mrb[62].mxu0  ;;  %v1816_v2 = vmul.f32 %v1720_v46, %v1624_v36  ;;  %v1729_v62 = vld [vmem:[%s3514_s27 + $0x2b8] sm:$0xff]  ;;  %v1730_v29 = vld [vmem:[%s3514_s27 + $0x2c0] sm:$0xff] }
 0x278   : > { %v1537_v15 = vsub.f32 %v1441_v14, %v1345_v12  ;;  %v1346_v0 = vadd.f32 %v3488_v23, %v1002_v8  ;;  %v1817_v38 = vmul.f32 %v1721_v61, %v1625_v53  ;;  %v1013_v24 = vpop.f32.mrb[63].mxu0  ;;  %v1955_v58 = vadd.f32 %v1923_v22, %v1815_v30  ;;  %v1733_v61 = vld [vmem:[%s3514_s27 + $0x2d8] sm:$0xff] }
 0x279   : > { %v1631_v57 = vmul.f32 %v1535_v19, %v1535_v19  ;;  %v1348_v1 = vadd.f32 %v3486_v21, %v1006_v6  ;;  %v1818_v31 = vmul.f32 %v1722_v37, %v3976_v55  ;;  %v1008_v36 = vadd.f32 %v1007_v60, %v3937_v52  ;;  %v1726_v55 = vld [vmem:[%s3514_s27 + $0x2a0] sm:$0xff]  ;;  %v1725_v52 = vld [vmem:[%s3514_s27 + $0x298] sm:$0xff]  ;;  %v1448_v60 = vld [vmem:[%s3403_s30 + $0x2f0] sm:$0xff] }
 0x27a   : > { %v1633_v45 = vmul.f32 %v1537_v15, %v1537_v15  ;;  %v1538_v56 = vsub.f32 %v1442_v59, %v1346_v0  ;;  %v1924_v26 = vadd.f32 %v1817_v38, %v1816_v2  ;;  %2079 = vadd.xlane.f32.xlu0 %v1955_v58  ;;  %v1012_v34 = vadd.f32 %v1011_v50, %v3974_v32  ;;  %v1449_v37 = vld [vmem:[%s3403_s30 + $0x2f8] sm:$0xff]  ;;  %v1731_v59 = vld [vmem:[%s3514_s27 + $0x2c8] sm:$0xff]  ;;  %v1734_v50 = vld [vmem:[%s3514_s27 + $0x2e0] sm:$0xff] }
 0x27b   : > { %v1540_v10 = vsub.f32 %v1444_v20, %v1348_v1  ;;  %v1533_v40 = vsub.f32 %v1437_v41, %v3915_v43  ;;  %v1819_v27 = vmul.f32 %v1723_v48, %v1627_v9  ;;  %v1349_v53 = vadd.f32 %v3488_v23, %v1008_v36  ;;  %v1443_v9 = vld [vmem:[%s3403_s30 + $0x2c8] sm:$0xff]  ;;  %v1736_v2 = vld [vmem:[%s3514_s27 + $0x2f0] sm:$0xff]  ;;  %v1737_v1 = vld [vmem:[%s3514_s27 + $0x2f8] sm:$0xff] }
 0x27c   : > { %v1634_v33 = vmul.f32 %v1538_v56, %v1538_v56  ;;  %v1956_v47 = vadd.f32 %v1924_v26, %v1818_v31  ;;  %v1820_v16 = vmul.f32 %v1724_v44, %v1628_v3  ;;  %v1351_v42 = vadd.f32 %v3486_v21, %v1012_v34  ;;  %v1735_v15 = vld [vmem:[%s3514_s27 + $0x2e8] sm:$0xff] }
 0x27d   : > { %v1636_v7 = vmul.f32 %v1540_v10, %v1540_v10  ;;  %v1629_v39 = vmul.f32 %v1533_v40, %v1533_v40  ;;  %v1014_v43 = vadd.f32 %v1013_v24, %v3974_v32  ;;  %v1541_v11 = vsub.f32 %v1445_v28, %v1349_v53  ;;  %v1732_v32 = vld [vmem:[%s3514_s27 + $0x2d0] sm:$0xff]  ;;  %v4426_v24 = vld [vmem:[#allocation38_spill] sm:$0xff] }
 0x27e   : > { %2081 = vadd.xlane.f32.xlu1 %v1956_v47  ;;  %v1925_v35 = vadd.f32 %v1820_v16, %v1819_v27  ;;  %v1822_v25 = vmul.f32 %v1726_v55, %v1630_v17  ;;  %v1823_v18 = vmul.f32 %v1727_v13, %v1631_v57  ;;  %v1543_v14 = vsub.f32 %v1447_v54, %v1351_v42 }
 0x27f   : > { %v1821_v49 = vmul.f32 %v1725_v52, %v1629_v39  ;;  %v1352_v21 = vadd.f32 %v3488_v23, %v1014_v43  ;;  %v1824_v46 = vmul.f32 %v1728_v5, %v3978_v4  ;;  %v1637_v3 = vmul.f32 %v1541_v11, %v1541_v11 }
 0x280   : > { %v1926_v12 = vadd.f32 %v1823_v18, %v1822_v25  ;;  %v1539_v30 = vsub.f32 %v1443_v9, %v3962_v51  ;;  %v1825_v8 = vmul.f32 %v1729_v62, %v1633_v45  ;;  %v1639_v17 = vmul.f32 %v1543_v14, %v1543_v14 }
 0x281   : > { %v1957_v19 = vadd.f32 %v1925_v35, %v1821_v49  ;;  %v1544_v22 = vsub.f32 %v1448_v60, %v1352_v21  ;;  %v1826_v6 = vmul.f32 %v1730_v29, %v1634_v33  ;;  %v1828_v4 = vmul.f32 %v1732_v32, %v1636_v7 }
 0x282   : > { %v1958_v23 = vadd.f32 %v1926_v12, %v1824_v46  ;;  %v1635_v0 = vmul.f32 %v1539_v30, %v1539_v30  ;;  %v1829_v20 = vmul.f32 %v1733_v61, %v1637_v3  ;;  %v1545_v51 = vsub.f32 %v1449_v37, %v4005_v63 }
 0x283   : > { %2083 = vadd.xlane.f32.xlu0 %v1957_v19  ;;  %v1640_v38 = vmul.f32 %v1544_v22, %v1544_v22  ;;  %v1927_v41 = vadd.f32 %v1826_v6, %v1825_v8  ;;  %v1830_v57 = vmul.f32 %v1734_v50, %v4426_v24  ;;  %v1831_v31 = vmul.f32 %v1735_v15, %v1639_v17 }
 0x284   : > { %2085 = vadd.xlane.f32.xlu1 %v1958_v23  ;;  %v1827_v48 = vmul.f32 %v1731_v59, %v1635_v0  ;;  %v1928_v58 = vadd.f32 %v1829_v20, %v1828_v4  ;;  %v1641_v44 = vmul.f32 %v1545_v51, %v1545_v51 }
 0x285   : > { %v1832_v45 = vmul.f32 %v1736_v2, %v1640_v38 }
 0x286   : > { %v1959_v56 = vadd.f32 %v1927_v41, %v1827_v48  ;;  %v1960_v26 = vadd.f32 %v1928_v58, %v1830_v57  ;;  %v1833_v36 = vmul.f32 %v1737_v1, %v1641_v44 }
 0x287   : > { %v1929_v10 = vadd.f32 %v1832_v45, %v1831_v31 }
 0x288   : > { %2087 = vadd.xlane.f32.xlu0 %v1959_v56  ;;  %2089 = vadd.xlane.f32.xlu1 %v1960_v26 }
 0x289   : > { %v1961_v28 = vadd.f32 %v1929_v10, %v1833_v36 }
 0x28c   : > { %2091 = vadd.xlane.f32.xlu0 %v1961_v28 }
 0x298   : > { %v2030_v63 = vpop.xlane.xlu0 %2029 }
 0x299   : > { %2094 = vst.msk [vmem:[%s4200_s15] sm:$0xff] %vm2093_vm0, %v2030_v63 }
 0x29e   : > { %v2032_v34 = vpop.xlane.xlu1 %2031 }
 0x29f   : > { %2095 = vst.msk [vmem:[%s4200_s15 + $0x8] sm:$0xff] %vm2093_vm0, %v2032_v34 }
 0x2a2   : > { %v2034_v40 = vpop.xlane.xlu0 %2033 }
 0x2a3   : > { %2096 = vst.msk [vmem:[%s4200_s15 + $0x10] sm:$0xff] %vm2093_vm0, %v2034_v40 }
 0x2a7   : > { %v2036_v27 = vpop.xlane.xlu0 %2035 }
 0x2a8   : > { %2097 = vst.msk [vmem:[%s4200_s15 + $0x18] sm:$0xff] %vm2093_vm0, %v2036_v27 }
 0x2ab   : > { %v2038_v55 = vpop.xlane.xlu1 %2037 }
 0x2ac   : > { %2098 = vst.msk [vmem:[%s4200_s15 + $0x20] sm:$0xff] %vm2093_vm0, %v2038_v55 }
 0x2b0   : > { %v2040_v13 = vpop.xlane.xlu0 %2039 }
 0x2b1   : > { %2099 = vst.msk [vmem:[%s4200_s15 + $0x28] sm:$0xff] %vm2093_vm0, %v2040_v13 }
 0x2b5   : > { %v2042_v33 = vpop.xlane.xlu1 %2041 }
 0x2b6   : > { %2100 = vst.msk [vmem:[%s4200_s15 + $0x30] sm:$0xff] %vm2093_vm0, %v2042_v33 }
 0x2be   : > { %v2044_v47 = vpop.xlane.xlu0 %2043 }
 0x2bf   : > { %2101 = vst.msk [vmem:[%s4200_s15 + $0x38] sm:$0xff] %vm2093_vm0, %v2044_v47 }
 0x2c4   : > { %v2046_v53 = vpop.xlane.xlu1 %2045 }
 0x2c5   : > { %2102 = vst.msk [vmem:[%s4200_s15 + $0x40] sm:$0xff] %vm2093_vm0, %v2046_v53 }
 0x2cb   : > { %v2048_v54 = vpop.xlane.xlu0 %2047 }
 0x2cc   : > { %2103 = vst.msk [vmem:[%s4200_s15 + $0x48] sm:$0xff] %vm2093_vm0, %v2048_v54 }
 0x2d1   : > { %v2050_v52 = vpop.xlane.xlu1 %2049 }
 0x2d2   : > { %2104 = vst.msk [vmem:[%s4200_s15 + $0x50] sm:$0xff] %vm2093_vm0, %v2050_v52 }
 0x2d8   : > { %v2052_v16 = vpop.xlane.xlu0 %2051 }
 0x2d9   : > { %2105 = vst.msk [vmem:[%s4200_s15 + $0x58] sm:$0xff] %vm2093_vm0, %v2052_v16 }
 0x2de   : > { %v2054_v5 = vpop.xlane.xlu1 %2053 }
 0x2df   : > { %2106 = vst.msk [vmem:[%s4200_s15 + $0x60] sm:$0xff] %vm2093_vm0, %v2054_v5 }
 0x2e1   : > { %v2056_v7 = vpop.xlane.xlu0 %2055 }
 0x2e2   : > { %2107 = vst.msk [vmem:[%s4200_s15 + $0x68] sm:$0xff] %vm2093_vm0, %v2056_v7 }
 0x2e4   : > { %v2058_v42 = vpop.xlane.xlu1 %2057 }
 0x2e5   : > { %2108 = vst.msk [vmem:[%s4200_s15 + $0x70] sm:$0xff] %vm2093_vm0, %v2058_v42 }
 0x2e7   : > { %v2060_v39 = vpop.xlane.xlu0 %2059 }
 0x2e8   : > { %2109 = vst.msk [vmem:[%s4200_s15 + $0x78] sm:$0xff] %vm2093_vm0, %v2060_v39 }
 0x2ea   : > { %v2062_v43 = vpop.xlane.xlu1 %2061 }
 0x2eb   : > { %2110 = vst.msk [vmem:[%s4200_s15 + $0x80] sm:$0xff] %vm2093_vm0, %v2062_v43 }
 0x2ee   : > { %v2064_v9 = vpop.xlane.xlu0 %2063 }
 0x2ef   : > { %2111 = vst.msk [vmem:[%s4200_s15 + $0x88] sm:$0xff] %vm2093_vm0, %v2064_v9 }
 0x2f1   : > { %v2066_v62 = vpop.xlane.xlu1 %2065 }
 0x2f2   : > { %2112 = vst.msk [vmem:[%s4200_s15 + $0x90] sm:$0xff] %vm2093_vm0, %v2066_v62 }
 0x2f4   : > { %v2068_v11 = vpop.xlane.xlu0 %2067 }
 0x2f5   : > { %2113 = vst.msk [vmem:[%s4200_s15 + $0x98] sm:$0xff] %vm2093_vm0, %v2068_v11 }
 0x2f7   : > { %v2070_v35 = vpop.xlane.xlu1 %2069 }
 0x2f8   : > { %2114 = vst.msk [vmem:[%s4200_s15 + $0xa0] sm:$0xff] %vm2093_vm0, %v2070_v35 }
 0x2fa   : > { %v2072_v60 = vpop.xlane.xlu0 %2071 }
 0x2fb   : > { %2115 = vst.msk [vmem:[%s4200_s15 + $0xa8] sm:$0xff] %vm2093_vm0, %v2072_v60 }
 0x2fe   : > { %v2074_v25 = vpop.xlane.xlu1 %2073 }
 0x2ff   : > { %2116 = vst.msk [vmem:[%s4200_s15 + $0xb0] sm:$0xff] %vm2093_vm0, %v2074_v25 }
 0x301   : > { %v2076_v18 = vpop.xlane.xlu0 %2075 }
 0x302   : > { %2117 = vst.msk [vmem:[%s4200_s15 + $0xb8] sm:$0xff] %vm2093_vm0, %v2076_v18 }
 0x304   : > { %v2078_v29 = vpop.xlane.xlu1 %2077 }
 0x305   : > { %2118 = vst.msk [vmem:[%s4200_s15 + $0xc0] sm:$0xff] %vm2093_vm0, %v2078_v29 }
 0x307   : > { %v2080_v14 = vpop.xlane.xlu0 %2079 }
 0x308   : > { %2119 = vst.msk [vmem:[%s4200_s15 + $0xc8] sm:$0xff] %vm2093_vm0, %v2080_v14 }
 0x30b   : > { %v2082_v49 = vpop.xlane.xlu1 %2081 }
 0x30c   : > { %2120 = vst.msk [vmem:[%s4200_s15 + $0xd0] sm:$0xff] %vm2093_vm0, %v2082_v49 }
 0x310   : > { %v2084_v21 = vpop.xlane.xlu0 %2083 }
 0x311   : > { %2121 = vst.msk [vmem:[%s4200_s15 + $0xd8] sm:$0xff] %vm2093_vm0, %v2084_v21  ;;  %v2086_v46 = vpop.xlane.xlu1 %2085 }
 0x312   : > { %2122 = vst.msk [vmem:[%s4200_s15 + $0xe0] sm:$0xff] %vm2093_vm0, %v2086_v46 }
 0x315   : > { %v2088_v32 = vpop.xlane.xlu0 %2087  ;;  %v2090_v61 = vpop.xlane.xlu1 %2089 }
 0x316   : > { %2123 = vst.msk [vmem:[%s4200_s15 + $0xe8] sm:$0xff] %vm2093_vm0, %v2088_v32  ;;  %2124 = vst.msk [vmem:[%s4200_s15 + $0xf0] sm:$0xff] %vm2093_vm0, %v2090_v61 }
 0x319   : > { %v2092_v3 = vpop.xlane.xlu0 %2091 }
 0x31a   : > { %2125 = vst.msk [vmem:[%s4200_s15 + $0xf8] sm:$0xff] %vm2093_vm0, %v2092_v3 }
 0x31b   : > { %2934 = shalt.err (!%p2931_p13)
}
 0x31c   : > { %s2935_s9 = scalar_lea.hbm %s4269_s28, 4096  ;;  %s2939_s14 = scalar_lea.hbm %s4429_s29, 8192 }
 0x31d   : > { %p2936_p0 = scmp.ne.s32.totalorder %s4269_s28, %s2935_s9  ;;  %p2940_p8 = scmp.lt.u32.totalorder %s4269_s28, %s4429_s29 }
 0x31e   : > { %p2941_p1 = scmp.lt.u32.totalorder %s2939_s14, %s2935_s9  ;;  %p2943_p10 = scmp.lt.u32.totalorder %s2935_s9, %s4269_s28 }
 0x31f   : > { %p2937_p4 = pnand %p2936_p0, %p4430_p12 }
 0x320   : > { %p2942_p6 = por %p2941_p1, %p2940_p8 }
 0x321   : > { %p2938_p9 = pneg %p2937_p4 }
 0x322   : > { %p2944_p5 = por %p2943_p10, %p2942_p6 }
 0x324   : > { %p2945_p3 = pnand %p2944_p5, %p2938_p9 }
 0x326   : > { %2948 = shalt.err (!%p2945_p3)
}
 0x327   : > { %s3033_s6 = smov 128   ;;  %s3034_s7 = smov 8  }
 0x328   : > { %2654 = dma.vmem_to_hbm [thread:$0]  (%p4430_p12), %s4271_s22, 4096, %s4269_s28, %s2127_s23, %s3033_s6, %s3033_s6, %s3034_s7  }
 0x329 PF: > { %s4431_s8 = sld [smem:[#allocation20_spill]]  ;;  %s4432_s17 = sld [smem:[#allocation26_spill]] }
 0x32a   : > { %s4433_s30 = sld [smem:[#allocation24_spill]] }
 0x32f   : > { %s2155_s27 = sand.u32 1, %s4431_s8   ;;  %p4434_p7 = scmp.ne.s32.totalorder %s4432_s17, 0 }
 0x330   : > { %p4435_p2 = scmp.ge.s32.totalorder %s4433_s30, 2  ;;  %s2156_s15 = scalar_lea.sflag [#allocation5], %s2155_s27 }
 0x332   : > { %p2677_p11 = pnand %p4435_p2, %p4434_p7 }
 0x334   : > { %2994 = dma.done.wait (!%p2677_p11), %s2156_s15, 4096  }
 0x335   : > { %2996 = vsyncadd (!%p2677_p11), %s2156_s15, 4294963200  ;;  %s26_s26 = sadd.s32 1, %s4433_s30   ;;  %s4436_s21 = sld [smem:[#allocation21_spill]] }
 0x336   : > { %p23_p13 = scmp.ge.s32.totalorder %s26_s26, 4   ;;  %s4437_s22 = sld [smem:[#allocation22_spill]] }
 0x337   : > { %s4438_s23 = sld [smem:[#allocation29_spill]]  ;;  %s4439_s10 = sld [smem:[#allocation27_spill]] }
 0x338   : > { %s4440_s24 = smov %s3015_s25  ;;  %25 = sbr.rel (!%p23_p13) target bundleno = 14 (0xe), region = 142 }
 0x33d   : > { %s4441_s25 = smov %s4439_s10 }
 0x33f   :  { %2161 = vsyncpa [#allocation4], 1 }
 0x340   :  { %2163 = vsyncpa [#allocation4 + $0x1], 1 }
 0x341   :  { %2164 = vsyncpa [#allocation7], 1 }
 0x342   :  { %2165 = vsyncpa [#allocation11], 1 }
 0x343   :  { %2167 = vsyncpa [#allocation11 + $0x1], 1 }
 0x344   :  { %2168 = vsyncpa [#allocation5], 1 }
 0x345   :  { %2170 = vsyncpa [#allocation5 + $0x1], 1 }

</bundles_post_ra>
